<compile_context>
chip_gen: v5e
topology: v5e:2x2
jax: 0.10.0
libtpu: 0.0.40
codegen_flags: <defaults>
</compile_context>

<pallas_src>
import jax
import jax.numpy as jnp
from jax.experimental import pallas as pl
from jax.experimental.pallas import tpu as pltpu

KH = KW = 3            # kernel_size=3, stride=1, padding=1 (ConvBlock defaults)
_MISH_Z_CUTOFF = 20.0  # for z > 20, mish(z) == z to f32 precision


def _conv_stats_kernel(x_ref, w_ref, o_ref, sum_ref, ssq_ref, patch_ref):
    """3x3 conv (input pre-padded) + fused per-channel sum / sum-of-squares.

    x_ref:     (1, H+2, W+2, Cin)   padded NHWC input tile (bf16 or f32)
    w_ref:     (KH*KW*Cin, Cout)    im2col-flattened weight
    o_ref:     (1, H*W, Cout)       conv output (f32)
    sum_ref:   (1, 1, Cout)         channel sums for this batch element (f32)
    ssq_ref:   (1, 1, Cout)         channel sums of squares (f32)
    patch_ref: VMEM (H*W, KH*KW*Cin) im2col staging scratch
    """
    _, Hp, Wp, Cin = x_ref.shape
    H, W = Hp - 2, Wp - 2

    x = x_ref[0]                                            # (Hp, Wp, Cin)

    # Stage the 9 shifted views once into the VMEM im2col buffer so the MXU
    # sees a single K = KH*KW*Cin matmul instead of 9 tiny K=Cin matmuls.
    for kh in range(KH):
        for kw in range(KW):
            c0 = (kh * KW + kw) * Cin
            patch_ref[:, c0:c0 + Cin] = (
                x[kh:kh + H, kw:kw + W, :].reshape(H * W, Cin))

    acc = jnp.dot(patch_ref[...], w_ref[...],
                  preferred_element_type=jnp.float32)       # (H*W, Cout) f32

    o_ref[0] = acc.astype(o_ref.dtype)
    # Fused BatchNorm statistics (spatial reduction here; the tiny cross-batch
    # reduction happens outside the kernel).
    sum_ref[0] = jnp.sum(acc, axis=0, keepdims=True)
    ssq_ref[0] = jnp.sum(acc * acc, axis=0, keepdims=True)


def _bn_mish_kernel(y_ref, scale_ref, shift_ref, o_ref):
    """Fused BN affine (precomputed scale/shift) + Mish on a lane-dense layout.

    y_ref / o_ref: (tile_rows, W*Cout), scale_ref / shift_ref: (1, W*Cout).
    """
    z = y_ref[...] * scale_ref[...] + shift_ref[...]
    # mish(z) = z * tanh(softplus(z)) = z * (e^{2z}+2e^z) / (e^{2z}+2e^z+2)
    u = jnp.exp(z)
    t = u * (u + 2.0)
    mish = z * t * pl.reciprocal(t + 2.0, approx=True)
    # Guard the exp overflow region; there mish(z) == z.
    o_ref[...] = jnp.where(z > _MISH_Z_CUTOFF, z, mish).astype(o_ref.dtype)


def conv_block_forward(x_nchw, w_hwio, gamma, beta, eps=1e-5,
                       compute_dtype=jnp.bfloat16):
    """ConvBlock forward: NCHW in, NCHW out (matches the PyTorch module)."""
    N, Cin, H, W = x_nchw.shape
    Cout = w_hwio.shape[-1]
    Hp, Wp = H + 2, W + 2
    WC = W * Cout

    # NCHW -> NHWC, 1-pixel zero pad, bf16 for the MXU (f32 accumulation inside).
    x = jnp.transpose(x_nchw, (0, 2, 3, 1)).astype(compute_dtype)
    x_pad = jnp.pad(x, ((0, 0), (1, 1), (1, 1), (0, 0)))
    w_flat = w_hwio.reshape(KH * KW * Cin, Cout).astype(compute_dtype)

    # Explicit (generous but bounded) VMEM budget for the conv pass.
    isz = jnp.dtype(compute_dtype).itemsize
    est = (2 * Hp * Wp * Cin * isz                 # double-buffered input block
           + 2 * KH * KW * Cin * Cout * isz        # weight block
           + 2 * (H * W * Cout + 2 * Cout) * 4     # conv + stats output blocks
           + H * W * KH * KW * Cin * isz)          # im2col scratch
    vmem_limit = int(min(max(2 * est, 4 << 20), 32 << 20))

    # --- conv + fused batch-stat reduction (one batch element per grid step) ---
    # NOTE: for very large H*W on v7x (64 MiB VMEM) this per-element tile would
    # need an additional H-tile grid axis with a 2-row halo.
    conv, sums, ssqs = pl.pallas_call(
        _conv_stats_kernel,
        out_shape=(
            jax.ShapeDtypeStruct((N, H * W, Cout), jnp.float32),
            jax.ShapeDtypeStruct((N, 1, Cout), jnp.float32),
            jax.ShapeDtypeStruct((N, 1, Cout), jnp.float32),
        ),
        grid=(N,),
        in_specs=[
            pl.BlockSpec((1, Hp, Wp, Cin), lambda n: (n, 0, 0, 0)),
            pl.BlockSpec((KH * KW * Cin, Cout), lambda n: (0, 0)),
        ],
        out_specs=(
            pl.BlockSpec((1, H * W, Cout), lambda n: (n, 0, 0)),
            pl.BlockSpec((1, 1, Cout), lambda n: (n, 0, 0)),
            pl.BlockSpec((1, 1, Cout), lambda n: (n, 0, 0)),
        ),
        scratch_shapes=[pltpu.VMEM((H * W, KH * KW * Cin), compute_dtype)],
        compiler_params=pltpu.CompilerParams(
            dimension_semantics=("parallel",),
            vmem_limit_bytes=vmem_limit),
    )(x_pad, w_flat)

    # BatchNorm2d training semantics: per-channel batch stats over (N, H, W),
    # biased variance, eps=1e-5 — computed from the tiny fused sums.
    count = float(N * H * W)
    mean = jnp.sum(sums, axis=(0, 1)) / count                       # (Cout,)
    var = jnp.maximum(jnp.sum(ssqs, axis=(0, 1)) / count - mean * mean, 0.0)
    scale = gamma.astype(jnp.float32) * jax.lax.rsqrt(var + eps)
    shift = beta.astype(jnp.float32) - mean * scale

    # Lane-dense view of the conv output: rows = (n, h), cols = (w, c).
    # conv.reshape is a free reinterpretation of the contiguous buffer.
    rows = N * H
    y2d = conv.reshape(rows, WC)
    scale_t = jnp.tile(scale, W).reshape(1, WC)   # col j = w*Cout + c -> scale[c]
    shift_t = jnp.tile(shift, W).reshape(1, WC)

    # Group whole batch elements per grid step (amortizes the ~0.35 us/step
    # overhead) while keeping each block small and the block shape legal.
    budget = 2 << 20
    g = 1
    for cand in range(N, 0, -1):
        if N % cand == 0 and cand * H * WC * 4 <= budget and (
                cand == N or (cand * H) % 8 == 0):
            g = cand
            break
    tile_rows = g * H

    # --- fused BN-affine + Mish elementwise pass (lane-dense blocks) ---
    out2d = pl.pallas_call(
        _bn_mish_kernel,
        out_shape=jax.ShapeDtypeStruct((rows, WC), jnp.float32),
        grid=(rows // tile_rows,),
        in_specs=[
            pl.BlockSpec((tile_rows, WC), lambda i: (i, 0)),
            pl.BlockSpec((1, WC), lambda i: (0, 0)),
            pl.BlockSpec((1, WC), lambda i: (0, 0)),
        ],
        out_specs=pl.BlockSpec((tile_rows, WC), lambda i: (i, 0)),
        compiler_params=pltpu.CompilerParams(
            dimension_semantics=("parallel",)),
    )(y2d, scale_t, shift_t)

    out = out2d.reshape(N, H, W, Cout)
    return jnp.transpose(out, (0, 3, 1, 2))       # back to NCHW


if __name__ == "__main__":
    # Small deterministic example consistent with ConvBlock(4, 8, 3, 1, 1).
    N, Cin, Cout, H, W = 2, 4, 8, 16, 16

    key = jax.random.PRNGKey(0)
    kx, kw = jax.random.split(key)
    x = jax.random.normal(kx, (N, Cin, H, W), dtype=jnp.float32)
    # Conv weight in HWIO (PyTorch stores OIHW — pure layout choice).
    w = 0.1 * jax.random.normal(kw, (KH, KW, Cin, Cout), dtype=jnp.float32)
    # BatchNorm2d default parameter init: gamma=1, beta=0.
    gamma = jnp.ones((Cout,), jnp.float32)
    beta = jnp.zeros((Cout,), jnp.float32)

    y = conv_block_forward(x, w, gamma, beta)
    jax.block_until_ready(y)
    assert y.shape == (N, Cout, H, W), y.shape
    print("KERNEL_OK")
</pallas_src>

<mosaic_0001>
module attributes {stable_mosaic.version = 11 : i64} {
  func.func @_conv_stats_kernel(%arg0: i32, %arg1: memref<1x18x18x4xbf16, #tpu.memory_space<vmem>>, %arg2: memref<36x8xbf16, #tpu.memory_space<vmem>>, %arg3: memref<1x256x8xf32, #tpu.memory_space<vmem>>, %arg4: memref<1x1x8xf32, #tpu.memory_space<vmem>>, %arg5: memref<1x1x8xf32, #tpu.memory_space<vmem>>, %arg6: memref<256x36xbf16, #tpu.memory_space<vmem>>) attributes {dimension_semantics = [#tpu.dimension_semantics<parallel>], iteration_bounds = array<i64: 2>, scalar_prefetch = 0 : i64, scratch_operands = 1 : i64, tpu.core_type = #tpu.core_type<tc>, window_params = [{transform_indices = @transform_0, window_bounds = array<i64: 1, 18, 18, 4>}, {pipeline_mode = #tpu.pipeline_mode<synchronous>, transform_indices = @transform_1, window_bounds = array<i64: 36, 8>}, {transform_indices = @transform_2, window_bounds = array<i64: 1, 256, 8>}, {transform_indices = @transform_3, window_bounds = array<i64: 1, 1, 8>}, {transform_indices = @transform_4, window_bounds = array<i64: 1, 1, 8>}]} {
    %c0 = arith.constant 0 : index
    %c0_0 = arith.constant 0 : index
    %c0_1 = arith.constant 0 : index
    %c0_2 = arith.constant 0 : index
    %0 = vector.load %arg1[%c0, %c0_0, %c0_1, %c0_2] : memref<1x18x18x4xbf16, #tpu.memory_space<vmem>>, vector<1x18x18x4xbf16>
    %1 = vector.shape_cast %0 : vector<1x18x18x4xbf16> to vector<18x18x4xbf16>
    %2 = vector.extract_strided_slice %1 {offsets = [0, 0, 0], sizes = [16, 16, 4], strides = [1, 1, 1]} : vector<18x18x4xbf16> to vector<16x16x4xbf16>
    %3 = vector.shape_cast %2 : vector<16x16x4xbf16> to vector<256x4xbf16>
    %c0_3 = arith.constant 0 : index
    %c0_4 = arith.constant 0 : index
    %4 = vector.load %arg6[%c0_3, %c0_4] : memref<256x36xbf16, #tpu.memory_space<vmem>>, vector<256x4xbf16>
    tpu.vector_store %arg6[%c0_3, %c0_4], %3 {strides = array<i32>} : memref<256x36xbf16, #tpu.memory_space<vmem>>, vector<256x4xbf16>,
    %5 = vector.extract_strided_slice %1 {offsets = [0, 1, 0], sizes = [16, 16, 4], strides = [1, 1, 1]} : vector<18x18x4xbf16> to vector<16x16x4xbf16>
    %6 = vector.shape_cast %5 : vector<16x16x4xbf16> to vector<256x4xbf16>
    %c0_5 = arith.constant 0 : index
    %c4 = arith.constant 4 : index
    %7 = vector.load %arg6[%c0_5, %c4] : memref<256x36xbf16, #tpu.memory_space<vmem>>, vector<256x4xbf16>
    tpu.vector_store %arg6[%c0_5, %c4], %6 {strides = array<i32>} : memref<256x36xbf16, #tpu.memory_space<vmem>>, vector<256x4xbf16>,
    %8 = vector.extract_strided_slice %1 {offsets = [0, 2, 0], sizes = [16, 16, 4], strides = [1, 1, 1]} : vector<18x18x4xbf16> to vector<16x16x4xbf16>
    %9 = vector.shape_cast %8 : vector<16x16x4xbf16> to vector<256x4xbf16>
    %c0_6 = arith.constant 0 : index
    %c8 = arith.constant 8 : index
    %10 = vector.load %arg6[%c0_6, %c8] : memref<256x36xbf16, #tpu.memory_space<vmem>>, vector<256x4xbf16>
    tpu.vector_store %arg6[%c0_6, %c8], %9 {strides = array<i32>} : memref<256x36xbf16, #tpu.memory_space<vmem>>, vector<256x4xbf16>,
    %11 = vector.extract_strided_slice %1 {offsets = [1, 0, 0], sizes = [16, 16, 4], strides = [1, 1, 1]} : vector<18x18x4xbf16> to vector<16x16x4xbf16>
    %12 = vector.shape_cast %11 : vector<16x16x4xbf16> to vector<256x4xbf16>
    %c0_7 = arith.constant 0 : index
    %c12 = arith.constant 12 : index
    %13 = vector.load %arg6[%c0_7, %c12] : memref<256x36xbf16, #tpu.memory_space<vmem>>, vector<256x4xbf16>
    tpu.vector_store %arg6[%c0_7, %c12], %12 {strides = array<i32>} : memref<256x36xbf16, #tpu.memory_space<vmem>>, vector<256x4xbf16>,
    %14 = vector.extract_strided_slice %1 {offsets = [1, 1, 0], sizes = [16, 16, 4], strides = [1, 1, 1]} : vector<18x18x4xbf16> to vector<16x16x4xbf16>
    %15 = vector.shape_cast %14 : vector<16x16x4xbf16> to vector<256x4xbf16>
    %c0_8 = arith.constant 0 : index
    %c16 = arith.constant 16 : index
    %16 = vector.load %arg6[%c0_8, %c16] : memref<256x36xbf16, #tpu.memory_space<vmem>>, vector<256x4xbf16>
    tpu.vector_store %arg6[%c0_8, %c16], %15 {strides = array<i32>} : memref<256x36xbf16, #tpu.memory_space<vmem>>, vector<256x4xbf16>,
    %17 = vector.extract_strided_slice %1 {offsets = [1, 2, 0], sizes = [16, 16, 4], strides = [1, 1, 1]} : vector<18x18x4xbf16> to vector<16x16x4xbf16>
    %18 = vector.shape_cast %17 : vector<16x16x4xbf16> to vector<256x4xbf16>
    %c0_9 = arith.constant 0 : index
    %c20 = arith.constant 20 : index
    %19 = vector.load %arg6[%c0_9, %c20] : memref<256x36xbf16, #tpu.memory_space<vmem>>, vector<256x4xbf16>
    tpu.vector_store %arg6[%c0_9, %c20], %18 {strides = array<i32>} : memref<256x36xbf16, #tpu.memory_space<vmem>>, vector<256x4xbf16>,
    %20 = vector.extract_strided_slice %1 {offsets = [2, 0, 0], sizes = [16, 16, 4], strides = [1, 1, 1]} : vector<18x18x4xbf16> to vector<16x16x4xbf16>
    %21 = vector.shape_cast %20 : vector<16x16x4xbf16> to vector<256x4xbf16>
    %c0_10 = arith.constant 0 : index
    %c24 = arith.constant 24 : index
    %22 = vector.load %arg6[%c0_10, %c24] : memref<256x36xbf16, #tpu.memory_space<vmem>>, vector<256x4xbf16>
    tpu.vector_store %arg6[%c0_10, %c24], %21 {strides = array<i32>} : memref<256x36xbf16, #tpu.memory_space<vmem>>, vector<256x4xbf16>,
    %23 = vector.extract_strided_slice %1 {offsets = [2, 1, 0], sizes = [16, 16, 4], strides = [1, 1, 1]} : vector<18x18x4xbf16> to vector<16x16x4xbf16>
    %24 = vector.shape_cast %23 : vector<16x16x4xbf16> to vector<256x4xbf16>
    %c0_11 = arith.constant 0 : index
    %c28 = arith.constant 28 : index
    %25 = vector.load %arg6[%c0_11, %c28] : memref<256x36xbf16, #tpu.memory_space<vmem>>, vector<256x4xbf16>
    tpu.vector_store %arg6[%c0_11, %c28], %24 {strides = array<i32>} : memref<256x36xbf16, #tpu.memory_space<vmem>>, vector<256x4xbf16>,
    %26 = vector.extract_strided_slice %1 {offsets = [2, 2, 0], sizes = [16, 16, 4], strides = [1, 1, 1]} : vector<18x18x4xbf16> to vector<16x16x4xbf16>
    %27 = vector.shape_cast %26 : vector<16x16x4xbf16> to vector<256x4xbf16>
    %c0_12 = arith.constant 0 : index
    %c32 = arith.constant 32 : index
    %28 = vector.load %arg6[%c0_12, %c32] : memref<256x36xbf16, #tpu.memory_space<vmem>>, vector<256x4xbf16>
    tpu.vector_store %arg6[%c0_12, %c32], %27 {strides = array<i32>} : memref<256x36xbf16, #tpu.memory_space<vmem>>, vector<256x4xbf16>,
    %c0_13 = arith.constant 0 : index
    %c0_14 = arith.constant 0 : index
    %29 = vector.load %arg6[%c0_13, %c0_14] : memref<256x36xbf16, #tpu.memory_space<vmem>>, vector<256x36xbf16>
    %c0_15 = arith.constant 0 : index
    %c0_16 = arith.constant 0 : index
    %30 = vector.load %arg2[%c0_15, %c0_16] : memref<36x8xbf16, #tpu.memory_space<vmem>>, vector<36x8xbf16>
    %cst = arith.constant dense<0.000000e+00> : vector<256x8xf32>
    %31 = tpu.matmul %29, %30, %cst {dimension_numbers = #tpu.dot_dimension_numbers<[1], [0], [0], [1], [0, 0, 1, 1], [], []>} : vector<256x36xbf16>, vector<36x8xbf16>, vector<256x8xf32> -> vector<256x8xf32>
    %c0_17 = arith.constant 0 : index
    %c0_18 = arith.constant 0 : index
    %c0_19 = arith.constant 0 : index
    %32 = vector.load %arg3[%c0_17, %c0_18, %c0_19] : memref<1x256x8xf32, #tpu.memory_space<vmem>>, vector<1x256x8xf32>
    %33 = vector.shape_cast %32 : vector<1x256x8xf32> to vector<256x8xf32>
    %34 = vector.shape_cast %31 : vector<256x8xf32> to vector<1x256x8xf32>
    tpu.vector_store %arg3[%c0_17, %c0_18, %c0_19], %34 {strides = array<i32>} : memref<1x256x8xf32, #tpu.memory_space<vmem>>, vector<1x256x8xf32>,
    %cst_20 = arith.constant dense<0.000000e+00> : vector<8xf32>
    %35 = vector.multi_reduction <add>, %31, %cst_20 [0] : vector<256x8xf32> to vector<8xf32>
    %36 = vector.shape_cast %35 : vector<8xf32> to vector<1x8xf32>
    %c0_21 = arith.constant 0 : index
    %c0_22 = arith.constant 0 : index
    %c0_23 = arith.constant 0 : index
    %37 = vector.load %arg4[%c0_21, %c0_22, %c0_23] : memref<1x1x8xf32, #tpu.memory_space<vmem>>, vector<1x1x8xf32>
    %38 = vector.shape_cast %37 : vector<1x1x8xf32> to vector<1x8xf32>
    %39 = vector.shape_cast %36 : vector<1x8xf32> to vector<1x1x8xf32>
    tpu.vector_store %arg4[%c0_21, %c0_22, %c0_23], %39 {strides = array<i32>} : memref<1x1x8xf32, #tpu.memory_space<vmem>>, vector<1x1x8xf32>,
    %40 = arith.mulf %31, %31 : vector<256x8xf32>
    %cst_24 = arith.constant dense<0.000000e+00> : vector<8xf32>
    %41 = vector.multi_reduction <add>, %40, %cst_24 [0] : vector<256x8xf32> to vector<8xf32>
    %42 = vector.shape_cast %41 : vector<8xf32> to vector<1x8xf32>
    %c0_25 = arith.constant 0 : index
    %c0_26 = arith.constant 0 : index
    %c0_27 = arith.constant 0 : index
    %43 = vector.load %arg5[%c0_25, %c0_26, %c0_27] : memref<1x1x8xf32, #tpu.memory_space<vmem>>, vector<1x1x8xf32>
    %44 = vector.shape_cast %43 : vector<1x1x8xf32> to vector<1x8xf32>
    %45 = vector.shape_cast %42 : vector<1x8xf32> to vector<1x1x8xf32>
    tpu.vector_store %arg5[%c0_25, %c0_26, %c0_27], %45 {strides = array<i32>} : memref<1x1x8xf32, #tpu.memory_space<vmem>>, vector<1x1x8xf32>,
    return
  }
  func.func @transform_0(%arg0: i32) -> (i32, i32, i32, i32) {
    %c0_i32 = arith.constant 0 : i32
    %c0_i32_0 = arith.constant 0 : i32
    %c0_i32_1 = arith.constant 0 : i32
    %c0_i32_2 = arith.constant 0 : i32
    return %arg0, %c0_i32, %c0_i32_0, %c0_i32_1 : i32, i32, i32, i32
  }
  func.func @transform_1(%arg0: i32) -> (i32, i32) {
    %c0_i32 = arith.constant 0 : i32
    %c0_i32_0 = arith.constant 0 : i32
    %c0_i32_1 = arith.constant 0 : i32
    return %c0_i32, %c0_i32_0 : i32, i32
  }
  func.func @transform_2(%arg0: i32) -> (i32, i32, i32) {
    %c0_i32 = arith.constant 0 : i32
    %c0_i32_0 = arith.constant 0 : i32
    %c0_i32_1 = arith.constant 0 : i32
    return %arg0, %c0_i32, %c0_i32_0 : i32, i32, i32
  }
  func.func @transform_3(%arg0: i32) -> (i32, i32, i32) {
    %c0_i32 = arith.constant 0 : i32
    %c0_i32_0 = arith.constant 0 : i32
    %c0_i32_1 = arith.constant 0 : i32
    return %arg0, %c0_i32, %c0_i32_0 : i32, i32, i32
  }
  func.func @transform_4(%arg0: i32) -> (i32, i32, i32) {
    %c0_i32 = arith.constant 0 : i32
    %c0_i32_0 = arith.constant 0 : i32
    %c0_i32_1 = arith.constant 0 : i32
    return %arg0, %c0_i32, %c0_i32_0 : i32, i32, i32
  }
}

</mosaic_0001>

<bundles_post_ra>
// kernel: tpu_custom_call.1
= control target key start
LH: loop header
LB: loop body
LE: loop exit
PB: predicated region body
PF: predicated region fallthrough
CT: control target
= control target key end

     0   :  { %10 = vsyncpa [#allocation4], 0  ;;  %s4666_s0 = inlined_call_operand.vmem [shape: bf16[2,18,18,4], index: 0, kind: input, shape index: {}]   ;;  %s4667_s1 = inlined_call_operand.vmem [shape: bf16[36,8], index: 1, kind: input, shape index: {}]   ;;  %s4668_s2 = inlined_call_operand.vmem [shape: f32[2,256,8], index: 2, kind: output, shape index: {0}]   ;;  %s4669_s3 = inlined_call_operand.hbm [shape: f32[2,1,8], index: 3, kind: output, shape index: {1}]   ;;  %s4670_s4 = inlined_call_operand.hbm [shape: f32[2,1,8], index: 4, kind: output, shape index: {2}]  }
   0x1   :  { %12 = vsyncpa [#allocation4 + $0x1], 0 }
   0x2   :  { %13 = vsyncpa [#allocation6], 0 }
   0x3   :  { %15 = vsyncpa [#allocation6 + $0x1], 0  ;;  %s2907_s15 = smov 0   ;;  %s2909_s16 = smov 0  }
   0x4   :  { %s2911_s17 = smov 0   ;;  %s2913_s18 = smov 0  }
   0x5 LB: > { %s2928_s19 = sadd.s32 4294967295, %s2872_s18   ;;  %s2581_s20 = sadd.s32 4294967294, %s2872_s18   ;;  %s2872_s18 = sphi %s2913_s18, %s4937_s18   ;;  %s2868_s17 = sphi %s2911_s17, %s4936_s17   ;;  %s2864_s16 = sphi %s2909_s16, %s4935_s16   ;;  %s2860_s15 = sphi %s2907_s15, %s4934_s15  }
   0x6   : > { %s2932_s21 = sadd.s32 1, %s2872_s18   ;;  %s101_s22 = sadd.s32 1, %s2868_s17 }
   0x7   : > { %s98_s23 = ssub.s32 %s2872_s18, %s2932_s21  ;;  %p111_p0 = scmp.ne.s32.totalorder %s2868_s17, %s2864_s16 }
   0x8   : > { %p99_p1 = scmp.eq.s32.totalorder %s98_s23, 0  ;;  %p112_p2 = scmp.eq.s32.totalorder %s2928_s19, 1 }
   0x9   : > { %p117_p3 = scmp.ne.s32.totalorder %s2864_s16, %s2860_s15  ;;  %p118_p4 = scmp.eq.s32.totalorder %s2581_s20, 1 }
   0xa   : > { %s2943_s24 = scalar_select %p99_p1, %s2868_s17, %s101_s22  }
   0xb   : > { %p2945_p5 = por %p112_p2, %p111_p0  ;;  %p2949_p6 = por %p118_p4, %p117_p3 }
   0xc   : > { %p2584_p7 = scmp.ge.s32.totalorder %s2872_s18, 1  ;;  %p173_p8 = scmp.lt.s32.totalorder %s2872_s18, 3 }
   0xe   : > { %p174_p9 = pnand %p2584_p7, %p173_p8 }
  0x10   : > { %177 = sbr.rel (%p174_p9) target bundleno = 1012 (0x3f4), region = 28 }
  0x15   : > { %p207_p10 = scmp.lt.s32.totalorder %s2928_s19, 1  ;;  %vm305_vm0 = vsmask.f32 3328  ;;  %vm306_vm1 = vsmask.f32 7440  ;;  %v4783_v27 = vmov 0 }
  0x16   : > { %vm2999_vm2 = vmor %vm305_vm0, %vm306_vm1  ;;  %s2874_s6 = smov 4   ;;  %vm869_vm3 = vcmask 1042432   ;;  %vm870_vm4 = vcmask 1046532   ;;  %vm272_vm5 = vcmask 27648   ;;  %s2875_s7 = smov 8   ;;  %vm788_vm7 = vcmask 60448  }
  0x17   : > { %s2957_s27 = scalar_select %p207_p10, %s2928_s19, 1  ;;  %v4784_v27 = vsel %vm2999_vm2, 4294967295, %v4783_v27  ;;  %vm3386_vm6 = vmor %vm869_vm3, %vm870_vm4  ;;  %vm1080_vm8 = vcmask 93248   ;;  %vm1211_vm9 = vcmask 126048   ;;  %vm1364_vm10 = vcmask 158848  }
  0x18   : > { %4785 = vst [vmem:[#allocation9_spill] sm:$0xff] %v4784_v27  ;;  %s2876_s8 = smov 12   ;;  %s2877_s9 = smov 16   ;;  %vm1501_vm11 = vcmask 191648   ;;  %vm2136_vm12 = vcmask 1041408   ;;  %vm1632_vm13 = vcmask 224448  }
  0x19   : > { %s2724_s28 = smul.u32 216, %s2957_s27  ;;  %s2878_s10 = smov 20   ;;  %vm1785_vm14 = vcmask 257248   ;;  %vm1922_vm15 = vcmask 290048   ;;  %vm2087_vm0 = vcmask 293888   ;;  %vm2229_vm1 = vcmask 64512  }
  0x1a   : > { %s2879_s11 = smov 24   ;;  %s2880_s12 = smov 28  }
  0x1b   : > { %s2963_s5 = scalar_lea.vmem %s4666_s0, %s2724_s28  ;;  %s2881_s13 = smov 32  }
  0x1c   : > { %v2966_v0 = vld [vmem:[%s2963_s5 + $0xc] sm:$0xf]  ;;  %v2969_v1 = vld [vmem:[%s2963_s5 + $0x10] sm:$0xf]  ;;  %v2972_v2 = vld [vmem:[%s2963_s5] sm:$0xf] }
  0x1d   : > { %v333_v3 = vshrl.u32 %v2966_v0, 16  ;;  %v336_v4 = vshll.u32 %v2966_v0, 16  ;;  %v342_v5 = vshll.u32 %v2969_v1, 16  ;;  %v2978_v6 = vld [vmem:[%s2963_s5 + $0x4] sm:$0xf]  ;;  %v309_v7 = vshrl.u32 %v2972_v2, 16 }
  0x1e   : > { %v312_v8 = vshll.u32 %v2972_v2, 16  ;;  %v318_v9 = vshll.u32 %v2978_v6, 16  ;;  %v2984_v10 = vld [vmem:[%s2963_s5 + $0x14] sm:$0x1]  ;;  %v346_v11 = vshrl.u32 %v2969_v1, 16  ;;  %v322_v12 = vshrl.u32 %v2978_v6, 16 }
  0x1f   : > { %v335_v13 = vrot.slane %v333_v3, 4  ;;  %v338_v14 = vrot.slane %v336_v4, 5  ;;  %v344_v15 = vrot.slane %v342_v5, 5  ;;  %v311_v16 = vrot.slane %v309_v7, 4  ;;  %v2989_v17 = vld [vmem:[%s2963_s5 + $0x8] sm:$0x1] }
  0x20   : > { %v314_v18 = vrot.slane %v312_v8, 5  ;;  %v320_v19 = vrot.slane %v318_v9, 5  ;;  %v348_v20 = vrot.slane %v346_v11, 4  ;;  %v352_v21 = vshll.u32 %v2984_v10, 16  ;;  %v2993_v22 = vld [vmem:[%s2963_s5 + $0x28] sm:$0xf] }
  0x21   : > { %v339_v23 = vor.u32 %v338_v14, %v335_v13  ;;  %v324_v24 = vrot.slane %v322_v12, 4  ;;  %v328_v25 = vshll.u32 %v2989_v17, 16  ;;  %v390_v26 = vshll.u32 %v2993_v22, 16  ;;  %v3005_v31 = vld [vmem:[%s2963_s5 + $0x24] sm:$0xf]  ;;  %s2696_s30 = sshll.u32 %s2957_s27, 8 }
  0x22   : > { %v315_v28 = vor.u32 %v314_v18, %v311_v16  ;;  %v349_v29 = vor.u32 %v348_v20, %v344_v15  ;;  %v394_v30 = vshrl.u32 %v2993_v22, 16  ;;  %v354_v35 = vrot.slane %v352_v21, 5  ;;  %v3008_v37 = vld [vmem:[%s2963_s5 + $0x18] sm:$0xf]  ;;  %v3019_v42 = vld [vmem:[%s2963_s5 + $0x1c] sm:$0xf] }
  0x23   : > { %v340_v32 = vrot.slane %v339_v23, 4  ;;  %v325_v33 = vor.u32 %v324_v24, %v320_v19  ;;  %v330_v36 = vrot.slane %v328_v25, 5  ;;  %v3014_v39 = vrot.slane %v390_v26, 5  ;;  %v3026_v46 = vld [vmem:[%s2963_s5 + $0x2c] sm:$0x1]  ;;  %s4595_s27 = sand.u32 1, %s2864_s16  }
  0x24   : > { %v316_v34 = vrot.slane %v315_v28, 4  ;;  %v381_v40 = vshrl.u32 %v3005_v31, 16  ;;  %v384_v41 = vshll.u32 %v3005_v31, 16  ;;  %v350_v44 = vrot.slane %v349_v29, 4  ;;  %v3033_v53 = vld [vmem:[%s2963_s5 + $0x3c] sm:$0xf] }
  0x25   : > { %v3012_v38 = vsel %vm2999_vm2, %v340_v32, %v344_v15  ;;  %v326_v45 = vrot.slane %v325_v33, 4  ;;  %v396_v47 = vrot.slane %v394_v30, 4  ;;  %v357_v50 = vshrl.u32 %v3008_v37, 16  ;;  %4787 = vst [vmem:[#allocation11_spill] sm:$0xff] %v3033_v53  ;;  %v3037_v56 = vld [vmem:[%s2963_s5 + $0x34] sm:$0xf] }
  0x26   : > { %4786 = vst [vmem:[#allocation10_spill] sm:$0xff] %v3012_v38  ;;  %696 = vrot.lane.b32.xlu1 %v3012_v38, %s2874_s6  ;;  %v321_v43 = vsel %vm2999_vm2, %v316_v34, %v320_v19  ;;  %v383_v48 = vrot.slane %v381_v40, 4  ;;  %v386_v49 = vrot.slane %v384_v41, 5  ;;  %v360_v51 = vshll.u32 %v3008_v37, 16  ;;  %v3049_v4 = vld [vmem:[%s2963_s5 + $0x20] sm:$0x1] }
  0x27   : > { %692 = vrot.lane.b32.xlu0 %v321_v43, %s2874_s6  ;;  %v366_v52 = vshll.u32 %v3019_v42, 16  ;;  %v400_v54 = vshll.u32 %v3026_v46, 16  ;;  %v359_v55 = vrot.slane %v357_v50, 4  ;;  %v3041_v57 = vsel %vm2999_vm2, %v350_v44, %v354_v35  ;;  %v3058_v16 = vld [vmem:[%s2963_s5 + $0x4c] sm:$0xf]  ;;  %s200_s14 = scalar_lea.vmem [#allocation3], %s4595_s27 }
  0x28   : > { %4788 = vst [vmem:[#allocation12_spill] sm:$0xff] %v3041_v57  ;;  %v331_v58 = vsel %vm2999_vm2, %v326_v45, %v330_v36  ;;  %v397_v59 = vor.u32 %v396_v47, %v3014_v39  ;;  %v362_v60 = vrot.slane %v360_v51, 5  ;;  %v387_v61 = vor.u32 %v386_v49, %v383_v48  ;;  %v3062_v19 = vld [vmem:[%s2963_s5 + $0x40] sm:$0xf]  ;;  %v3069_v24 = vld [vmem:[%s2963_s5 + $0x38] sm:$0x1] }
  0x29   : > { %v368_v62 = vrot.slane %v366_v52, 5  ;;  %v429_v63 = vshrl.u32 %v3033_v53, 16  ;;  %v432_v3 = vshll.u32 %v3033_v53, 16  ;;  %v414_v7 = vshll.u32 %v3037_v56, 16  ;;  %4789 = vst [vmem:[#allocation13_spill] sm:$0xff] %v3062_v19  ;;  %s4606_s20 = sshll.u32 %s200_s14, 4  ;;  %s2459_s20 = int_to_ptr.vmem [resolvable:$true] %s4606_s20 }
  0x2a   : > { %v363_v5 = vor.u32 %v362_v60, %v359_v55  ;;  %v418_v8 = vshrl.u32 %v3037_v56, 16  ;;  %v370_v9 = vshrl.u32 %v3019_v42, 16  ;;  %v402_v11 = vrot.slane %v400_v54, 5  ;;  %v3072_v29 = vld [vmem:[%s2963_s5 + $0x30] sm:$0xf]  ;;  %s206_s23 = scalar_lea.vmem [#allocation5], %s4595_s27 }
  0x2b   : > { %v398_v12 = vrot.slane %v397_v59, 4  ;;  %v376_v15 = vshll.u32 %v3049_v4, 16  ;;  %v388_v18 = vrot.slane %v387_v61, 4  ;;  %v431_v20 = vrot.slane %v429_v63, 4  ;;  %v3079_v33 = vld [vmem:[%s2963_s5 + $0x48] sm:$0xf] }
  0x2c   : > { %v364_v13 = vrot.slane %v363_v5, 4  ;;  %v372_v14 = vrot.slane %v370_v9, 4  ;;  %v434_v21 = vrot.slane %v432_v3, 5  ;;  %v416_v25 = vrot.slane %v414_v7, 5  ;;  %v3108_v7 = vld [vmem:[%s2963_s5 + $0x60] sm:$0xf] }
  0x2d   : > { %v420_v26 = vrot.slane %v418_v8, 4  ;;  %v462_v30 = vshll.u32 %v3058_v16, 16  ;;  %v466_v32 = vshrl.u32 %v3058_v16, 16  ;;  %v3083_v34 = vsel %vm2999_vm2, %v398_v12, %v402_v11  ;;  %4795 = vst [vmem:[#allocation19_spill] sm:$0xff] %v3108_v7  ;;  %v3114_v11 = vld [vmem:[%s2963_s5 + $0x58] sm:$0xf] }
  0x2e   : > { %698 = vrot.lane.b32.xlu1 %v3041_v57, %s2874_s6  ;;  %v3066_v23 = vsel %vm2999_vm2, %v364_v13, %v368_v62  ;;  %v373_v28 = vor.u32 %v372_v14, %v368_v62  ;;  %4791 = vst [vmem:[#allocation15_spill] sm:$0xff] %v3083_v34  ;;  %v438_v35 = vshll.u32 %v3062_v19, 16  ;;  %v378_v40 = vrot.slane %v376_v15, 5  ;;  %v3118_v14 = vld [vmem:[%s2963_s5 + $0x44] sm:$0x1]  ;;  %s4611_s28 = sshll.u32 %s206_s23, 4  ;;  %s2472_s28 = int_to_ptr.vmem [resolvable:$true] %s4611_s28 }
  0x2f   : > { %694 = vrot.lane.b32.xlu0 %v331_v58, %s2874_s6  ;;  %4790 = vst [vmem:[#allocation14_spill] sm:$0xff] %v3066_v23  ;;  %700 = vrot.lane.b32.xlu2 %v3066_v23, %s2874_s6  ;;  %v435_v41 = vor.u32 %v434_v21, %v431_v20  ;;  %v424_v43 = vshll.u32 %v3069_v24, 16  ;;  %v405_v44 = vshrl.u32 %v3072_v29, 16  ;;  %v408_v45 = vshll.u32 %v3072_v29, 16  ;;  %v3265_v38 = vld [vmem:[%s2963_s5 + $0xa8] sm:$0xf] }
  0x30   : > { %v374_v36 = vrot.slane %v373_v28, 4  ;;  %v3092_v47 = vsel %vm2999_vm2, %v388_v18, %v3014_v39  ;;  %v421_v48 = vor.u32 %v420_v26, %v416_v25  ;;  %v453_v49 = vshrl.u32 %v3079_v33, 16  ;;  %v3103_v39 = vld [vmem:[%s2963_s5 + $0x50] sm:$0x1]  ;;  %v3127_v26 = vld [vmem:[%s2963_s5 + $0x54] sm:$0xf] }
  0x31   : > { %4792 = vst [vmem:[#allocation16_spill] sm:$0xff] %v3092_v47  ;;  %v456_v50 = vshll.u32 %v3079_v33, 16  ;;  %v464_v51 = vrot.slane %v462_v30, 5  ;;  %v468_v52 = vrot.slane %v466_v32, 4  ;;  %v407_v54 = vrot.slane %v405_v44, 4 }
  0x32   : > { %v410_v55 = vrot.slane %v408_v45, 5  ;;  %v3100_v58 = vsel %vm2999_vm2, %v374_v36, %v378_v40  ;;  %4794 = vst [vmem:[#allocation18_spill] sm:$0xff] %v3103_v39  ;;  %v436_v59 = vrot.slane %v435_v41, 4  ;;  %v440_v60 = vrot.slane %v438_v35, 5 }
  0x33   : > { %4793 = vst [vmem:[#allocation17_spill] sm:$0xff] %v3100_v58  ;;  %v422_v62 = vrot.slane %v421_v48, 4  ;;  %v426_v63 = vrot.slane %v424_v43, 5  ;;  %v455_v3 = vrot.slane %v453_v49, 4  ;;  %v458_v5 = vrot.slane %v456_v50, 5 }
  0x34   : > { %v411_v61 = vor.u32 %v410_v55, %v407_v54  ;;  %v469_v8 = vor.u32 %v468_v52, %v464_v51  ;;  %v472_v9 = vshll.u32 %v3103_v39, 16  ;;  %v442_v12 = vshrl.u32 %v3062_v19, 16  ;;  %v3142_v43 = vld [vmem:[%s2963_s5 + $0x64] sm:$0xf]  ;;  %v3149_v52 = vld [vmem:[%s2963_s5 + $0x5c] sm:$0x1] }
  0x35   : > { %v3122_v15 = vsel %vm2999_vm2, %v436_v59, %v440_v60  ;;  %v501_v18 = vshrl.u32 %v3108_v7, 16  ;;  %v504_v20 = vshll.u32 %v3108_v7, 16  ;;  %v3131_v28 = vsel %vm2999_vm2, %v422_v62, %v426_v63  ;;  %4799 = vst [vmem:[#allocation23_spill] sm:$0xff] %v3142_v43  ;;  %v3163_v63 = vld [vmem:[%s2963_s5 + $0x6c] sm:$0xf] }
  0x36   : > { %706 = vrot.lane.b32.xlu1 %v3083_v34, %s2874_s6  ;;  %v412_v13 = vrot.slane %v411_v61, 4  ;;  %4796 = vst [vmem:[#allocation20_spill] sm:$0xff] %v3122_v15  ;;  %v444_v21 = vrot.slane %v442_v12, 4  ;;  %v459_v30 = vor.u32 %v458_v5, %v455_v3  ;;  %v486_v32 = vshll.u32 %v3114_v11, 16  ;;  %v3153_v61 = vld [vmem:[%s2963_s5 + $0x70] sm:$0xf] }
  0x37   : > { %704 = vrot.lane.b32.xlu0 %v3092_v47, %s2874_s6  ;;  %702 = vrot.lane.b32.xlu2 %v3100_v58, %s2874_s6  ;;  %4797 = vst [vmem:[#allocation21_spill] sm:$0xff] %v3131_v28  ;;  %v490_v35 = vshrl.u32 %v3114_v11, 16  ;;  %v470_v36 = vrot.slane %v469_v8, 4  ;;  %v474_v40 = vrot.slane %v472_v9, 5  ;;  %v448_v45 = vshll.u32 %v3118_v14, 16 }
  0x38   : > { %v3139_v41 = vsel %vm2999_vm2, %v412_v13, %v416_v25  ;;  %v445_v44 = vor.u32 %v444_v21, %v440_v60  ;;  %v477_v48 = vshrl.u32 %v3127_v26, 16  ;;  %v503_v49 = vrot.slane %v501_v18, 4  ;;  %4800 = vst [vmem:[#allocation24_spill] sm:$0xff] %v3149_v52  ;;  %v3228_v34 = vld [vmem:[%s2963_s5 + $0x88] sm:$0xf] }
  0x39   : > { %4798 = vst [vmem:[#allocation22_spill] sm:$0xff] %v3139_v41  ;;  %v506_v50 = vrot.slane %v504_v20, 5  ;;  %v480_v54 = vshll.u32 %v3127_v26, 16  ;;  %v460_v55 = vrot.slane %v459_v30, 4  ;;  %v488_v25 = vrot.slane %v486_v32, 5 }
  0x3a   : > { %v492_v59 = vrot.slane %v490_v35, 4  ;;  %4801 = vst [vmem:[#allocation25_spill] sm:$0xff] %v3153_v61  ;;  %v3157_v60 = vsel %vm2999_vm2, %v470_v36, %v474_v40  ;;  %v510_v62 = vshll.u32 %v3142_v43, 16  ;;  %v446_v3 = vrot.slane %v445_v44, 4  ;;  %v3238_v58 = vld [vmem:[%s2963_s5 + $0x90] sm:$0xf] }
  0x3b   : > { %4802 = vst [vmem:[#allocation26_spill] sm:$0xff] %v3157_v60  ;;  %v450_v5 = vrot.slane %v448_v45, 5  ;;  %v479_v8 = vrot.slane %v477_v48, 4  ;;  %v482_v9 = vrot.slane %v480_v54, 5  ;;  %v507_v12 = vor.u32 %v506_v50, %v503_v49  ;;  %v3184_v48 = vld [vmem:[%s2963_s5 + $0x74] sm:$0x1] }
  0x3c   : > { %4803 = vst [vmem:[#allocation27_spill] sm:$0xff] %v3163_v63  ;;  %v496_v13 = vshll.u32 %v3149_v52, 16  ;;  %v534_v18 = vshll.u32 %v3153_v61, 16  ;;  %v538_v20 = vshrl.u32 %v3153_v61, 16  ;;  %v3170_v21 = vsel %vm2999_vm2, %v460_v55, %v464_v51  ;;  %v3340_v39 = vld [vmem:[%s2963_s5 + $0xbc] sm:$0x1] }
  0x3d   : > { %4804 = vst [vmem:[#allocation28_spill] sm:$0xff] %v3170_v21  ;;  %v493_v30 = vor.u32 %v492_v59, %v488_v25  ;;  %v525_v32 = vshrl.u32 %v3163_v63, 16  ;;  %v528_v35 = vshll.u32 %v3163_v63, 16  ;;  %v3178_v36 = vsel %vm2999_vm2, %v446_v3, %v450_v5  ;;  %v3187_v3 = vld [vmem:[%s2963_s5 + $0x84] sm:$0xf] }
  0x3e   : > { %712 = vrot.lane.b32.xlu1 %v3122_v15, %s2874_s6  ;;  %4805 = vst [vmem:[#allocation29_spill] sm:$0xff] %v3178_v36  ;;  %v483_v40 = vor.u32 %v482_v9, %v479_v8  ;;  %v514_v44 = vshrl.u32 %v3142_v43, 16  ;;  %v508_v51 = vrot.slane %v507_v12, 4  ;;  %v512_v45 = vrot.slane %v510_v62, 5  ;;  %v3192_v5 = vld [vmem:[%s2963_s5 + $0x7c] sm:$0xf] }
  0x3f   : > { %710 = vrot.lane.b32.xlu0 %v3131_v28, %s2874_s6  ;;  %708 = vrot.lane.b32.xlu2 %v3139_v41, %s2874_s6  ;;  %4806 = vst [vmem:[#allocation30_spill] sm:$0xff] %v3184_v48  ;;  %v536_v49 = vrot.slane %v534_v18, 5  ;;  %v540_v50 = vrot.slane %v538_v20, 4  ;;  %v494_v54 = vrot.slane %v493_v30, 4  ;;  %v498_v55 = vrot.slane %v496_v13, 5 }
  0x40   : > { %v527_v59 = vrot.slane %v525_v32, 4  ;;  %v544_v8 = vshll.u32 %v3184_v48, 16  ;;  %v484_v9 = vrot.slane %v483_v40, 4  ;;  %v3196_v62 = vld [vmem:[%s2963_s5 + $0x68] sm:$0x1]  ;;  %v516_v12 = vrot.slane %v514_v44, 4 }
  0x41   : > { %4807 = vst [vmem:[#allocation31_spill] sm:$0xff] %v3196_v62  ;;  %v3200_v18 = vsel %vm2999_vm2, %v508_v51, %v512_v45  ;;  %v541_v13 = vor.u32 %v540_v50, %v536_v49  ;;  %v573_v20 = vshrl.u32 %v3187_v3, 16  ;;  %v576_v30 = vshll.u32 %v3187_v3, 16  ;;  %v3205_v32 = vld [vmem:[%s2963_s5 + $0x78] sm:$0xf] }
  0x42   : > { %4808 = vst [vmem:[#allocation32_spill] sm:$0xff] %v3200_v18  ;;  %v558_v15 = vshll.u32 %v3192_v5, 16  ;;  %v562_v44 = vshrl.u32 %v3192_v5, 16  ;;  %v520_v51 = vshll.u32 %v3196_v62, 16  ;;  %v3218_v50 = vsel %vm2999_vm2, %v484_v9, %v488_v25  ;;  %v3231_v25 = vld [vmem:[%s2963_s5 + $0x80] sm:$0x1] }
  0x43   : > { %4810 = vst [vmem:[#allocation34_spill] sm:$0xff] %v3218_v50  ;;  %v578_v41 = vrot.slane %v576_v30, 5 }
  0x44   : > { %4812 = vst [vmem:[#allocation36_spill] sm:$0xff] %v3231_v25  ;;  %v564_v9 = vrot.slane %v562_v44, 4  ;;  %v568_v44 = vshll.u32 %v3231_v25, 16  ;;  %v3306_v25 = vld [vmem:[%s2963_s5 + $0xa4] sm:$0x1] }
  0x45   : > { %4813 = vst [vmem:[#allocation37_spill] sm:$0xff] %v3238_v58 }
  0x46   : > { %718 = vrot.lane.b32.xlu1 %v3157_v60, %s2874_s6  ;;  %v530_v60 = vrot.slane %v528_v35, 5  ;;  %v3209_v35 = vsel %vm2999_vm2, %v494_v54, %v498_v55  ;;  %v552_v54 = vshll.u32 %v3205_v32, 16  ;;  %v542_v55 = vrot.slane %v541_v13, 4  ;;  %4824 = vst [vmem:[#allocation48_spill] sm:$0xff] %v3306_v25 }
  0x47   : > { %716 = vrot.lane.b32.xlu0 %v3170_v21, %s2874_s6  ;;  %714 = vrot.lane.b32.xlu2 %v3178_v36, %s2874_s6  ;;  %4809 = vst [vmem:[#allocation33_spill] sm:$0xff] %v3209_v35  ;;  %v517_v36 = vor.u32 %v516_v12, %v512_v45  ;;  %v3221_v21 = vld [vmem:[%s2963_s5 + $0x94] sm:$0xf]  ;;  %v560_v45 = vrot.slane %v558_v15, 5 }
  0x48   : > { %v531_v40 = vor.u32 %v530_v60, %v527_v59  ;;  %4811 = vst [vmem:[#allocation35_spill] sm:$0xff] %v3221_v21  ;;  %v549_v60 = vshrl.u32 %v3205_v32, 16  ;;  %v546_v59 = vrot.slane %v544_v8, 5  ;;  %v606_v12 = vshll.u32 %v3221_v21, 16 }
  0x49   : > { %v610_v23 = vshrl.u32 %v3221_v21, 16  ;;  %v518_v13 = vrot.slane %v517_v36, 4  ;;  %v522_v8 = vrot.slane %v520_v51, 5  ;;  %v565_v47 = vor.u32 %v564_v9, %v560_v45  ;;  %277 = vst.msk [vmem:[#allocation2 + $0x10] sm:$0xf] %vm272_vm5, %v3008_v37 }
  0x4a   : > { %v532_v28 = vrot.slane %v531_v40, 4  ;;  %v3242_v30 = vsel %vm2999_vm2, %v542_v55, %v546_v59  ;;  %v582_v40 = vshll.u32 %v3228_v34, 16  ;;  %v597_v36 = vshrl.u32 %v3238_v58, 16  ;;  %273 = vst.msk [vmem:[#allocation2] sm:$0xf] %vm272_vm5, %v2972_v2 }
  0x4b   : > { %4814 = vst [vmem:[#allocation38_spill] sm:$0xff] %v3242_v30  ;;  %v600_v51 = vshll.u32 %v3238_v58, 16  ;;  %v570_v9 = vrot.slane %v568_v44, 5  ;;  %v648_v44 = vshll.u32 %v3265_v38, 16 }
  0x4c   : > { %v584_v59 = vrot.slane %v582_v40, 5  ;;  %v645_v40 = vshrl.u32 %v3265_v38, 16  ;;  %274 = vst.msk [vmem:[#allocation2 + $0x4] sm:$0xf] %vm272_vm5, %v2978_v6 }
  0x4d   : > { %275 = vst.msk [vmem:[#allocation2 + $0x8] sm:$0xf] %vm272_vm5, %v2966_v0 }
  0x4e   : > { %724 = vrot.lane.b32.xlu1 %v3200_v18, %s2874_s6  ;;  %v575_v18 = vrot.slane %v573_v20, 4  ;;  %v554_v20 = vrot.slane %v552_v54, 5  ;;  %v612_v54 = vrot.slane %v610_v23, 4  ;;  %v566_v23 = vrot.slane %v565_v47, 4  ;;  %276 = vst.msk [vmem:[#allocation2 + $0xc] sm:$0xf] %vm272_vm5, %v2969_v1 }
  0x4f   : > { %722 = vrot.lane.b32.xlu0 %v3209_v35, %s2874_s6  ;;  %720 = vrot.lane.b32.xlu2 %v3218_v50, %s2874_s6  ;;  %v551_v35 = vrot.slane %v549_v60, 4  ;;  %v3248_v50 = vsel %vm2999_vm2, %v532_v28, %v536_v49  ;;  %v608_v60 = vrot.slane %v606_v12, 5  ;;  %v586_v49 = vshrl.u32 %v3228_v34, 16  ;;  %278 = vst.msk [vmem:[#allocation2 + $0x14] sm:$0xf] %vm272_vm5, %v3019_v42 }
  0x50   : > { %v579_v15 = vor.u32 %v578_v41, %v575_v18  ;;  %4815 = vst [vmem:[#allocation39_spill] sm:$0xff] %v3248_v50  ;;  %v3256_v41 = vsel %vm2999_vm2, %v518_v13, %v522_v8  ;;  %v3259_v18 = vld [vmem:[%s2963_s5 + $0x98] sm:$0x1]  ;;  %v599_v12 = vrot.slane %v597_v36, 4  ;;  %v3271_v8 = vld [vmem:[%s2963_s5 + $0xa0] sm:$0xf] }
  0x51   : > { %4816 = vst [vmem:[#allocation40_spill] sm:$0xff] %v3256_v41  ;;  %v555_v28 = vor.u32 %v554_v20, %v551_v35  ;;  %v613_v13 = vor.u32 %v612_v54, %v608_v60  ;;  %v616_v35 = vshll.u32 %v3259_v18, 16  ;;  %v3283_v36 = vld [vmem:[%s2963_s5 + $0x9c] sm:$0xf] }
  0x52   : > { %4817 = vst [vmem:[#allocation41_spill] sm:$0xff] %v3259_v18  ;;  %v580_v55 = vrot.slane %v579_v15, 4  ;;  %v588_v15 = vrot.slane %v586_v49, 4  ;;  %v634_v49 = vshrl.u32 %v3271_v8, 16 }
  0x53   : > { %4818 = vst [vmem:[#allocation42_spill] sm:$0xff] %v3271_v8  ;;  %v556_v20 = vrot.slane %v555_v28, 4  ;;  %v630_v28 = vshll.u32 %v3271_v8, 16 }
  0x54   : > { %v3278_v47 = vsel %vm2999_vm2, %v580_v55, %v584_v59  ;;  %4821 = vst [vmem:[#allocation45_spill] sm:$0xff] %v3283_v36  ;;  %v618_v55 = vrot.slane %v616_v35, 5  ;;  %v650_v35 = vrot.slane %v648_v44, 5  ;;  %v636_v48 = vrot.slane %v634_v49, 4 }
  0x55   : > { %4820 = vst [vmem:[#allocation44_spill] sm:$0xff] %v3278_v47  ;;  %v3296_v18 = vsel %vm2999_vm2, %v556_v20, %v560_v45  ;;  %v3309_v45 = vld [vmem:[%s2963_s5 + $0xb8] sm:$0xf] }
  0x56   : > { %730 = vrot.lane.b32.xlu1 %v3242_v30, %s2874_s6  ;;  %v602_v30 = vrot.slane %v600_v51, 5  ;;  %v3287_v51 = vsel %vm2999_vm2, %v566_v23, %v570_v9  ;;  %4823 = vst [vmem:[#allocation47_spill] sm:$0xff] %v3296_v18  ;;  %v3299_v23 = vld [vmem:[%s2963_s5 + $0xac] sm:$0xf]  ;;  %v621_v9 = vshrl.u32 %v3283_v36, 16  ;;  %v678_v49 = vshll.u32 %v3309_v45, 16 }
  0x57   : > { %728 = vrot.lane.b32.xlu0 %v3248_v50, %s2874_s6  ;;  %726 = vrot.lane.b32.xlu2 %v3256_v41, %s2874_s6  ;;  %v3274_v50 = vld [vmem:[%s2963_s5 + $0x8c] sm:$0x1]  ;;  %4822 = vst [vmem:[#allocation46_spill] sm:$0xff] %v3287_v51  ;;  %v614_v41 = vrot.slane %v613_v13, 4  ;;  %v647_v13 = vrot.slane %v645_v40, 4  ;;  %v682_v62 = vshrl.u32 %v3309_v45, 16 }
  0x58   : > { %4819 = vst [vmem:[#allocation43_spill] sm:$0xff] %v3274_v50  ;;  %v603_v54 = vor.u32 %v602_v30, %v599_v12  ;;  %v592_v57 = vshll.u32 %v3274_v50, 16  ;;  %v589_v30 = vor.u32 %v588_v15, %v584_v59  ;;  %v624_v12 = vshll.u32 %v3283_v36, 16  ;;  %v3319_v15 = vld [vmem:[%s2963_s5 + $0xb4] sm:$0xf] }
  0x59   : > { %v632_v50 = vrot.slane %v630_v28, 5  ;;  %4825 = vst [vmem:[#allocation49_spill] sm:$0xff] %v3309_v45  ;;  %v3313_v20 = vsel %vm2999_vm2, %v614_v41, %v618_v55  ;;  %v654_v59 = vshll.u32 %v3299_v23, 16  ;;  %v640_v28 = vshll.u32 %v3306_v25, 16 }
  0x5a   : > { %4826 = vst [vmem:[#allocation50_spill] sm:$0xff] %v3313_v20  ;;  %v590_v40 = vrot.slane %v589_v30, 4  ;;  %v594_v44 = vrot.slane %v592_v57, 5  ;;  %v626_v52 = vrot.slane %v624_v12, 5  ;;  %v672_v30 = vshll.u32 %v3319_v15, 16 }
  0x5b   : > { %4827 = vst [vmem:[#allocation51_spill] sm:$0xff] %v3319_v15  ;;  %v637_v55 = vor.u32 %v636_v48, %v632_v50  ;;  %v658_v12 = vshrl.u32 %v3299_v23, 16  ;;  %v656_v48 = vrot.slane %v654_v59, 5  ;;  %v642_v25 = vrot.slane %v640_v28, 5 }
  0x5c   : > { %v3334_v57 = vsel %vm2999_vm2, %v590_v40, %v594_v44  ;;  %v674_v45 = vrot.slane %v672_v30, 5  ;;  %v688_v59 = vshll.u32 %v3340_v39, 16  ;;  %279 = vst.msk [vmem:[#allocation2 + $0x18] sm:$0xf] %vm272_vm5, %v3005_v31 }
  0x5d   : > { %280 = vst.msk [vmem:[#allocation2 + $0x1c] sm:$0xf] %vm272_vm5, %v2993_v22 }
  0x5e   : > { %736 = vrot.lane.b32.xlu1 %v3278_v47, %s2874_s6  ;;  %v604_v47 = vrot.slane %v603_v54, 4  ;;  %v651_v54 = vor.u32 %v650_v35, %v647_v13  ;;  %v684_v13 = vrot.slane %v682_v62, 4  ;;  %v638_v35 = vrot.slane %v637_v55, 4  ;;  %281 = vst.msk [vmem:[#allocation2 + $0x20] sm:$0xf] %vm272_vm5, %v3072_v29 }
  0x5f   : > { %734 = vrot.lane.b32.xlu0 %v3287_v51, %s2874_s6  ;;  %732 = vrot.lane.b32.xlu2 %v3296_v18, %s2874_s6  ;;  %v623_v51 = vrot.slane %v621_v9, 4  ;;  %v669_v18 = vshrl.u32 %v3319_v15, 16  ;;  %282 = vst.msk [vmem:[#allocation2 + $0x24] sm:$0xf] %vm272_vm5, %v3037_v56 }
  0x60   : > { %v3326_v41 = vsel %vm2999_vm2, %v604_v47, %v608_v60  ;;  %v652_v60 = vrot.slane %v651_v54, 4  ;;  %v680_v47 = vrot.slane %v678_v49, 5  ;;  %v3350_v54 = vld [vmem:[%s2963_s5 + $0xb0] sm:$0x1]  ;;  %v3354_v62 = vsel %vm2999_vm2, %v638_v35, %v642_v25  ;;  %283 = vst.msk [vmem:[#allocation2 + $0x28] sm:$0xf] %vm272_vm5, %v3033_v53 }
  0x61   : > { %4828 = vst [vmem:[#allocation52_spill] sm:$0xff] %v3326_v41  ;;  %v627_v9 = vor.u32 %v626_v52, %v623_v51  ;;  %v660_v51 = vrot.slane %v658_v12, 4  ;;  %v664_v55 = vshll.u32 %v3350_v54, 16  ;;  %v881_v35 = vrot.slane %v2969_v1, 5 }
  0x62   : > { %v3346_v40 = vsel %vm2999_vm2, %v652_v60, %v656_v48  ;;  %v685_v44 = vor.u32 %v684_v13, %v680_v47  ;;  %4829 = vst [vmem:[#allocation53_spill] sm:$0xff] %v3354_v62  ;;  %v874_v60 = vrot.slane %v2978_v6, 5  ;;  %v2589_v13 = vrot.slane %v2966_v0, 9 }
  0x63   : > { %v628_v52 = vrot.slane %v627_v9, 4  ;;  %v661_v49 = vor.u32 %v660_v51, %v656_v48  ;;  %v690_v9 = vrot.slane %v688_v59, 5  ;;  %v877_v51 = vrot.slane %v2989_v17, 5  ;;  %284 = vst.msk [vmem:[#allocation2 + $0x2c] sm:$0xf] %vm272_vm5, %v3062_v19 }
  0x64   : > { %v686_v30 = vrot.slane %v685_v44, 4  ;;  %v2588_v44 = vrot.slane %v2972_v2, 9  ;;  %v3402_v59 = vsel %vm3386_vm6, %v2589_v13, %v881_v35  ;;  %v888_v17 = vrot.slane %v3019_v42, 5  ;;  %285 = vst.msk [vmem:[#allocation2 + $0x30] sm:$0xf] %vm272_vm5, %v3079_v33 }
  0x65   : > { %v3360_v28 = vsel %vm2999_vm2, %v628_v52, %v632_v50  ;;  %v662_v25 = vrot.slane %v661_v49, 4  ;;  %v876_v52 = vrot.slane %v874_v60, 4  ;;  %v891_v49 = vrot.slane %v3049_v4, 5  ;;  %286 = vst.msk [vmem:[#allocation2 + $0x34] sm:$0xf] %vm272_vm5, %v3058_v16 }
  0x66   : > { %742 = vrot.lane.b32.xlu1 %v3313_v20, %s2874_s6  ;;  %v671_v20 = vrot.slane %v669_v18, 4  ;;  %4830 = vst [vmem:[#allocation54_spill] sm:$0xff] %v3360_v28  ;;  %v875_v2 = vsel %vm3386_vm6, %v2588_v44, %v874_v60  ;;  %v890_v6 = vrot.slane %v888_v17, 4  ;;  %v902_v60 = vrot.slane %v3037_v56, 5 }
  0x67   : > { %740 = vrot.lane.b32.xlu0 %v3326_v41, %s2874_s6  ;;  %738 = vrot.lane.b32.xlu2 %v3334_v57, %s2874_s6  ;;  %287 = vst.msk [vmem:[#allocation2 + $0x38] sm:$0xf] %vm272_vm5, %v3127_v26 }
  0x68   : > { %v675_v18 = vor.u32 %v674_v45, %v671_v20  ;;  %v666_v45 = vrot.slane %v664_v55, 5  ;;  %v3369_v20 = vsel %vm2999_vm2, %v686_v30, %v690_v9  ;;  %v2590_v55 = vrot.slane %v3008_v37, 9  ;;  %288 = vst.msk [vmem:[#allocation2 + $0x3c] sm:$0xf] %vm272_vm5, %v3114_v11 }
  0x69   : > { %v883_v30 = vrot.slane %v881_v35, 4  ;;  %v884_v9 = vrot.slane %v2984_v10, 5  ;;  %v3434_v4 = vsel %vm3386_vm6, %v890_v6, %v891_v49  ;;  %v898_v35 = vrot.slane %v3026_v46, 5  ;;  %289 = vst.msk [vmem:[#allocation2 + $0x40] sm:$0xf] %vm272_vm5, %v3108_v7 }
  0x6a   : > { %v676_v12 = vrot.slane %v675_v18, 4  ;;  %v3380_v48 = vsel %vm2999_vm2, %v662_v25, %v666_v45  ;;  %v878_v18 = vsel %vm3386_vm6, %v876_v52, %v877_v51  ;;  %v895_v25 = vrot.slane %v2993_v22, 5  ;;  %290 = vst.msk [vmem:[#allocation2 + $0x44] sm:$0xf] %vm272_vm5, %v3142_v43 }
  0x6b   : > { %v3451_v10 = vsel %vm3386_vm6, %v883_v30, %v884_v9  ;;  %v2592_v45 = vrot.slane %v3072_v29, 9  ;;  %291 = vst.msk [vmem:[#allocation2 + $0x48] sm:$0xf] %vm272_vm5, %v3163_v63  ;;  %v2591_v52 = vrot.slane %v3005_v31, 9  ;;  %v909_v46 = vrot.slane %v3062_v19, 5 }
  0x6c   : > { %v3373_v50 = vsel %vm2999_vm2, %v676_v12, %v680_v47  ;;  %v4831_v47 = vmov 0  ;;  %v3440_v12 = vsel %vm3386_vm6, %v2590_v55, %v888_v17  ;;  %v897_v13 = vrot.slane %v895_v25, 4  ;;  %292 = vst.msk [vmem:[#allocation2 + $0x4c] sm:$0xf] %vm272_vm5, %v3153_v61 }
  0x6d   : > { %v4832_v47 = vsel %vm3386_vm6, 4294967295, %v4831_v47  ;;  %v3473_v51 = vsel %vm3386_vm6, %v2592_v45, %v902_v60  ;;  %293 = vst.msk [vmem:[#allocation2 + $0x50] sm:$0xf] %vm272_vm5, %v3205_v32  ;;  %v912_v6 = vrot.slane %v3118_v14, 5  ;;  %v2593_v49 = vrot.slane %v3033_v53, 9 }
  0x6e   : > { %748 = vrot.lane.b32.xlu1 %v3346_v40, %s2874_s6  ;;  %4833 = vst [vmem:[#allocation55_spill] sm:$0xff] %v4832_v47  ;;  %v3480_v17 = vsel %vm3386_vm6, %v897_v13, %v898_v35  ;;  %v904_v55 = vrot.slane %v902_v60, 4  ;;  %v905_v14 = vrot.slane %v3069_v24, 5  ;;  %v916_v45 = vrot.slane %v3058_v16, 5  ;;  %v4837_v35 = vld [vmem:[#allocation49_spill] sm:$0xff]  ;;  %v4869_v47 = vld [vmem:[#allocation15_spill] sm:$0xff] }
  0x6f   : > { %746 = vrot.lane.b32.xlu0 %v3354_v62, %s2874_s6  ;;  %744 = vrot.lane.b32.xlu2 %v3360_v28, %s2874_s6  ;;  %4834 = vst [vmem:[#allocation56_spill] sm:$0xff] %v3473_v51  ;;  %v2595_v60 = vrot.slane %v3127_v26, 9  ;;  %v923_v13 = vrot.slane %v3114_v11, 5 }
  0x70   : > { %294 = vst.msk [vmem:[#allocation2 + $0x54] sm:$0xf] %vm272_vm5, %v3192_v5  ;;  %v3529_v24 = vsel %vm3386_vm6, %v904_v55, %v905_v14  ;;  %v930_v14 = vrot.slane %v3142_v43, 5 }
  0x71   : > { %295 = vst.msk [vmem:[#allocation2 + $0x58] sm:$0xf] %vm272_vm5, %v3187_v3  ;;  %v3547_v55 = vsel %vm3386_vm6, %v2595_v60, %v923_v13  ;;  %v4842_v60 = vld [vmem:[#allocation31_spill] sm:$0xff] }
  0x72   : > { %296 = vst.msk [vmem:[#allocation2 + $0x5c] sm:$0xf] %vm272_vm5, %v3228_v34 }
  0x73   : > { %297 = vst.msk [vmem:[#allocation2 + $0x60] sm:$0xf] %vm272_vm5, %v3238_v58 }
  0x74   : > { %298 = vst.msk [vmem:[#allocation2 + $0x64] sm:$0xf] %vm272_vm5, %v3221_v21 }
  0x75   : > { %299 = vst.msk [vmem:[#allocation2 + $0x68] sm:$0xf] %vm272_vm5, %v3283_v36 }
  0x76   : > { %754 = vrot.lane.b32.xlu1 %v3369_v20, %s2874_s6  ;;  %300 = vst.msk [vmem:[#allocation2 + $0x6c] sm:$0xf] %vm272_vm5, %v3271_v8 }
  0x77   : > { %752 = vrot.lane.b32.xlu0 %v3373_v50, %s2874_s6  ;;  %750 = vrot.lane.b32.xlu2 %v3380_v48, %s2874_s6  ;;  %301 = vst.msk [vmem:[#allocation2 + $0x70] sm:$0xf] %vm272_vm5, %v3265_v38 }
  0x78   : > { %302 = vst.msk [vmem:[#allocation2 + $0x74] sm:$0xf] %vm272_vm5, %v3299_v23 }
  0x79   : > { %4836 = vst [vmem:[#allocation58_spill] sm:$0xff] %v3529_v24 }
  0x7a   : > { %303 = vst.msk [vmem:[#allocation2 + $0x78] sm:$0xf] %vm272_vm5, %v3319_v15 }
  0x7b   : > { %304 = vst.msk [vmem:[#allocation2 + $0x7c] sm:$0xf] %vm272_vm5, %v4837_v35 }
  0x7e   : > { %988 = vrot.lane.b32.xlu1 %v3402_v59, %s2875_s7 }
  0x7f   : > { %986 = vrot.lane.b32.xlu0 %v878_v18, %s2875_s7  ;;  %984 = vrot.lane.b32.xlu2 %v875_v2, %s2875_s7  ;;  %v3491_v18 = vsel %vm3386_vm6, %v2591_v52, %v895_v25  ;;  %v911_v2 = vrot.slane %v909_v46, 4  ;;  %v3516_v25 = vsel %vm3386_vm6, %v2593_v49, %v909_v46  ;;  %v918_v46 = vrot.slane %v916_v45, 4 }
  0x80   : > { %v2594_v49 = vrot.slane %v3079_v33, 9 }
  0x81   : > { %v3510_v30 = vsel %vm3386_vm6, %v911_v2, %v912_v6 }
  0x82   : > { %4835 = vst [vmem:[#allocation57_spill] sm:$0xff] %v3510_v30 }
  0x86   : > { %994 = vrot.lane.b32.xlu1 %v3434_v4, %s2875_s7 }
  0x87   : > { %992 = vrot.lane.b32.xlu0 %v3440_v12, %s2875_s7  ;;  %990 = vrot.lane.b32.xlu2 %v3451_v10, %s2875_s7 }
  0x89   : > { %v701_v44 = vpop.permute.xlu2 %700 }
  0x8a   : > { %793 = vst.msk [vmem:[#allocation2 + $0x10] sm:$0xf] %vm788_vm7, %v701_v44  ;;  %v4838_v44 = vld [vmem:[#allocation18_spill] sm:$0xff] }
  0x8b   : > { %v919_v2 = vrot.slane %v4838_v44, 5  ;;  %4839 = vst [vmem:[#allocation18_spill] sm:$0xff] %v3547_v55  ;;  %v3560_v44 = vsel %vm3386_vm6, %v2594_v49, %v916_v45  ;;  %v4843_v45 = vld [vmem:[#allocation24_spill] sm:$0xff] }
  0x8c   : > { %4841 = vst [vmem:[#allocation60_spill] sm:$0xff] %v3560_v44 }
  0x8e   : > { %1000 = vrot.lane.b32.xlu1 %v3473_v51, %s2875_s7 }
  0x8f   : > { %998 = vrot.lane.b32.xlu0 %v3480_v17, %s2875_s7  ;;  %996 = vrot.lane.b32.xlu2 %v3491_v18, %s2875_s7 }
  0x91   : > { %v703_v9 = vpop.permute.xlu2 %702 }
  0x92   : > { %794 = vst.msk [vmem:[#allocation2 + $0x14] sm:$0xf] %vm788_vm7, %v703_v9  ;;  %v932_v9 = vrot.slane %v930_v14, 4 }
  0x96   : > { %1006 = vrot.lane.b32.xlu1 %v3510_v30, %s2875_s7 }
  0x97   : > { %1004 = vrot.lane.b32.xlu0 %v3516_v25, %s2875_s7  ;;  %1002 = vrot.lane.b32.xlu2 %v3529_v24, %s2875_s7  ;;  %v2596_v24 = vrot.slane %v3108_v7, 9 }
  0x98   : > { %v697_v52 = vpop.permute.xlu1 %696 }
  0x99   : > { %791 = vst.msk [vmem:[#allocation2 + $0x8] sm:$0xf] %vm788_vm7, %v697_v52  ;;  %v693_v6 = vpop.permute.xlu0 %692  ;;  %v709_v30 = vpop.permute.xlu2 %708  ;;  %v3553_v52 = vsel %vm3386_vm6, %v918_v46, %v919_v2  ;;  %v926_v2 = vrot.slane %v4843_v45, 5 }
  0x9a   : > { %789 = vst.msk [vmem:[#allocation2] sm:$0xf] %vm788_vm7, %v693_v6  ;;  %v933_v6 = vrot.slane %v4842_v60, 5  ;;  %v3577_v60 = vsel %vm3386_vm6, %v2596_v24, %v930_v14 }
  0x9b   : > { %4840 = vst [vmem:[#allocation59_spill] sm:$0xff] %v3553_v52 }
  0x9c   : > { %797 = vst.msk [vmem:[#allocation2 + $0x20] sm:$0xf] %vm788_vm7, %v709_v30  ;;  %v925_v30 = vrot.slane %v923_v13, 4  ;;  %v3573_v49 = vsel %vm3386_vm6, %v932_v9, %v933_v6  ;;  %v2598_v9 = vrot.slane %v3205_v32, 9  ;;  %v944_v6 = vrot.slane %v3192_v5, 5 }
  0x9d   : > { %4844 = vst [vmem:[#allocation31_spill] sm:$0xff] %v3573_v49 }
  0x9e   : > { %1012 = vrot.lane.b32.xlu1 %v3547_v55, %s2875_s7  ;;  %4845 = vst [vmem:[#allocation24_spill] sm:$0xff] %v3577_v60  ;;  %v3585_v13 = vsel %vm3386_vm6, %v925_v30, %v926_v2  ;;  %v2597_v30 = vrot.slane %v3163_v63, 9  ;;  %v3599_v2 = vsel %vm3386_vm6, %v2598_v9, %v944_v6 }
  0x9f   : > { %1010 = vrot.lane.b32.xlu0 %v3553_v52, %s2875_s7  ;;  %1008 = vrot.lane.b32.xlu2 %v3560_v44, %s2875_s7  ;;  %4846 = vst [vmem:[#allocation61_spill] sm:$0xff] %v3585_v13  ;;  %v2599_v52 = vrot.slane %v3187_v3, 9 }
  0xa0   : > { %v699_v51 = vpop.permute.xlu1 %698 }
  0xa1   : > { %792 = vst.msk [vmem:[#allocation2 + $0xc] sm:$0xf] %vm788_vm7, %v699_v51  ;;  %v695_v46 = vpop.permute.xlu0 %694  ;;  %v715_v55 = vpop.permute.xlu2 %714  ;;  %v937_v51 = vrot.slane %v3153_v61, 5 }
  0xa2   : > { %790 = vst.msk [vmem:[#allocation2 + $0x4] sm:$0xf] %vm788_vm7, %v695_v46  ;;  %v4847_v46 = vld [vmem:[#allocation30_spill] sm:$0xff] }
  0xa3   : > { %800 = vst.msk [vmem:[#allocation2 + $0x2c] sm:$0xf] %vm788_vm7, %v715_v55  ;;  %v939_v14 = vrot.slane %v937_v51, 4  ;;  %v940_v45 = vrot.slane %v4847_v46, 5 }
  0xa4   : > { %4848 = vst [vmem:[#allocation30_spill] sm:$0xff] %v3599_v2 }
  0xa5   : > { %v3604_v46 = vsel %vm3386_vm6, %v939_v14, %v940_v45 }
  0xa6   : > { %1018 = vrot.lane.b32.xlu1 %v3573_v49, %s2875_s7  ;;  %v951_v49 = vrot.slane %v3228_v34, 5  ;;  %4849 = vst [vmem:[#allocation62_spill] sm:$0xff] %v3604_v46 }
  0xa7   : > { %1016 = vrot.lane.b32.xlu0 %v3577_v60, %s2875_s7  ;;  %1014 = vrot.lane.b32.xlu2 %v3585_v13, %s2875_s7 }
  0xa8   : > { %v707_v24 = vpop.permute.xlu1 %706  ;;  %v953_v9 = vrot.slane %v951_v49, 4 }
  0xa9   : > { %796 = vst.msk [vmem:[#allocation2 + $0x1c] sm:$0xf] %vm788_vm7, %v707_v24  ;;  %v705_v55 = vpop.permute.xlu0 %704  ;;  %v721_v60 = vpop.permute.xlu2 %720  ;;  %v3611_v24 = vsel %vm3386_vm6, %v2597_v30, %v937_v51  ;;  %v4852_v51 = vld [vmem:[#allocation36_spill] sm:$0xff] }
  0xaa   : > { %795 = vst.msk [vmem:[#allocation2 + $0x18] sm:$0xf] %vm788_vm7, %v705_v55  ;;  %v4851_v55 = vld [vmem:[#allocation43_spill] sm:$0xff]  ;;  %v947_v45 = vrot.slane %v4852_v51, 5 }
  0xab   : > { %803 = vst.msk [vmem:[#allocation2 + $0x38] sm:$0xf] %vm788_vm7, %v721_v60  ;;  %v954_v13 = vrot.slane %v4851_v55, 5  ;;  %v946_v60 = vrot.slane %v944_v6, 4  ;;  %v3628_v55 = vsel %vm3386_vm6, %v2599_v52, %v951_v49 }
  0xac   : > { %4850 = vst [vmem:[#allocation63_spill] sm:$0xff] %v3611_v24 }
  0xad   : > { %v3624_v30 = vsel %vm3386_vm6, %v953_v9, %v954_v13  ;;  %4854 = vst [vmem:[#allocation36_spill] sm:$0xff] %v3628_v55  ;;  %v3636_v6 = vsel %vm3386_vm6, %v946_v60, %v947_v45  ;;  %v2601_v13 = vrot.slane %v3283_v36, 9  ;;  %v965_v9 = vrot.slane %v3271_v8, 5 }
  0xae   : > { %1024 = vrot.lane.b32.xlu1 %v3599_v2, %s2875_s7  ;;  %4853 = vst [vmem:[#allocation43_spill] sm:$0xff] %v3624_v30  ;;  %v2600_v60 = vrot.slane %v3238_v58, 9 }
  0xaf   : > { %1022 = vrot.lane.b32.xlu0 %v3604_v46, %s2875_s7  ;;  %1020 = vrot.lane.b32.xlu2 %v3611_v24, %s2875_s7  ;;  %4855 = vst [vmem:[#allocation64_spill] sm:$0xff] %v3636_v6  ;;  %v3650_v45 = vsel %vm3386_vm6, %v2601_v13, %v965_v9  ;;  %v2602_v24 = vrot.slane %v3265_v38, 9 }
  0xb0   : > { %v713_v44 = vpop.permute.xlu1 %712 }
  0xb1   : > { %799 = vst.msk [vmem:[#allocation2 + $0x28] sm:$0xf] %vm788_vm7, %v713_v44  ;;  %v711_v14 = vpop.permute.xlu0 %710  ;;  %v727_v2 = vpop.permute.xlu2 %726  ;;  %v958_v44 = vrot.slane %v3221_v21, 5 }
  0xb2   : > { %798 = vst.msk [vmem:[#allocation2 + $0x24] sm:$0xf] %vm788_vm7, %v711_v14  ;;  %v4856_v14 = vld [vmem:[#allocation41_spill] sm:$0xff] }
  0xb3   : > { %806 = vst.msk [vmem:[#allocation2 + $0x44] sm:$0xf] %vm788_vm7, %v727_v2  ;;  %v960_v49 = vrot.slane %v958_v44, 4  ;;  %v961_v51 = vrot.slane %v4856_v14, 5 }
  0xb4   : > { %4857 = vst [vmem:[#allocation41_spill] sm:$0xff] %v3650_v45 }
  0xb5   : > { %v3655_v14 = vsel %vm3386_vm6, %v960_v49, %v961_v51 }
  0xb6   : > { %1030 = vrot.lane.b32.xlu1 %v3624_v30, %s2875_s7  ;;  %v972_v30 = vrot.slane %v3299_v23, 5 }
  0xb7   : > { %1028 = vrot.lane.b32.xlu0 %v3628_v55, %s2875_s7  ;;  %1026 = vrot.lane.b32.xlu2 %v3636_v6, %s2875_s7 }
  0xb8   : > { %v719_v52 = vpop.permute.xlu1 %718  ;;  %v974_v13 = vrot.slane %v972_v30, 4 }
  0xb9   : > { %802 = vst.msk [vmem:[#allocation2 + $0x34] sm:$0xf] %vm788_vm7, %v719_v52  ;;  %v717_v2 = vpop.permute.xlu0 %716  ;;  %v733_v55 = vpop.permute.xlu2 %732  ;;  %v3662_v52 = vsel %vm3386_vm6, %v2600_v60, %v958_v44  ;;  %v4858_v44 = vld [vmem:[#allocation48_spill] sm:$0xff] }
  0xba   : > { %801 = vst.msk [vmem:[#allocation2 + $0x30] sm:$0xf] %vm788_vm7, %v717_v2  ;;  %v975_v2 = vrot.slane %v3350_v54, 5  ;;  %v968_v51 = vrot.slane %v4858_v44, 5  ;;  %v3679_v54 = vsel %vm3386_vm6, %v2602_v24, %v972_v30  ;;  %v2603_v30 = vrot.slane %v3319_v15, 9 }
  0xbb   : > { %809 = vst.msk [vmem:[#allocation2 + $0x50] sm:$0xf] %vm788_vm7, %v733_v55  ;;  %v967_v55 = vrot.slane %v965_v9, 4 }
  0xbc   : > { %v3675_v60 = vsel %vm3386_vm6, %v974_v13, %v975_v2 }
  0xbd   : > { %v3687_v9 = vsel %vm3386_vm6, %v967_v55, %v968_v51 }
  0xbe   : > { %1036 = vrot.lane.b32.xlu1 %v3650_v45, %s2875_s7 }
  0xbf   : > { %1034 = vrot.lane.b32.xlu0 %v3655_v14, %s2875_s7  ;;  %1032 = vrot.lane.b32.xlu2 %v3662_v52, %s2875_s7 }
  0xc0   : > { %v725_v6 = vpop.permute.xlu1 %724 }
  0xc1   : > { %805 = vst.msk [vmem:[#allocation2 + $0x40] sm:$0xf] %vm788_vm7, %v725_v6  ;;  %v723_v49 = vpop.permute.xlu0 %722  ;;  %v739_v45 = vpop.permute.xlu2 %738  ;;  %v979_v6 = vrot.slane %v4837_v35, 5 }
  0xc2   : > { %804 = vst.msk [vmem:[#allocation2 + $0x3c] sm:$0xf] %vm788_vm7, %v723_v49  ;;  %v982_v49 = vrot.slane %v3340_v39, 5 }
  0xc3   : > { %812 = vst.msk [vmem:[#allocation2 + $0x5c] sm:$0xf] %vm788_vm7, %v739_v45  ;;  %v981_v2 = vrot.slane %v979_v6, 4  ;;  %v3706_v39 = vsel %vm3386_vm6, %v2603_v30, %v979_v6 }
  0xc5   : > { %v3699_v55 = vsel %vm3386_vm6, %v981_v2, %v982_v49 }
  0xc6   : > { %1042 = vrot.lane.b32.xlu1 %v3675_v60, %s2875_s7  ;;  %4859 = vst [vmem:[#allocation48_spill] sm:$0xff] %v3699_v55 }
  0xc7   : > { %1040 = vrot.lane.b32.xlu0 %v3679_v54, %s2875_s7  ;;  %1038 = vrot.lane.b32.xlu2 %v3687_v9, %s2875_s7 }
  0xc8   : > { %v731_v13 = vpop.permute.xlu1 %730 }
  0xc9   : > { %808 = vst.msk [vmem:[#allocation2 + $0x4c] sm:$0xf] %vm788_vm7, %v731_v13  ;;  %v729_v24 = vpop.permute.xlu0 %728  ;;  %v745_v45 = vpop.permute.xlu2 %744 }
  0xca   : > { %807 = vst.msk [vmem:[#allocation2 + $0x48] sm:$0xf] %vm788_vm7, %v729_v24 }
  0xcb   : > { %815 = vst.msk [vmem:[#allocation2 + $0x68] sm:$0xf] %vm788_vm7, %v745_v45 }
  0xce   : > { %1115 = vrot.lane.b32.xlu1 %v2966_v0, %s2876_s8 }
  0xcf   : > { %1046 = vrot.lane.b32.xlu0 %v3699_v55, %s2875_s7  ;;  %1044 = vrot.lane.b32.xlu2 %v3706_v39, %s2875_s7  ;;  %s4342_s7 = scalar_lea.vmem %s4668_s2, %s2696_s30 }
  0xd0   : > { %v737_v44 = vpop.permute.xlu1 %736 }
  0xd1   : > { %811 = vst.msk [vmem:[#allocation2 + $0x58] sm:$0xf] %vm788_vm7, %v737_v44  ;;  %v735_v51 = vpop.permute.xlu0 %734  ;;  %v751_v13 = vpop.permute.xlu2 %750 }
  0xd2   : > { %810 = vst.msk [vmem:[#allocation2 + $0x54] sm:$0xf] %vm788_vm7, %v735_v51 }
  0xd3   : > { %818 = vst.msk [vmem:[#allocation2 + $0x74] sm:$0xf] %vm788_vm7, %v751_v13 }
  0xd6   : > { %1121 = vrot.lane.b32.xlu1 %v3019_v42, %s2876_s8 }
  0xd7   : > { %1119 = vrot.lane.b32.xlu0 %v3008_v37, %s2876_s8  ;;  %1117 = vrot.lane.b32.xlu2 %v2969_v1, %s2876_s8 }
  0xd8   : > { %v743_v0 = vpop.permute.xlu1 %742 }
  0xd9   : > { %814 = vst.msk [vmem:[#allocation2 + $0x64] sm:$0xf] %vm788_vm7, %v743_v0  ;;  %v741_v6 = vpop.permute.xlu0 %740  ;;  %v985_v2 = vpop.permute.xlu2 %984 }
  0xda   : > { %813 = vst.msk [vmem:[#allocation2 + $0x60] sm:$0xf] %vm788_vm7, %v741_v6 }
  0xdb   : > { %1081 = vst.msk [vmem:[#allocation2] sm:$0xf] %vm1080_vm8, %v985_v2 }
  0xde   : > { %1127 = vrot.lane.b32.xlu1 %v3072_v29, %s2876_s8 }
  0xdf   : > { %1125 = vrot.lane.b32.xlu0 %v2993_v22, %s2876_s8  ;;  %1123 = vrot.lane.b32.xlu2 %v3005_v31, %s2876_s8 }
  0xe0   : > { %v749_v49 = vpop.permute.xlu1 %748 }
  0xe1   : > { %817 = vst.msk [vmem:[#allocation2 + $0x70] sm:$0xf] %vm788_vm7, %v749_v49  ;;  %v747_v24 = vpop.permute.xlu0 %746  ;;  %v991_v1 = vpop.permute.xlu2 %990 }
  0xe2   : > { %816 = vst.msk [vmem:[#allocation2 + $0x6c] sm:$0xf] %vm788_vm7, %v747_v24 }
  0xe3   : > { %1084 = vst.msk [vmem:[#allocation2 + $0xc] sm:$0xf] %vm1080_vm8, %v991_v1 }
  0xe6   : > { %1133 = vrot.lane.b32.xlu1 %v3062_v19, %s2876_s8 }
  0xe7   : > { %1131 = vrot.lane.b32.xlu0 %v3033_v53, %s2876_s8  ;;  %1129 = vrot.lane.b32.xlu2 %v3037_v56, %s2876_s8 }
  0xe8   : > { %v755_v30 = vpop.permute.xlu1 %754 }
  0xe9   : > { %820 = vst.msk [vmem:[#allocation2 + $0x7c] sm:$0xf] %vm788_vm7, %v755_v30  ;;  %v753_v45 = vpop.permute.xlu0 %752  ;;  %v997_v44 = vpop.permute.xlu2 %996 }
  0xea   : > { %819 = vst.msk [vmem:[#allocation2 + $0x78] sm:$0xf] %vm788_vm7, %v753_v45 }
  0xeb   : > { %1087 = vst.msk [vmem:[#allocation2 + $0x18] sm:$0xf] %vm1080_vm8, %v997_v44 }
  0xee   : > { %1139 = vrot.lane.b32.xlu1 %v3127_v26, %s2876_s8 }
  0xef   : > { %1137 = vrot.lane.b32.xlu0 %v3058_v16, %s2876_s8  ;;  %1135 = vrot.lane.b32.xlu2 %v3079_v33, %s2876_s8 }
  0xf0   : > { %v989_v51 = vpop.permute.xlu1 %988 }
  0xf1   : > { %1083 = vst.msk [vmem:[#allocation2 + $0x8] sm:$0xf] %vm1080_vm8, %v989_v51  ;;  %v987_v13 = vpop.permute.xlu0 %986  ;;  %v1003_v0 = vpop.permute.xlu2 %1002 }
  0xf2   : > { %1082 = vst.msk [vmem:[#allocation2 + $0x4] sm:$0xf] %vm1080_vm8, %v987_v13 }
  0xf3   : > { %1090 = vst.msk [vmem:[#allocation2 + $0x24] sm:$0xf] %vm1080_vm8, %v1003_v0 }
  0xf6   : > { %1145 = vrot.lane.b32.xlu1 %v3142_v43, %s2876_s8 }
  0xf7   : > { %1143 = vrot.lane.b32.xlu0 %v3108_v7, %s2876_s8  ;;  %1141 = vrot.lane.b32.xlu2 %v3114_v11, %s2876_s8  ;;  %v3892_v7 = vld [vmem:[%s2963_s5 + $0xc8] sm:$0x1] }
  0xf8   : > { %v995_v6 = vpop.permute.xlu1 %994 }
  0xf9   : > { %1086 = vst.msk [vmem:[#allocation2 + $0x14] sm:$0xf] %vm1080_vm8, %v995_v6  ;;  %v993_v2 = vpop.permute.xlu0 %992  ;;  %v1009_v49 = vpop.permute.xlu2 %1008 }
  0xfa   : > { %1085 = vst.msk [vmem:[#allocation2 + $0x10] sm:$0xf] %vm1080_vm8, %v993_v2 }
  0xfb   : > { %1093 = vst.msk [vmem:[#allocation2 + $0x30] sm:$0xf] %vm1080_vm8, %v1009_v49 }
  0xfe   : > { %1151 = vrot.lane.b32.xlu1 %v3205_v32, %s2876_s8 }
  0xff   : > { %1149 = vrot.lane.b32.xlu0 %v3153_v61, %s2876_s8  ;;  %1147 = vrot.lane.b32.xlu2 %v3163_v63, %s2876_s8 }
 0x100   : > { %v1001_v24 = vpop.permute.xlu1 %1000 }
 0x101   : > { %1089 = vst.msk [vmem:[#allocation2 + $0x20] sm:$0xf] %vm1080_vm8, %v1001_v24  ;;  %v999_v1 = vpop.permute.xlu0 %998  ;;  %v1015_v30 = vpop.permute.xlu2 %1014  ;;  %v3796_v24 = vld [vmem:[%s2963_s5 + $0xc0] sm:$0xf] }
 0x102   : > { %1088 = vst.msk [vmem:[#allocation2 + $0x1c] sm:$0xf] %vm1080_vm8, %v999_v1 }
 0x103   : > { %1096 = vst.msk [vmem:[#allocation2 + $0x3c] sm:$0xf] %vm1080_vm8, %v1015_v30 }
 0x104   : > { %4860 = vst [vmem:[#allocation65_spill] sm:$0xff] %v3796_v24 }
 0x106   : > { %1157 = vrot.lane.b32.xlu1 %v3228_v34, %s2876_s8 }
 0x107   : > { %1155 = vrot.lane.b32.xlu0 %v3187_v3, %s2876_s8  ;;  %1153 = vrot.lane.b32.xlu2 %v3192_v5, %s2876_s8 }
 0x108   : > { %v1007_v45 = vpop.permute.xlu1 %1006 }
 0x109   : > { %1092 = vst.msk [vmem:[#allocation2 + $0x2c] sm:$0xf] %vm1080_vm8, %v1007_v45  ;;  %v1005_v44 = vpop.permute.xlu0 %1004  ;;  %v1021_v51 = vpop.permute.xlu2 %1020 }
 0x10a   : > { %1091 = vst.msk [vmem:[#allocation2 + $0x28] sm:$0xf] %vm1080_vm8, %v1005_v44 }
 0x10b   : > { %1099 = vst.msk [vmem:[#allocation2 + $0x48] sm:$0xf] %vm1080_vm8, %v1021_v51  ;;  %v4861_v51 = vld [vmem:[#allocation12_spill] sm:$0xff] }
 0x10e   : > { %1163 = vrot.lane.b32.xlu1 %v3283_v36, %s2876_s8 }
 0x10f   : > { %1161 = vrot.lane.b32.xlu0 %v3221_v21, %s2876_s8  ;;  %1159 = vrot.lane.b32.xlu2 %v3238_v58, %s2876_s8 }
 0x110   : > { %v1013_v13 = vpop.permute.xlu1 %1012 }
 0x111   : > { %1095 = vst.msk [vmem:[#allocation2 + $0x38] sm:$0xf] %vm1080_vm8, %v1013_v13  ;;  %v1011_v0 = vpop.permute.xlu0 %1010  ;;  %v1027_v6 = vpop.permute.xlu2 %1026  ;;  %v3811_v13 = vld [vmem:[%s2963_s5 + $0xc4] sm:$0xf] }
 0x112   : > { %1094 = vst.msk [vmem:[#allocation2 + $0x34] sm:$0xf] %vm1080_vm8, %v1011_v0  ;;  %v4863_v0 = vld [vmem:[#allocation10_spill] sm:$0xff] }
 0x113   : > { %1102 = vst.msk [vmem:[#allocation2 + $0x54] sm:$0xf] %vm1080_vm8, %v1027_v6 }
 0x114   : > { %4862 = vst [vmem:[#allocation12_spill] sm:$0xff] %v3811_v13 }
 0x115   : > { %4883 = vst [vmem:[#allocation10_spill] sm:$0xff] %v3892_v7 }
 0x116   : > { %1169 = vrot.lane.b32.xlu1 %v3299_v23, %s2876_s8 }
 0x117   : > { %1167 = vrot.lane.b32.xlu0 %v3265_v38, %s2876_s8  ;;  %1165 = vrot.lane.b32.xlu2 %v3271_v8, %s2876_s8 }
 0x118   : > { %v1019_v2 = vpop.permute.xlu1 %1018 }
 0x119   : > { %1098 = vst.msk [vmem:[#allocation2 + $0x44] sm:$0xf] %vm1080_vm8, %v1019_v2  ;;  %v1017_v49 = vpop.permute.xlu0 %1016  ;;  %v1033_v1 = vpop.permute.xlu2 %1032 }
 0x11a   : > { %1097 = vst.msk [vmem:[#allocation2 + $0x40] sm:$0xf] %vm1080_vm8, %v1017_v49 }
 0x11b   : > { %1105 = vst.msk [vmem:[#allocation2 + $0x60] sm:$0xf] %vm1080_vm8, %v1033_v1  ;;  %v4864_v1 = vld [vmem:[#allocation16_spill] sm:$0xff] }
 0x11e   : > { %1175 = vrot.lane.b32.xlu1 %v3796_v24, %s2876_s8 }
 0x11f   : > { %1173 = vrot.lane.b32.xlu0 %v4837_v35, %s2876_s8  ;;  %1171 = vrot.lane.b32.xlu2 %v3319_v15, %s2876_s8 }
 0x120   : > { %v1025_v30 = vpop.permute.xlu1 %1024 }
 0x121   : > { %1101 = vst.msk [vmem:[#allocation2 + $0x50] sm:$0xf] %vm1080_vm8, %v1025_v30  ;;  %v1023_v45 = vpop.permute.xlu0 %1022  ;;  %v1039_v44 = vpop.permute.xlu2 %1038  ;;  %v4865_v30 = vld [vmem:[#allocation17_spill] sm:$0xff] }
 0x122   : > { %1100 = vst.msk [vmem:[#allocation2 + $0x4c] sm:$0xf] %vm1080_vm8, %v1023_v45 }
 0x123   : > { %1108 = vst.msk [vmem:[#allocation2 + $0x6c] sm:$0xf] %vm1080_vm8, %v1039_v44 }
 0x126   : > { %1270 = vrot.lane.b32.xlu1 %v4861_v51, %s2877_s9  ;;  %v4866_v51 = vld [vmem:[#allocation14_spill] sm:$0xff] }
 0x127   : > { %1268 = vrot.lane.b32.xlu0 %v4863_v0, %s2877_s9  ;;  %1177 = vrot.lane.b32.xlu2 %v3811_v13, %s2876_s8  ;;  %s2798_s8 = scalar_lea.hbm %s4669_s3, 2 }
 0x128   : > { %v1031_v6 = vpop.permute.xlu1 %1030 }
 0x129   : > { %1104 = vst.msk [vmem:[#allocation2 + $0x5c] sm:$0xf] %vm1080_vm8, %v1031_v6  ;;  %v1029_v2 = vpop.permute.xlu0 %1028  ;;  %v1045_v49 = vpop.permute.xlu2 %1044  ;;  %v4867_v6 = vld [vmem:[#allocation21_spill] sm:$0xff] }
 0x12a   : > { %1103 = vst.msk [vmem:[#allocation2 + $0x58] sm:$0xf] %vm1080_vm8, %v1029_v2  ;;  %v4868_v2 = vld [vmem:[#allocation22_spill] sm:$0xff] }
 0x12b   : > { %1111 = vst.msk [vmem:[#allocation2 + $0x78] sm:$0xf] %vm1080_vm8, %v1045_v49 }
 0x12e   : > { %1276 = vrot.lane.b32.xlu1 %v4864_v1, %s2877_s9 }
 0x12f   : > { %1274 = vrot.lane.b32.xlu0 %v4865_v30, %s2877_s9  ;;  %1272 = vrot.lane.b32.xlu2 %v4866_v51, %s2877_s9 }
 0x130   : > { %v1037_v45 = vpop.permute.xlu1 %1036 }
 0x131   : > { %1107 = vst.msk [vmem:[#allocation2 + $0x68] sm:$0xf] %vm1080_vm8, %v1037_v45  ;;  %v1035_v44 = vpop.permute.xlu0 %1034  ;;  %v1118_v0 = vpop.permute.xlu2 %1117 }
 0x132   : > { %1106 = vst.msk [vmem:[#allocation2 + $0x64] sm:$0xf] %vm1080_vm8, %v1035_v44  ;;  %v4870_v44 = vld [vmem:[#allocation28_spill] sm:$0xff] }
 0x133   : > { %1213 = vst.msk [vmem:[#allocation2 + $0x4] sm:$0xf] %vm1211_vm9, %v1118_v0  ;;  %v4871_v0 = vld [vmem:[#allocation29_spill] sm:$0xff] }
 0x136   : > { %1282 = vrot.lane.b32.xlu1 %v4867_v6, %s2877_s9 }
 0x137   : > { %1280 = vrot.lane.b32.xlu0 %v4868_v2, %s2877_s9  ;;  %1278 = vrot.lane.b32.xlu2 %v4869_v47, %s2877_s9 }
 0x138   : > { %v1043_v49 = vpop.permute.xlu1 %1042 }
 0x139   : > { %1110 = vst.msk [vmem:[#allocation2 + $0x74] sm:$0xf] %vm1080_vm8, %v1043_v49  ;;  %v1041_v45 = vpop.permute.xlu0 %1040  ;;  %v1124_v36 = vpop.permute.xlu2 %1123  ;;  %v4872_v49 = vld [vmem:[#allocation20_spill] sm:$0xff] }
 0x13a   : > { %1109 = vst.msk [vmem:[#allocation2 + $0x70] sm:$0xf] %vm1080_vm8, %v1041_v45  ;;  %v4874_v45 = vld [vmem:[#allocation34_spill] sm:$0xff] }
 0x13b   : > { %1216 = vst.msk [vmem:[#allocation2 + $0x10] sm:$0xf] %vm1211_vm9, %v1124_v36  ;;  %v4873_v36 = vld [vmem:[#allocation33_spill] sm:$0xff] }
 0x13e   : > { %1288 = vrot.lane.b32.xlu1 %v4870_v44, %s2877_s9 }
 0x13f   : > { %1286 = vrot.lane.b32.xlu0 %v4871_v0, %s2877_s9  ;;  %1284 = vrot.lane.b32.xlu2 %v4872_v49, %s2877_s9 }
 0x140   : > { %v1116_v8 = vpop.permute.xlu1 %1115 }
 0x141   : > { %1212 = vst.msk [vmem:[#allocation2] sm:$0xf] %vm1211_vm9, %v1116_v8  ;;  %v1047_v61 = vpop.permute.xlu0 %1046  ;;  %v1130_v55 = vpop.permute.xlu2 %1129  ;;  %v4875_v8 = vld [vmem:[#allocation26_spill] sm:$0xff] }
 0x142   : > { %1112 = vst.msk [vmem:[#allocation2 + $0x7c] sm:$0xf] %vm1080_vm8, %v1047_v61  ;;  %v4876_v61 = vld [vmem:[#allocation39_spill] sm:$0xff] }
 0x143   : > { %1219 = vst.msk [vmem:[#allocation2 + $0x1c] sm:$0xf] %vm1211_vm9, %v1130_v55  ;;  %v4877_v55 = vld [vmem:[#allocation40_spill] sm:$0xff] }
 0x146   : > { %1294 = vrot.lane.b32.xlu1 %v4873_v36, %s2877_s9 }
 0x147   : > { %1292 = vrot.lane.b32.xlu0 %v4874_v45, %s2877_s9  ;;  %1290 = vrot.lane.b32.xlu2 %v4875_v8, %s2877_s9 }
 0x148   : > { %v1122_v63 = vpop.permute.xlu1 %1121 }
 0x149   : > { %1215 = vst.msk [vmem:[#allocation2 + $0xc] sm:$0xf] %vm1211_vm9, %v1122_v63  ;;  %v1120_v21 = vpop.permute.xlu0 %1119  ;;  %v1136_v15 = vpop.permute.xlu2 %1135  ;;  %v4878_v63 = vld [vmem:[#allocation32_spill] sm:$0xff] }
 0x14a   : > { %1214 = vst.msk [vmem:[#allocation2 + $0x8] sm:$0xf] %vm1211_vm9, %v1120_v21  ;;  %v4879_v21 = vld [vmem:[#allocation46_spill] sm:$0xff] }
 0x14b   : > { %1222 = vst.msk [vmem:[#allocation2 + $0x28] sm:$0xf] %vm1211_vm9, %v1136_v15  ;;  %v4880_v15 = vld [vmem:[#allocation47_spill] sm:$0xff] }
 0x14e   : > { %1300 = vrot.lane.b32.xlu1 %v4876_v61, %s2877_s9 }
 0x14f   : > { %1298 = vrot.lane.b32.xlu0 %v4877_v55, %s2877_s9  ;;  %1296 = vrot.lane.b32.xlu2 %v4878_v63, %s2877_s9  ;;  %v1248_v63 = vshll.u32 %v3796_v24, 16 }
 0x150   : > { %v1128_v35 = vpop.permute.xlu1 %1127 }
 0x151   : > { %1218 = vst.msk [vmem:[#allocation2 + $0x18] sm:$0xf] %vm1211_vm9, %v1128_v35  ;;  %v1126_v58 = vpop.permute.xlu0 %1125  ;;  %v1142_v49 = vpop.permute.xlu2 %1141  ;;  %v4881_v35 = vld [vmem:[#allocation38_spill] sm:$0xff]  ;;  %v1250_v53 = vrot.slane %v1248_v63, 5 }
 0x152   : > { %1217 = vst.msk [vmem:[#allocation2 + $0x14] sm:$0xf] %vm1211_vm9, %v1126_v58 }
 0x153   : > { %1225 = vst.msk [vmem:[#allocation2 + $0x34] sm:$0xf] %vm1211_vm9, %v1142_v49 }
 0x156   : > { %1306 = vrot.lane.b32.xlu1 %v4879_v21, %s2877_s9 }
 0x157   : > { %1304 = vrot.lane.b32.xlu0 %v4880_v15, %s2877_s9  ;;  %1302 = vrot.lane.b32.xlu2 %v4881_v35, %s2877_s9  ;;  %v1254_v35 = vshll.u32 %v3811_v13, 16 }
 0x158   : > { %v1134_v61 = vpop.permute.xlu1 %1133 }
 0x159   : > { %1221 = vst.msk [vmem:[#allocation2 + $0x24] sm:$0xf] %vm1211_vm9, %v1134_v61  ;;  %v1132_v55 = vpop.permute.xlu0 %1131  ;;  %v1148_v0 = vpop.permute.xlu2 %1147  ;;  %v4882_v61 = vld [vmem:[#allocation44_spill] sm:$0xff] }
 0x15a   : > { %1220 = vst.msk [vmem:[#allocation2 + $0x20] sm:$0xf] %vm1211_vm9, %v1132_v55 }
 0x15b   : > { %1228 = vst.msk [vmem:[#allocation2 + $0x40] sm:$0xf] %vm1211_vm9, %v1148_v0  ;;  %v1258_v0 = vshrl.u32 %v3811_v13, 16  ;;  %v4884_v13 = vld [vmem:[#allocation50_spill] sm:$0xff] }
 0x15d   : > { %v1260_v19 = vrot.slane %v1258_v0, 4 }
 0x15e   : > { %1312 = vrot.lane.b32.xlu1 %v3326_v41, %s2877_s9  ;;  %v1245_v41 = vshrl.u32 %v3796_v24, 16 }
 0x15f   : > { %1310 = vrot.lane.b32.xlu0 %v3334_v57, %s2877_s9  ;;  %1308 = vrot.lane.b32.xlu2 %v4882_v61, %s2877_s9 }
 0x160   : > { %v1140_v58 = vpop.permute.xlu1 %1139  ;;  %v1247_v43 = vrot.slane %v1245_v41, 4 }
 0x161   : > { %1224 = vst.msk [vmem:[#allocation2 + $0x30] sm:$0xf] %vm1211_vm9, %v1140_v58  ;;  %v1138_v49 = vpop.permute.xlu0 %1137  ;;  %v1154_v55 = vpop.permute.xlu2 %1153  ;;  %v1256_v58 = vrot.slane %v1254_v35, 5 }
 0x162   : > { %1223 = vst.msk [vmem:[#allocation2 + $0x2c] sm:$0xf] %vm1211_vm9, %v1138_v49 }
 0x163   : > { %1231 = vst.msk [vmem:[#allocation2 + $0x4c] sm:$0xf] %vm1211_vm9, %v1154_v55  ;;  %v1261_v24 = vor.u32 %v1260_v19, %v1256_v58 }
 0x165   : > { %v1262_v41 = vrot.slane %v1261_v24, 4 }
 0x166   : > { %1318 = vrot.lane.b32.xlu1 %v3354_v62, %s2877_s9  ;;  %v1264_v62 = vshll.u32 %v3892_v7, 16 }
 0x167   : > { %1316 = vrot.lane.b32.xlu0 %v3360_v28, %s2877_s9  ;;  %1314 = vrot.lane.b32.xlu2 %v4884_v13, %s2877_s9  ;;  %v1251_v28 = vor.u32 %v1250_v53, %v1247_v43 }
 0x168   : > { %v1146_v49 = vpop.permute.xlu1 %1145  ;;  %v1266_v63 = vrot.slane %v1264_v62, 5 }
 0x169   : > { %1227 = vst.msk [vmem:[#allocation2 + $0x3c] sm:$0xf] %vm1211_vm9, %v1146_v49  ;;  %v1144_v55 = vpop.permute.xlu0 %1143  ;;  %v1160_v61 = vpop.permute.xlu2 %1159  ;;  %v1252_v0 = vrot.slane %v1251_v28, 4 }
 0x16a   : > { %1226 = vst.msk [vmem:[#allocation2 + $0x38] sm:$0xf] %vm1211_vm9, %v1144_v55  ;;  %v3910_v53 = vsel %vm2999_vm2, %v1262_v41, %v1266_v63  ;;  %v4887_v63 = vld [vmem:[#allocation58_spill] sm:$0xff] }
 0x16b   : > { %1234 = vst.msk [vmem:[#allocation2 + $0x58] sm:$0xf] %vm1211_vm9, %v1160_v61  ;;  %v3914_v43 = vsel %vm2999_vm2, %v1252_v0, %v1256_v58 }
 0x16c   : > { %4885 = vst [vmem:[#allocation16_spill] sm:$0xff] %v3910_v53 }
 0x16d   : > { %4886 = vst [vmem:[#allocation17_spill] sm:$0xff] %v3914_v43 }
 0x16e   : > { %1324 = vrot.lane.b32.xlu1 %v3373_v50, %s2877_s9 }
 0x16f   : > { %1322 = vrot.lane.b32.xlu0 %v3380_v48, %s2877_s9  ;;  %1320 = vrot.lane.b32.xlu2 %v3346_v40, %s2877_s9 }
 0x170   : > { %v1152_v35 = vpop.permute.xlu1 %1151 }
 0x171   : > { %1230 = vst.msk [vmem:[#allocation2 + $0x48] sm:$0xf] %vm1211_vm9, %v1152_v35  ;;  %v1150_v49 = vpop.permute.xlu0 %1149  ;;  %v1166_v19 = vpop.permute.xlu2 %1165 }
 0x172   : > { %1229 = vst.msk [vmem:[#allocation2 + $0x44] sm:$0xf] %vm1211_vm9, %v1150_v49  ;;  %v4888_v49 = vld [vmem:[#allocation56_spill] sm:$0xff] }
 0x173   : > { %1237 = vst.msk [vmem:[#allocation2 + $0x64] sm:$0xf] %vm1211_vm9, %v1166_v19 }
 0x176   : > { %1330 = vrot.lane.b32.xlu1 %v3910_v53, %s2877_s9 }
 0x177   : > { %1328 = vrot.lane.b32.xlu0 %v3914_v43, %s2877_s9  ;;  %1326 = vrot.lane.b32.xlu2 %v3369_v20, %s2877_s9 }
 0x178   : > { %v1158_v62 = vpop.permute.xlu1 %1157 }
 0x179   : > { %1233 = vst.msk [vmem:[#allocation2 + $0x54] sm:$0xf] %vm1211_vm9, %v1158_v62  ;;  %v1156_v28 = vpop.permute.xlu0 %1155  ;;  %v1172_v24 = vpop.permute.xlu2 %1171  ;;  %v4889_v62 = vld [vmem:[#allocation59_spill] sm:$0xff] }
 0x17a   : > { %1232 = vst.msk [vmem:[#allocation2 + $0x50] sm:$0xf] %vm1211_vm9, %v1156_v28  ;;  %v4890_v28 = vld [vmem:[#allocation60_spill] sm:$0xff] }
 0x17b   : > { %1240 = vst.msk [vmem:[#allocation2 + $0x70] sm:$0xf] %vm1211_vm9, %v1172_v24 }
 0x17e   : > { %1409 = vrot.lane.b32.xlu1 %v3440_v12, %s2878_s10 }
 0x17f   : > { %1407 = vrot.lane.b32.xlu0 %v3451_v10, %s2878_s10  ;;  %1405 = vrot.lane.b32.xlu2 %v3402_v59, %s2878_s10 }
 0x180   : > { %v1164_v61 = vpop.permute.xlu1 %1163 }
 0x181   : > { %1236 = vst.msk [vmem:[#allocation2 + $0x60] sm:$0xf] %vm1211_vm9, %v1164_v61  ;;  %v1162_v58 = vpop.permute.xlu0 %1161  ;;  %v1178_v55 = vpop.permute.xlu2 %1177 }
 0x182   : > { %1235 = vst.msk [vmem:[#allocation2 + $0x5c] sm:$0xf] %vm1211_vm9, %v1162_v58  ;;  %v4891_v58 = vld [vmem:[#allocation57_spill] sm:$0xff] }
 0x183   : > { %1243 = vst.msk [vmem:[#allocation2 + $0x7c] sm:$0xf] %vm1211_vm9, %v1178_v55 }
 0x186   : > { %1415 = vrot.lane.b32.xlu1 %v3480_v17, %s2878_s10 }
 0x187   : > { %1413 = vrot.lane.b32.xlu0 %v3491_v18, %s2878_s10  ;;  %1411 = vrot.lane.b32.xlu2 %v3434_v4, %s2878_s10 }
 0x188   : > { %v1170_v41 = vpop.permute.xlu1 %1169 }
 0x189   : > { %1239 = vst.msk [vmem:[#allocation2 + $0x6c] sm:$0xf] %vm1211_vm9, %v1170_v41  ;;  %v1168_v10 = vpop.permute.xlu0 %1167  ;;  %v1273_v59 = vpop.permute.xlu2 %1272  ;;  %v4892_v41 = vld [vmem:[#allocation24_spill] sm:$0xff] }
 0x18a   : > { %1238 = vst.msk [vmem:[#allocation2 + $0x68] sm:$0xf] %vm1211_vm9, %v1168_v10  ;;  %v4893_v10 = vld [vmem:[#allocation61_spill] sm:$0xff] }
 0x18b   : > { %1367 = vst.msk [vmem:[#allocation2 + $0x8] sm:$0xf] %vm1364_vm10, %v1273_v59 }
 0x18e   : > { %1421 = vrot.lane.b32.xlu1 %v3516_v25, %s2878_s10 }
 0x18f   : > { %1419 = vrot.lane.b32.xlu0 %v4887_v63, %s2878_s10  ;;  %1417 = vrot.lane.b32.xlu2 %v4888_v49, %s2878_s10 }
 0x190   : > { %v1176_v35 = vpop.permute.xlu1 %1175 }
 0x191   : > { %1242 = vst.msk [vmem:[#allocation2 + $0x78] sm:$0xf] %vm1211_vm9, %v1176_v35  ;;  %v1174_v0 = vpop.permute.xlu0 %1173  ;;  %v1279_v19 = vpop.permute.xlu2 %1278 }
 0x192   : > { %1241 = vst.msk [vmem:[#allocation2 + $0x74] sm:$0xf] %vm1211_vm9, %v1174_v0  ;;  %v4894_v0 = vld [vmem:[#allocation18_spill] sm:$0xff] }
 0x193   : > { %1370 = vst.msk [vmem:[#allocation2 + $0x14] sm:$0xf] %vm1364_vm10, %v1279_v19 }
 0x196   : > { %1427 = vrot.lane.b32.xlu1 %v4889_v62, %s2878_s10 }
 0x197   : > { %1425 = vrot.lane.b32.xlu0 %v4890_v28, %s2878_s10  ;;  %1423 = vrot.lane.b32.xlu2 %v4891_v58, %s2878_s10 }
 0x198   : > { %v1271_v24 = vpop.permute.xlu1 %1270 }
 0x199   : > { %1366 = vst.msk [vmem:[#allocation2 + $0x4] sm:$0xf] %vm1364_vm10, %v1271_v24  ;;  %v1269_v61 = vpop.permute.xlu0 %1268  ;;  %v1285_v55 = vpop.permute.xlu2 %1284  ;;  %v4895_v24 = vld [vmem:[#allocation63_spill] sm:$0xff] }
 0x19a   : > { %1365 = vst.msk [vmem:[#allocation2] sm:$0xf] %vm1364_vm10, %v1269_v61 }
 0x19b   : > { %1373 = vst.msk [vmem:[#allocation2 + $0x20] sm:$0xf] %vm1364_vm10, %v1285_v55 }
 0x19e   : > { %1433 = vrot.lane.b32.xlu1 %v4892_v41, %s2878_s10 }
 0x19f   : > { %1431 = vrot.lane.b32.xlu0 %v4893_v10, %s2878_s10  ;;  %1429 = vrot.lane.b32.xlu2 %v4894_v0, %s2878_s10 }
 0x1a0   : > { %v1277_v59 = vpop.permute.xlu1 %1276 }
 0x1a1   : > { %1369 = vst.msk [vmem:[#allocation2 + $0x10] sm:$0xf] %vm1364_vm10, %v1277_v59  ;;  %v1275_v35 = vpop.permute.xlu0 %1274  ;;  %v1291_v19 = vpop.permute.xlu2 %1290  ;;  %v4896_v59 = vld [vmem:[#allocation31_spill] sm:$0xff] }
 0x1a2   : > { %1368 = vst.msk [vmem:[#allocation2 + $0xc] sm:$0xf] %vm1364_vm10, %v1275_v35  ;;  %v4897_v35 = vld [vmem:[#allocation36_spill] sm:$0xff] }
 0x1a3   : > { %1376 = vst.msk [vmem:[#allocation2 + $0x2c] sm:$0xf] %vm1364_vm10, %v1291_v19  ;;  %v4898_v19 = vld [vmem:[#allocation64_spill] sm:$0xff] }
 0x1a6   : > { %1439 = vrot.lane.b32.xlu1 %v3604_v46, %s2878_s10 }
 0x1a7   : > { %1437 = vrot.lane.b32.xlu0 %v4895_v24, %s2878_s10  ;;  %1435 = vrot.lane.b32.xlu2 %v4896_v59, %s2878_s10 }
 0x1a8   : > { %v1283_v61 = vpop.permute.xlu1 %1282 }
 0x1a9   : > { %1372 = vst.msk [vmem:[#allocation2 + $0x1c] sm:$0xf] %vm1364_vm10, %v1283_v61  ;;  %v1281_v55 = vpop.permute.xlu0 %1280  ;;  %v1297_v27 = vpop.permute.xlu2 %1296  ;;  %v4899_v61 = vld [vmem:[#allocation30_spill] sm:$0xff] }
 0x1aa   : > { %1371 = vst.msk [vmem:[#allocation2 + $0x18] sm:$0xf] %vm1364_vm10, %v1281_v55 }
 0x1ab   : > { %1379 = vst.msk [vmem:[#allocation2 + $0x38] sm:$0xf] %vm1364_vm10, %v1297_v27 }
 0x1ae   : > { %1445 = vrot.lane.b32.xlu1 %v4897_v35, %s2878_s10 }
 0x1af   : > { %1443 = vrot.lane.b32.xlu0 %v4898_v19, %s2878_s10  ;;  %1441 = vrot.lane.b32.xlu2 %v4899_v61, %s2878_s10 }
 0x1b0   : > { %v1289_v43 = vpop.permute.xlu1 %1288 }
 0x1b1   : > { %1375 = vst.msk [vmem:[#allocation2 + $0x28] sm:$0xf] %vm1364_vm10, %v1289_v43  ;;  %v1287_v7 = vpop.permute.xlu0 %1286  ;;  %v1303_v53 = vpop.permute.xlu2 %1302  ;;  %v4900_v43 = vld [vmem:[#allocation43_spill] sm:$0xff] }
 0x1b2   : > { %1374 = vst.msk [vmem:[#allocation2 + $0x24] sm:$0xf] %vm1364_vm10, %v1287_v7 }
 0x1b3   : > { %1382 = vst.msk [vmem:[#allocation2 + $0x44] sm:$0xf] %vm1364_vm10, %v1303_v53 }
 0x1b6   : > { %1451 = vrot.lane.b32.xlu1 %v3655_v14, %s2878_s10 }
 0x1b7   : > { %1449 = vrot.lane.b32.xlu0 %v3662_v52, %s2878_s10  ;;  %1447 = vrot.lane.b32.xlu2 %v4900_v43, %s2878_s10 }
 0x1b8   : > { %v1295_v27 = vpop.permute.xlu1 %1294 }
 0x1b9   : > { %1378 = vst.msk [vmem:[#allocation2 + $0x34] sm:$0xf] %vm1364_vm10, %v1295_v27  ;;  %v1293_v55 = vpop.permute.xlu0 %1292  ;;  %v1309_v24 = vpop.permute.xlu2 %1308  ;;  %v4901_v27 = vld [vmem:[#allocation41_spill] sm:$0xff] }
 0x1ba   : > { %1377 = vst.msk [vmem:[#allocation2 + $0x30] sm:$0xf] %vm1364_vm10, %v1293_v55 }
 0x1bb   : > { %1385 = vst.msk [vmem:[#allocation2 + $0x50] sm:$0xf] %vm1364_vm10, %v1309_v24 }
 0x1be   : > { %1457 = vrot.lane.b32.xlu1 %v3679_v54, %s2878_s10 }
 0x1bf   : > { %1455 = vrot.lane.b32.xlu0 %v3687_v9, %s2878_s10  ;;  %1453 = vrot.lane.b32.xlu2 %v4901_v27, %s2878_s10 }
 0x1c0   : > { %v1301_v7 = vpop.permute.xlu1 %1300 }
 0x1c1   : > { %1381 = vst.msk [vmem:[#allocation2 + $0x40] sm:$0xf] %vm1364_vm10, %v1301_v7  ;;  %v1299_v53 = vpop.permute.xlu0 %1298  ;;  %v1315_v46 = vpop.permute.xlu2 %1314 }
 0x1c2   : > { %1380 = vst.msk [vmem:[#allocation2 + $0x3c] sm:$0xf] %vm1364_vm10, %v1299_v53 }
 0x1c3   : > { %1388 = vst.msk [vmem:[#allocation2 + $0x5c] sm:$0xf] %vm1364_vm10, %v1315_v46 }
 0x1c6   : > { %1536 = vrot.lane.b32.xlu1 %v3008_v37, %s2879_s11 }
 0x1c7   : > { %1461 = vrot.lane.b32.xlu0 %v3706_v39, %s2878_s10  ;;  %1459 = vrot.lane.b32.xlu2 %v3675_v60, %s2878_s10 }
 0x1c8   : > { %v1307_v24 = vpop.permute.xlu1 %1306 }
 0x1c9   : > { %1384 = vst.msk [vmem:[#allocation2 + $0x4c] sm:$0xf] %vm1364_vm10, %v1307_v24  ;;  %v1305_v55 = vpop.permute.xlu0 %1304  ;;  %v1321_v7 = vpop.permute.xlu2 %1320 }
 0x1ca   : > { %1383 = vst.msk [vmem:[#allocation2 + $0x48] sm:$0xf] %vm1364_vm10, %v1305_v55 }
 0x1cb   : > { %1391 = vst.msk [vmem:[#allocation2 + $0x68] sm:$0xf] %vm1364_vm10, %v1321_v7 }
 0x1ce   : > { %1691 = vrot.lane.b32.xlu1 %v4865_v30, %s2880_s12 }
 0x1cf   : > { %1689 = vrot.lane.b32.xlu0 %v4866_v51, %s2880_s12  ;;  %1538 = vrot.lane.b32.xlu2 %v3019_v42, %s2879_s11 }
 0x1d0   : > { %v1313_v37 = vpop.permute.xlu1 %1312 }
 0x1d1   : > { %1387 = vst.msk [vmem:[#allocation2 + $0x58] sm:$0xf] %vm1364_vm10, %v1313_v37  ;;  %v1311_v46 = vpop.permute.xlu0 %1310  ;;  %v1327_v53 = vpop.permute.xlu2 %1326 }
 0x1d2   : > { %1386 = vst.msk [vmem:[#allocation2 + $0x54] sm:$0xf] %vm1364_vm10, %v1311_v46 }
 0x1d3   : > { %1394 = vst.msk [vmem:[#allocation2 + $0x74] sm:$0xf] %vm1364_vm10, %v1327_v53 }
 0x1d6   : > { %1540 = vrot.lane.b32.xlu1 %v3005_v31, %s2879_s11 }
 0x1d7   : > { %1828 = vrot.lane.b32.xlu0 %v3434_v4, %s2881_s13  ;;  %1826 = vrot.lane.b32.xlu2 %v3440_v12, %s2881_s13 }
 0x1d8   : > { %v1319_v30 = vpop.permute.xlu1 %1318 }
 0x1d9   : > { %1390 = vst.msk [vmem:[#allocation2 + $0x64] sm:$0xf] %vm1364_vm10, %v1319_v30  ;;  %v1317_v51 = vpop.permute.xlu0 %1316  ;;  %v1406_v42 = vpop.permute.xlu2 %1405  ;;  %v4902_v30 = vld [vmem:[#allocation44_spill] sm:$0xff] }
 0x1da   : > { %1389 = vst.msk [vmem:[#allocation2 + $0x60] sm:$0xf] %vm1364_vm10, %v1317_v51 }
 0x1db   : > { %1502 = vst.msk [vmem:[#allocation2] sm:$0xf] %vm1501_vm11, %v1406_v42  ;;  %v4903_v42 = vld [vmem:[#allocation11_spill] sm:$0xff] }
 0x1de   : > { %1554 = vrot.lane.b32.xlu1 %v3058_v16, %s2879_s11 }
 0x1df   : > { %1552 = vrot.lane.b32.xlu0 %v3079_v33, %s2879_s11  ;;  %1542 = vrot.lane.b32.xlu2 %v2993_v22, %s2879_s11 }
 0x1e0   : > { %v1325_v31 = vpop.permute.xlu1 %1324 }
 0x1e1   : > { %1393 = vst.msk [vmem:[#allocation2 + $0x70] sm:$0xf] %vm1364_vm10, %v1325_v31  ;;  %v1323_v4 = vpop.permute.xlu0 %1322  ;;  %v1412_v12 = vpop.permute.xlu2 %1411  ;;  %v4904_v31 = vld [vmem:[#allocation23_spill] sm:$0xff] }
 0x1e2   : > { %1392 = vst.msk [vmem:[#allocation2 + $0x6c] sm:$0xf] %vm1364_vm10, %v1323_v4  ;;  %v4905_v4 = vld [vmem:[#allocation19_spill] sm:$0xff] }
 0x1e3   : > { %1505 = vst.msk [vmem:[#allocation2 + $0xc] sm:$0xf] %vm1501_vm11, %v1412_v12 }
 0x1e6   : > { %1705 = vrot.lane.b32.xlu1 %v4870_v44, %s2880_s12 }
 0x1e7   : > { %1695 = vrot.lane.b32.xlu0 %v4869_v47, %s2880_s12  ;;  %1693 = vrot.lane.b32.xlu2 %v4864_v1, %s2880_s12 }
 0x1e8   : > { %v1331_v16 = vpop.permute.xlu1 %1330 }
 0x1e9   : > { %1396 = vst.msk [vmem:[#allocation2 + $0x7c] sm:$0xf] %vm1364_vm10, %v1331_v16  ;;  %v1329_v33 = vpop.permute.xlu0 %1328  ;;  %v1418_v22 = vpop.permute.xlu2 %1417 }
 0x1ea   : > { %1395 = vst.msk [vmem:[#allocation2 + $0x78] sm:$0xf] %vm1364_vm10, %v1329_v33  ;;  %v4906_v33 = vld [vmem:[#allocation13_spill] sm:$0xff] }
 0x1eb   : > { %1508 = vst.msk [vmem:[#allocation2 + $0x18] sm:$0xf] %vm1501_vm11, %v1418_v22  ;;  %v4907_v22 = vld [vmem:[#allocation32_spill] sm:$0xff] }
 0x1ee   : > { %1832 = vrot.lane.b32.xlu1 %v3480_v17, %s2881_s13 }
 0x1ef   : > { %1830 = vrot.lane.b32.xlu0 %v3491_v18, %s2881_s13  ;;  %1707 = vrot.lane.b32.xlu2 %v4875_v8, %s2880_s12 }
 0x1f0   : > { %v1410_v44 = vpop.permute.xlu1 %1409 }
 0x1f1   : > { %1504 = vst.msk [vmem:[#allocation2 + $0x8] sm:$0xf] %vm1501_vm11, %v1410_v44  ;;  %v1408_v47 = vpop.permute.xlu0 %1407  ;;  %v1424_v1 = vpop.permute.xlu2 %1423  ;;  %v4908_v44 = vld [vmem:[#allocation29_spill] sm:$0xff] }
 0x1f2   : > { %1503 = vst.msk [vmem:[#allocation2 + $0x4] sm:$0xf] %vm1501_vm11, %v1408_v47 }
 0x1f3   : > { %1511 = vst.msk [vmem:[#allocation2 + $0x24] sm:$0xf] %vm1501_vm11, %v1424_v1 }
 0x1f6   : > { %1568 = vrot.lane.b32.xlu1 %v3205_v32, %s2879_s11 }
 0x1f7   : > { %1844 = vrot.lane.b32.xlu0 %v4889_v62, %s2881_s13  ;;  %1842 = vrot.lane.b32.xlu2 %v4890_v28, %s2881_s13 }
 0x1f8   : > { %v1416_v17 = vpop.permute.xlu1 %1415 }
 0x1f9   : > { %1507 = vst.msk [vmem:[#allocation2 + $0x14] sm:$0xf] %vm1501_vm11, %v1416_v17  ;;  %v1414_v18 = vpop.permute.xlu0 %1413  ;;  %v1430_v8 = vpop.permute.xlu2 %1429  ;;  %v4909_v17 = vld [vmem:[#allocation20_spill] sm:$0xff] }
 0x1fa   : > { %1506 = vst.msk [vmem:[#allocation2 + $0x10] sm:$0xf] %vm1501_vm11, %v1414_v18 }
 0x1fb   : > { %1514 = vst.msk [vmem:[#allocation2 + $0x30] sm:$0xf] %vm1501_vm11, %v1430_v8 }
 0x1fe   : > { %1723 = vrot.lane.b32.xlu1 %v4879_v21, %s2880_s12 }
 0x1ff   : > { %1721 = vrot.lane.b32.xlu0 %v4880_v15, %s2880_s12  ;;  %1570 = vrot.lane.b32.xlu2 %v3192_v5, %s2879_s11 }
 0x200   : > { %v1422_v32 = vpop.permute.xlu1 %1421 }
 0x201   : > { %1510 = vst.msk [vmem:[#allocation2 + $0x20] sm:$0xf] %vm1501_vm11, %v1422_v32  ;;  %v1420_v62 = vpop.permute.xlu0 %1419  ;;  %v1436_v28 = vpop.permute.xlu2 %1435 }
 0x202   : > { %1509 = vst.msk [vmem:[#allocation2 + $0x1c] sm:$0xf] %vm1501_vm11, %v1420_v62  ;;  %v4910_v62 = vld [vmem:[#allocation40_spill] sm:$0xff] }
 0x203   : > { %1517 = vst.msk [vmem:[#allocation2 + $0x3c] sm:$0xf] %vm1501_vm11, %v1436_v28 }
 0x206   : > { %1544 = vrot.lane.b32.xlu1 %v3072_v29, %s2879_s11 }
 0x207   : > { %1860 = vrot.lane.b32.xlu0 %v4898_v19, %s2881_s13  ;;  %1858 = vrot.lane.b32.xlu2 %v4899_v61, %s2881_s13 }
 0x208   : > { %v1428_v21 = vpop.permute.xlu1 %1427 }
 0x209   : > { %1513 = vst.msk [vmem:[#allocation2 + $0x2c] sm:$0xf] %vm1501_vm11, %v1428_v21  ;;  %v1426_v15 = vpop.permute.xlu0 %1425  ;;  %v1442_v5 = vpop.permute.xlu2 %1441  ;;  %v4911_v21 = vld [vmem:[#allocation37_spill] sm:$0xff] }
 0x20a   : > { %1512 = vst.msk [vmem:[#allocation2 + $0x28] sm:$0xf] %vm1501_vm11, %v1426_v15 }
 0x20b   : > { %1520 = vst.msk [vmem:[#allocation2 + $0x48] sm:$0xf] %vm1501_vm11, %v1442_v5 }
 0x20e   : > { %1558 = vrot.lane.b32.xlu1 %v3114_v11, %s2879_s11 }
 0x20f   : > { %1556 = vrot.lane.b32.xlu0 %v3127_v26, %s2879_s11  ;;  %1546 = vrot.lane.b32.xlu2 %v3037_v56, %s2879_s11 }
 0x210   : > { %v1434_v29 = vpop.permute.xlu1 %1433 }
 0x211   : > { %1516 = vst.msk [vmem:[#allocation2 + $0x38] sm:$0xf] %vm1501_vm11, %v1434_v29  ;;  %v1432_v19 = vpop.permute.xlu0 %1431  ;;  %v1448_v61 = vpop.permute.xlu2 %1447  ;;  %v4912_v29 = vld [vmem:[#allocation49_spill] sm:$0xff] }
 0x212   : > { %1515 = vst.msk [vmem:[#allocation2 + $0x34] sm:$0xf] %vm1501_vm11, %v1432_v19 }
 0x213   : > { %1523 = vst.msk [vmem:[#allocation2 + $0x54] sm:$0xf] %vm1501_vm11, %v1448_v61 }
 0x216   : > { %1709 = vrot.lane.b32.xlu1 %v4874_v45, %s2880_s12 }
 0x217   : > { %1699 = vrot.lane.b32.xlu0 %v4867_v6, %s2880_s12  ;;  %1697 = vrot.lane.b32.xlu2 %v4868_v2, %s2880_s12  ;;  %v1991_v2 = vld [vmem:[%s4667_s1 + $0x10] sm:$0x3] }
 0x218   : > { %v1440_v11 = vpop.permute.xlu1 %1439  ;;  %v2081_v55 = vunpack.c.l.b16 %v1991_v2 }
 0x219   : > { %1519 = vst.msk [vmem:[#allocation2 + $0x44] sm:$0xf] %vm1501_vm11, %v1440_v11  ;;  %v1438_v26 = vpop.permute.xlu0 %1437  ;;  %v1454_v56 = vpop.permute.xlu2 %1453 }
 0x21a   : > { %1518 = vst.msk [vmem:[#allocation2 + $0x40] sm:$0xf] %vm1501_vm11, %v1438_v26 }
 0x21b   : > { %1526 = vst.msk [vmem:[#allocation2 + $0x60] sm:$0xf] %vm1501_vm11, %v1454_v56 }
 0x21e   : > { %1836 = vrot.lane.b32.xlu1 %v4887_v63, %s2881_s13  ;;  %v2084_v63 = vpack.c.b16 %v2081_v55, %v2081_v55 }
 0x21f   : > { %1834 = vrot.lane.b32.xlu0 %v4888_v49, %s2881_s13  ;;  %1711 = vrot.lane.b32.xlu2 %v4873_v36, %s2880_s12 }
 0x220   : > { %v1446_v45 = vpop.permute.xlu1 %1445  ;;  %v2138_v49 = vsel %vm2136_vm12, %v2084_v63, 0 }
 0x221   : > { %1522 = vst.msk [vmem:[#allocation2 + $0x50] sm:$0xf] %vm1501_vm11, %v1446_v45  ;;  %v1444_v6 = vpop.permute.xlu0 %1443  ;;  %v1460_v24 = vpop.permute.xlu2 %1459  ;;  %2145 = vmatpush.bf16.msra.mxu0 %v2138_v49  ;;  %2715 = vmatpush.bf16.msra.mxu1 %v2138_v49 }
 0x222   : > { %1521 = vst.msk [vmem:[#allocation2 + $0x4c] sm:$0xf] %vm1501_vm11, %v1444_v6  ;;  %2716 = vmatpush.bf16.msra.mxu2 %v2138_v49  ;;  %2717 = vmatpush.bf16.msra.mxu3 %v2138_v49  ;;  %v4915_v6 = vld [vmem:[#allocation52_spill] sm:$0xff] }
 0x223   : > { %1529 = vst.msk [vmem:[#allocation2 + $0x6c] sm:$0xf] %vm1501_vm11, %v1460_v24 }
 0x226   : > { %1572 = vrot.lane.b32.xlu1 %v3187_v3, %s2879_s11  ;;  %v2714_v3 = vld [vmem:[%s4667_s1 + $0x8] sm:$0xff] }
 0x227   : > { %1848 = vrot.lane.b32.xlu0 %v4893_v10, %s2881_s13  ;;  %1846 = vrot.lane.b32.xlu2 %v4894_v0, %s2881_s13  ;;  %v2713_v0 = vld [vmem:[%s4667_s1] sm:$0xff] }
 0x228   : > { %v1452_v36 = vpop.permute.xlu1 %1451  ;;  %2146 = vmatpush.bf16.msra.mxu0 %v2714_v3  ;;  %2718 = vmatpush.bf16.msra.mxu1 %v2714_v3 }
 0x229   : > { %1525 = vst.msk [vmem:[#allocation2 + $0x5c] sm:$0xf] %vm1501_vm11, %v1452_v36  ;;  %v1450_v7 = vpop.permute.xlu0 %1449  ;;  %v1539_v10 = vpop.permute.xlu2 %1538  ;;  %2719 = vmatpush.bf16.msra.mxu2 %v2714_v3  ;;  %2720 = vmatpush.bf16.msra.mxu3 %v2714_v3  ;;  %v4918_v36 = vld [vmem:[#allocation38_spill] sm:$0xff] }
 0x22a   : > { %1524 = vst.msk [vmem:[#allocation2 + $0x58] sm:$0xf] %vm1501_vm11, %v1450_v7  ;;  %v4919_v7 = vld [vmem:[#allocation39_spill] sm:$0xff] }
 0x22b   : > { %1634 = vst.msk [vmem:[#allocation2 + $0x4] sm:$0xf] %vm1632_vm13, %v1539_v10 }
 0x22c   : > { %2147 = vmatpush.bf16.msra.mxu0 %v2713_v0  ;;  %2721 = vmatpush.bf16.msra.mxu1 %v2713_v0 }
 0x22d   : > { %2722 = vmatpush.bf16.msra.mxu2 %v2713_v0  ;;  %2723 = vmatpush.bf16.msra.mxu3 %v2713_v0  ;;  %v4920_v0 = vld [vmem:[#allocation25_spill] sm:$0xff] }
 0x22e   : > { %1586 = vrot.lane.b32.xlu1 %v3299_v23, %s2879_s11 }
 0x22f   : > { %1584 = vrot.lane.b32.xlu0 %v3265_v38, %s2879_s11  ;;  %1574 = vrot.lane.b32.xlu2 %v3228_v34, %s2879_s11 }
 0x230   : > { %v1458_v37 = vpop.permute.xlu1 %1457 }
 0x231   : > { %1528 = vst.msk [vmem:[#allocation2 + $0x68] sm:$0xf] %vm1501_vm11, %v1458_v37  ;;  %v1456_v46 = vpop.permute.xlu0 %1455  ;;  %v1827_v23 = vpop.permute.xlu2 %1826  ;;  %v4921_v37 = vld [vmem:[#allocation62_spill] sm:$0xff] }
 0x232   : > { %1527 = vst.msk [vmem:[#allocation2 + $0x64] sm:$0xf] %vm1501_vm11, %v1456_v46 }
 0x236   : > { %1737 = vrot.lane.b32.xlu1 %v3346_v40, %s2880_s12 }
 0x237   : > { %1727 = vrot.lane.b32.xlu0 %v3334_v57, %s2880_s12  ;;  %1725 = vrot.lane.b32.xlu2 %v4902_v30, %s2880_s12 }
 0x238   : > { %v1537_v38 = vpop.permute.xlu1 %1536 }
 0x239   : > { %1633 = vst.msk [vmem:[#allocation2] sm:$0xf] %vm1632_vm13, %v1537_v38  ;;  %v1462_v53 = vpop.permute.xlu0 %1461  ;;  %v1543_v34 = vpop.permute.xlu2 %1542 }
 0x23a   : > { %1530 = vst.msk [vmem:[#allocation2 + $0x70] sm:$0xf] %vm1501_vm11, %v1462_v53  ;;  %v4922_v53 = vld [vmem:[#allocation63_spill] sm:$0xff] }
 0x23b   : > { %1636 = vst.msk [vmem:[#allocation2 + $0xc] sm:$0xf] %vm1632_vm13, %v1543_v34  ;;  %v4923_v34 = vld [vmem:[#allocation65_spill] sm:$0xff] }
 0x23e   : > { %1864 = vrot.lane.b32.xlu1 %v4900_v43, %s2881_s13 }
 0x23f   : > { %1862 = vrot.lane.b32.xlu0 %v4897_v35, %s2881_s13  ;;  %1739 = vrot.lane.b32.xlu2 %v3380_v48, %s2880_s12 }
 0x240   : > { %v1692_v57 = vpop.permute.xlu1 %1691 }
 0x241   : > { %1787 = vst.msk [vmem:[#allocation2 + $0x4] sm:$0xf] %vm1785_vm14, %v1692_v57  ;;  %v1690_v40 = vpop.permute.xlu0 %1689  ;;  %v1694_v51 = vpop.permute.xlu2 %1693  ;;  %v4924_v57 = vld [vmem:[#allocation42_spill] sm:$0xff] }
 0x242   : > { %1786 = vst.msk [vmem:[#allocation2] sm:$0xf] %vm1785_vm14, %v1690_v40 }
 0x243   : > { %1923 = vst.msk [vmem:[#allocation2] sm:$0xf] %vm1922_vm15, %v1827_v23 }
 0x246   : > { %1548 = vrot.lane.b32.xlu1 %v4903_v42, %s2879_s11 }
 0x247   : > { %1876 = vrot.lane.b32.xlu0 %v3675_v60, %s2881_s13  ;;  %1874 = vrot.lane.b32.xlu2 %v3679_v54, %s2881_s13 }
 0x248   : > { %v1541_v35 = vpop.permute.xlu1 %1540 }
 0x249   : > { %1635 = vst.msk [vmem:[#allocation2 + $0x8] sm:$0xf] %vm1632_vm13, %v1541_v35  ;;  %v1829_v43 = vpop.permute.xlu0 %1828  ;;  %v1708_v48 = vpop.permute.xlu2 %1707  ;;  %v4925_v35 = vld [vmem:[#allocation45_spill] sm:$0xff] }
 0x24a   : > { %1924 = vst.msk [vmem:[#allocation2 + $0x4] sm:$0xf] %vm1922_vm15, %v1829_v43 }
 0x24b   : > { %1788 = vst.msk [vmem:[#allocation2 + $0x8] sm:$0xf] %vm1785_vm14, %v1694_v51 }
 0x24e   : > { %1562 = vrot.lane.b32.xlu1 %v4904_v31, %s2879_s11  ;;  %v4927_v31 = vld [vmem:[#allocation54_spill] sm:$0xff] }
 0x24f   : > { %1560 = vrot.lane.b32.xlu0 %v4905_v4, %s2879_s11  ;;  %1550 = vrot.lane.b32.xlu2 %v4906_v33, %s2879_s11 }
 0x250   : > { %v1555_v12 = vpop.permute.xlu1 %1554 }
 0x251   : > { %1642 = vst.msk [vmem:[#allocation2 + $0x24] sm:$0xf] %vm1632_vm13, %v1555_v12  ;;  %v1553_v60 = vpop.permute.xlu0 %1552  ;;  %v2697_v16 = vld [vmem:[#allocation2] sm:$0xff]  ;;  %v1843_v54 = vpop.permute.xlu2 %1842 }
 0x252   : > { %1641 = vst.msk [vmem:[#allocation2 + $0x20] sm:$0xf] %vm1632_vm13, %v1553_v60  ;;  %2678 = vmatmul.msk.bf16.vlgmr.msra.gmra.mxu0 %vm2087_vm0, %v2697_v16  ;;  %v4928_v60 = vld [vmem:[#allocation12_spill] sm:$0xff] }
 0x253   : > { %1795 = vst.msk [vmem:[#allocation2 + $0x24] sm:$0xf] %vm1785_vm14, %v1708_v48  ;;  %v4926_v48 = vld [vmem:[#allocation53_spill] sm:$0xff]  ;;  %v1400_v16 = vrot.slane %v4928_v60, 5 }
 0x256   : > { %1713 = vrot.lane.b32.xlu1 %v4907_v22, %s2880_s12  ;;  %v1402_v22 = vrot.slane %v1400_v16, 4 }
 0x257   : > { %1703 = vrot.lane.b32.xlu0 %v4908_v44, %s2880_s12  ;;  %1701 = vrot.lane.b32.xlu2 %v4909_v17, %s2880_s12  ;;  %v4930_v44 = vld [vmem:[#allocation10_spill] sm:$0xff]  ;;  %v2777_v17 = vld [vmem:[%s2963_s5 + $0xc0] sm:$0xf] }
 0x258   : > { %v1706_v47 = vpop.permute.xlu1 %1705 }
 0x259   : > { %1794 = vst.msk [vmem:[#allocation2 + $0x20] sm:$0xf] %vm1785_vm14, %v1706_v47  ;;  %v1696_v1 = vpop.permute.xlu0 %1695  ;;  %v1571_v18 = vpop.permute.xlu2 %1570  ;;  %v1403_v47 = vrot.slane %v4930_v44, 5 }
 0x25a   : > { %1789 = vst.msk [vmem:[#allocation2 + $0xc] sm:$0xf] %vm1785_vm14, %v1696_v1 }
 0x25b   : > { %1931 = vst.msk [vmem:[#allocation2 + $0x20] sm:$0xf] %vm1922_vm15, %v1843_v54  ;;  %v4929_v54 = vld [vmem:[#allocation16_spill] sm:$0xff] }
 0x25c   : > { %1650 = vst.msk [vmem:[#allocation2 + $0x44] sm:$0xf] %vm1632_vm13, %v1571_v18  ;;  %v2604_v18 = vrot.slane %v2777_v17, 9 }
 0x25e   : > { %1840 = vrot.lane.b32.xlu1 %v4891_v58, %s2881_s13 }
 0x25f   : > { %1838 = vrot.lane.b32.xlu0 %v3516_v25, %s2881_s13  ;;  %1715 = vrot.lane.b32.xlu2 %v4910_v62, %s2880_s12  ;;  %v4294_v62 = vld [vmem:[%s2963_s5 + $0xcc] sm:$0xf] }
 0x260   : > { %v1833_v8 = vpop.permute.xlu1 %1832 }
 0x261   : > { %1926 = vst.msk [vmem:[#allocation2 + $0xc] sm:$0xf] %vm1922_vm15, %v1833_v8  ;;  %v1831_v32 = vpop.permute.xlu0 %1830  ;;  %v1859_v28 = vpop.permute.xlu2 %1858 }
 0x262   : > { %1925 = vst.msk [vmem:[#allocation2 + $0x8] sm:$0xf] %vm1922_vm15, %v1831_v32  ;;  %v4931_v32 = vld [vmem:[#allocation17_spill] sm:$0xff] }
 0x266   : > { %1576 = vrot.lane.b32.xlu1 %v4911_v21, %s2879_s11  ;;  %v1404_v21 = vsel %vm3386_vm6, %v1402_v22, %v1403_v47 }
 0x267   : > { %1852 = vrot.lane.b32.xlu0 %v4896_v59, %s2881_s13  ;;  %1850 = vrot.lane.b32.xlu2 %v4892_v41, %s2881_s13  ;;  %v4913_v59 = vld [vmem:[#allocation51_spill] sm:$0xff] }
 0x268   : > { %v1569_v58 = vpop.permute.xlu1 %1568  ;;  %v4914_v41 = vld [vmem:[#allocation35_spill] sm:$0xff] }
 0x269   : > { %1649 = vst.msk [vmem:[#allocation2 + $0x40] sm:$0xf] %vm1632_vm13, %v1569_v58  ;;  %v1845_v25 = vpop.permute.xlu0 %1844  ;;  %v2698_v15 = vld [vmem:[#allocation2 + $0x8] sm:$0xff]  ;;  %v1547_v5 = vpop.permute.xlu2 %1546 }
 0x26a   : > { %1932 = vst.msk [vmem:[#allocation2 + $0x24] sm:$0xf] %vm1922_vm15, %v1845_v25  ;;  %2679 = vmatmul.msk.bf16.gmra.mxu0 %vm2087_vm0, %v2698_v15  ;;  %v1401_v15 = vsel %vm3386_vm6, %v2604_v18, %v1400_v16 }
 0x26b   : > { %1638 = vst.msk [vmem:[#allocation2 + $0x14] sm:$0xf] %vm1632_vm13, %v1547_v5  ;;  %v1666_v5 = vshrl.u32 %v4294_v62, 16 }
 0x26e   : > { %1590 = vrot.lane.b32.xlu1 %v4912_v29, %s2879_s11  ;;  %v1669_v29 = vshll.u32 %v4294_v62, 16 }
 0x26f   : > { %1588 = vrot.lane.b32.xlu0 %v4913_v59, %s2879_s11  ;;  %1578 = vrot.lane.b32.xlu2 %v4914_v41, %s2879_s11 }
 0x270   : > { %v1724_v19 = vpop.permute.xlu1 %1723  ;;  %v1671_v41 = vrot.slane %v1669_v29, 5 }
 0x271   : > { %1803 = vst.msk [vmem:[#allocation2 + $0x44] sm:$0xf] %vm1785_vm14, %v1724_v19  ;;  %v1722_v61 = vpop.permute.xlu0 %1721  ;;  %v2701_v11 = vld [vmem:[#allocation2 + $0x20] sm:$0xff]  ;;  %v1698_v26 = vpop.permute.xlu2 %1697 }
 0x272   : > { %1802 = vst.msk [vmem:[#allocation2 + $0x40] sm:$0xf] %vm1785_vm14, %v1722_v61  ;;  %2682 = vmatmul.msk.bf16.vlgmr.msra.gmra.mxu1 %vm2087_vm0, %v2701_v11  ;;  %v1668_v11 = vrot.slane %v1666_v5, 4 }
 0x273   : > { %1939 = vst.msk [vmem:[#allocation2 + $0x40] sm:$0xf] %vm1922_vm15, %v1859_v28 }
 0x276   : > { %1741 = vrot.lane.b32.xlu1 %v3373_v50, %s2880_s12 }
 0x277   : > { %1731 = vrot.lane.b32.xlu0 %v4884_v13, %s2880_s12  ;;  %1729 = vrot.lane.b32.xlu2 %v4915_v6, %s2880_s12 }
 0x278   : > { %v1545_v56 = vpop.permute.xlu1 %1544 }
 0x279   : > { %1637 = vst.msk [vmem:[#allocation2 + $0x10] sm:$0xf] %vm1632_vm13, %v1545_v56  ;;  %v1861_v45 = vpop.permute.xlu0 %1860  ;;  %v1712_v2 = vpop.permute.xlu2 %1711 }
 0x27a   : > { %1940 = vst.msk [vmem:[#allocation2 + $0x44] sm:$0xf] %vm1922_vm15, %v1861_v45 }
 0x27b   : > { %1790 = vst.msk [vmem:[#allocation2 + $0x10] sm:$0xf] %vm1785_vm14, %v1698_v26  ;;  %v271_v26 = vld [vmem:[%s2963_s5 + $0xd4] sm:$0x1] }
 0x27e   : > { %1868 = vrot.lane.b32.xlu1 %v3655_v14, %s2881_s13  ;;  %v4916_v14 = vld [vmem:[#allocation27_spill] sm:$0xff] }
 0x27f   : > { %1866 = vrot.lane.b32.xlu0 %v3662_v52, %s2881_s13  ;;  %1743 = vrot.lane.b32.xlu2 %v3369_v20, %s2880_s12  ;;  %v4917_v52 = vld [vmem:[#allocation48_spill] sm:$0xff] }
 0x280   : > { %v1559_v50 = vpop.permute.xlu1 %1558 }
 0x281   : > { %1644 = vst.msk [vmem:[#allocation2 + $0x2c] sm:$0xf] %vm1632_vm13, %v1559_v50  ;;  %v1557_v13 = vpop.permute.xlu0 %1556  ;;  %v2705_v24 = vld [vmem:[#allocation2 + $0x40] sm:$0xff]  ;;  %v1847_v55 = vpop.permute.xlu2 %1846 }
 0x282   : > { %1643 = vst.msk [vmem:[#allocation2 + $0x28] sm:$0xf] %vm1632_vm13, %v1557_v13  ;;  %2686 = vmatmul.msk.bf16.vlgmr.msra.gmra.mxu2 %vm2087_vm0, %v2705_v24  ;;  %v1685_v13 = vshll.u32 %v271_v26, 16  ;;  %v1672_v24 = vor.u32 %v1671_v41, %v1668_v11 }
 0x283   : > { %1797 = vst.msk [vmem:[#allocation2 + $0x2c] sm:$0xf] %vm1785_vm14, %v1712_v2 }
 0x286   : > { %1564 = vrot.lane.b32.xlu1 %v4916_v14, %s2879_s11  ;;  %v1687_v14 = vrot.slane %v1685_v13, 5 }
 0x287   : > { %1880 = vrot.lane.b32.xlu0 %v4917_v52, %s2881_s13  ;;  %1878 = vrot.lane.b32.xlu2 %v3706_v39, %s2881_s13 }
 0x288   : > { %v1710_v63 = vpop.permute.xlu1 %1709 }
 0x289   : > { %1796 = vst.msk [vmem:[#allocation2 + $0x28] sm:$0xf] %vm1785_vm14, %v1710_v63  ;;  %v1700_v49 = vpop.permute.xlu0 %1699  ;;  %v1575_v20 = vpop.permute.xlu2 %1574 }
 0x28a   : > { %1791 = vst.msk [vmem:[#allocation2 + $0x14] sm:$0xf] %vm1785_vm14, %v1700_v49 }
 0x28b   : > { %1933 = vst.msk [vmem:[#allocation2 + $0x28] sm:$0xf] %vm1922_vm15, %v1847_v55 }
 0x28c   : > { %1652 = vst.msk [vmem:[#allocation2 + $0x4c] sm:$0xf] %vm1632_vm13, %v1575_v20 }
 0x28e   : > { %1719 = vrot.lane.b32.xlu1 %v4918_v36, %s2880_s12 }
 0x28f   : > { %1717 = vrot.lane.b32.xlu0 %v4919_v7, %s2880_s12  ;;  %1566 = vrot.lane.b32.xlu2 %v4920_v0, %s2879_s11 }
 0x290   : > { %v1837_v3 = vpop.permute.xlu1 %1836 }
 0x291   : > { %1928 = vst.msk [vmem:[#allocation2 + $0x14] sm:$0xf] %vm1922_vm15, %v1837_v3  ;;  %v1835_v10 = vpop.permute.xlu0 %1834  ;;  %v1726_v39 = vpop.permute.xlu2 %1725 }
 0x292   : > { %1927 = vst.msk [vmem:[#allocation2 + $0x10] sm:$0xf] %vm1922_vm15, %v1835_v10 }
 0x296   : > { %1463 = vrot.lane.b32.xlu1 %v4917_v52, %s2878_s10 }
 0x297   : > { %1856 = vrot.lane.b32.xlu0 %v4921_v37, %s2881_s13  ;;  %1854 = vrot.lane.b32.xlu2 %v4922_v53, %s2881_s13  ;;  %v1824_v37 = vrot.slane %v271_v26, 5 }
 0x298   : > { %v1573_v46 = vpop.permute.xlu1 %1572 }
 0x299   : > { %1651 = vst.msk [vmem:[#allocation2 + $0x48] sm:$0xf] %vm1632_vm13, %v1573_v46  ;;  %v1849_v23 = vpop.permute.xlu0 %1848  ;;  %v2699_v38 = vld [vmem:[#allocation2 + $0x10] sm:$0xff]  ;;  %v1740_v30 = vpop.permute.xlu2 %1739 }
 0x29a   : > { %1934 = vst.msk [vmem:[#allocation2 + $0x2c] sm:$0xf] %vm1922_vm15, %v1849_v23  ;;  %2680 = vmatmul.msk.bf16.gmra.mxu0 %vm2087_vm0, %v2699_v38  ;;  %v2605_v23 = vrot.slane %v4294_v62, 9 }
 0x29b   : > { %1804 = vst.msk [vmem:[#allocation2 + $0x48] sm:$0xf] %vm1785_vm14, %v1726_v39 }
 0x29e   : > { %1592 = vrot.lane.b32.xlu1 %v4923_v34, %s2879_s11 }
 0x29f   : > { %1582 = vrot.lane.b32.xlu0 %v4924_v57, %s2879_s11  ;;  %1580 = vrot.lane.b32.xlu2 %v4925_v35, %s2879_s11 }
 0x2a0   : > { %v1587_v40 = vpop.permute.xlu1 %1586 }
 0x2a1   : > { %1658 = vst.msk [vmem:[#allocation2 + $0x64] sm:$0xf] %vm1632_vm13, %v1587_v40  ;;  %v1585_v51 = vpop.permute.xlu0 %1584  ;;  %v2702_v42 = vld [vmem:[#allocation2 + $0x28] sm:$0xff]  ;;  %v1875_v43 = vpop.permute.xlu2 %1874 }
 0x2a2   : > { %1657 = vst.msk [vmem:[#allocation2 + $0x60] sm:$0xf] %vm1632_vm13, %v1585_v51  ;;  %2683 = vmatmul.msk.bf16.gmra.mxu1 %vm2087_vm0, %v2702_v42 }
 0x2a3   : > { %1811 = vst.msk [vmem:[#allocation2 + $0x64] sm:$0xf] %vm1785_vm14, %v1740_v30 }
 0x2a6   : > { %1735 = vrot.lane.b32.xlu1 %v4926_v48, %s2880_s12 }
 0x2a7   : > { %1733 = vrot.lane.b32.xlu0 %v4927_v31, %s2880_s12  ;;  %1594 = vrot.lane.b32.xlu2 %v4928_v60, %s2879_s11 }
 0x2a8   : > { %v1738_v4 = vpop.permute.xlu1 %1737 }
 0x2a9   : > { %1810 = vst.msk [vmem:[#allocation2 + $0x60] sm:$0xf] %vm1785_vm14, %v1738_v4  ;;  %v1728_v12 = vpop.permute.xlu0 %1727  ;;  %v1551_v33 = vpop.permute.xlu2 %1550 }
 0x2aa   : > { %1805 = vst.msk [vmem:[#allocation2 + $0x4c] sm:$0xf] %vm1785_vm14, %v1728_v12 }
 0x2ab   : > { %1947 = vst.msk [vmem:[#allocation2 + $0x60] sm:$0xf] %vm1922_vm15, %v1875_v43 }
 0x2ac   : > { %1640 = vst.msk [vmem:[#allocation2 + $0x1c] sm:$0xf] %vm1632_vm13, %v1551_v33 }
 0x2ae   : > { %1870 = vrot.lane.b32.xlu1 %v4901_v27, %s2881_s13  ;;  %v270_v27 = vld [vmem:[%s2963_s5 + $0xd0] sm:$0xf] }
 0x2af   : > { %1747 = vrot.lane.b32.xlu0 %v4929_v54, %s2880_s12  ;;  %1745 = vrot.lane.b32.xlu2 %v4931_v32, %s2880_s12  ;;  %v1679_v25 = vshrl.u32 %v270_v27, 16  ;;  %v1675_v59 = vshll.u32 %v270_v27, 16  ;;  %v1821_v10 = vrot.slane %v270_v27, 5 }
 0x2b0   : > { %v1865_v1 = vpop.permute.xlu1 %1864 }
 0x2b1   : > { %1942 = vst.msk [vmem:[#allocation2 + $0x4c] sm:$0xf] %vm1922_vm15, %v1865_v1  ;;  %v1863_v8 = vpop.permute.xlu0 %1862  ;;  %v1702_v58 = vpop.permute.xlu2 %1701  ;;  %v1681_v19 = vrot.slane %v1679_v25, 4  ;;  %v1677_v6 = vrot.slane %v1675_v59, 5  ;;  %v1823_v39 = vrot.slane %v1821_v10, 4  ;;  %v1822_v30 = vsel %vm3386_vm6, %v2605_v23, %v1821_v10 }
 0x2b2   : > { %1941 = vst.msk [vmem:[#allocation2 + $0x48] sm:$0xf] %vm1922_vm15, %v1863_v8 }
 0x2b3   : > { %v1682_v50 = vor.u32 %v1681_v19, %v1677_v6  ;;  %v1825_v53 = vsel %vm3386_vm6, %v1823_v39, %v1824_v37 }
 0x2b5   : > { %v1683_v55 = vrot.slane %v1682_v50, 4 }
 0x2b6   : > { %1884 = vrot.lane.b32.xlu1 %v1404_v21, %s2881_s13 }
 0x2b7   : > { %1882 = vrot.lane.b32.xlu0 %v1401_v15, %s2881_s13  ;;  %1872 = vrot.lane.b32.xlu2 %v3687_v9, %s2881_s13  ;;  %v1673_v9 = vrot.slane %v1672_v24, 4  ;;  %v1688_v36 = vsel %vm2999_vm2, %v1683_v55, %v1687_v14 }
 0x2b8   : > { %v1549_v61 = vpop.permute.xlu1 %1548 }
 0x2b9   : > { %1639 = vst.msk [vmem:[#allocation2 + $0x18] sm:$0xf] %vm1632_vm13, %v1549_v61  ;;  %v1877_v56 = vpop.permute.xlu0 %1876  ;;  %v2706_v45 = vld [vmem:[#allocation2 + $0x48] sm:$0xff]  ;;  %v1716_v2 = vpop.permute.xlu2 %1715  ;;  %v1678_v3 = vsel %vm2999_vm2, %v1673_v9, %v1677_v6  ;;  %vm2331_vm2 = vcmask 57344  }
 0x2ba   : > { %1948 = vst.msk [vmem:[#allocation2 + $0x64] sm:$0xf] %vm1922_vm15, %v1877_v56  ;;  %2687 = vmatmul.msk.bf16.gmra.mxu2 %vm2087_vm0, %v2706_v45 }
 0x2bb   : > { %1792 = vst.msk [vmem:[#allocation2 + $0x18] sm:$0xf] %vm1785_vm14, %v1702_v58 }
 0x2be   : > { %1596 = vrot.lane.b32.xlu1 %v4294_v62, %s2879_s11 }
 0x2bf   : > { %1467 = vrot.lane.b32.xlu0 %v1404_v21, %s2878_s10  ;;  %1465 = vrot.lane.b32.xlu2 %v1401_v15, %s2878_s10  ;;  %s2456_s10 = scalar_lea.hbm %s4669_s3, %s2928_s19 }
 0x2c0   : > { %v1563_v52 = vpop.permute.xlu1 %1562  ;;  %s4608_s22 = sshll.u32 %s2456_s10, 4  ;;  %s2461_s22 = int_to_ptr.hbm [resolvable:$true] %s4608_s22 }
 0x2c1   : > { %1646 = vst.msk [vmem:[#allocation2 + $0x34] sm:$0xf] %vm1632_vm13, %v1563_v52  ;;  %v1561_v63 = vpop.permute.xlu0 %1560  ;;  %v2709_v49 = vld [vmem:[#allocation2 + $0x60] sm:$0xff]  ;;  %v1851_v7 = vpop.permute.xlu2 %1850  ;;  %s2792_s30 = sshra.s32 %s2461_s22, 4  ;;  %s2793_s30 = int_to_ptr.hbm [resolvable:$true] %s2792_s30 }
 0x2c2   : > { %1645 = vst.msk [vmem:[#allocation2 + $0x30] sm:$0xf] %vm1632_vm13, %v1561_v63  ;;  %2690 = vmatmul.msk.bf16.vlgmr.msra.gmra.mxu3 %vm2087_vm0, %v2709_v49  ;;  %s2794_s5 = scalar_lea.hbm %s2793_s30, 1  ;;  %p2799_p0 = scmp.lt.s32.totalorder %s2793_s30, %s4669_s3 }
 0x2c3   : > { %1799 = vst.msk [vmem:[#allocation2 + $0x34] sm:$0xf] %vm1785_vm14, %v1716_v2  ;;  %p2795_p11 = scmp.ne.s32.totalorder %s2793_s30, %s2794_s5  ;;  %p2800_p1 = scmp.lt.s32.totalorder %s2798_s8, %s2794_s5 }
 0x2c5   : > { %p2796_p12 = pnand %p2795_p11, %p2945_p5  ;;  %p2801_p2 = por %p2800_p1, %p2799_p0 }
 0x2c6   : > { %1751 = vrot.lane.b32.xlu1 %v1688_v36, %s2880_s12 }
 0x2c7   : > { %1749 = vrot.lane.b32.xlu0 %v1678_v3, %s2880_s12  ;;  %1598 = vrot.lane.b32.xlu2 %v270_v27, %s2879_s11  ;;  %p2797_p13 = pneg %p2796_p12 }
 0x2c8   : > { %v1714_v0 = vpop.permute.xlu1 %1713 }
 0x2c9   : > { %1798 = vst.msk [vmem:[#allocation2 + $0x30] sm:$0xf] %vm1785_vm14, %v1714_v0  ;;  %v1704_v46 = vpop.permute.xlu0 %1703  ;;  %v1579_v38 = vpop.permute.xlu2 %1578  ;;  %p2802_p3 = pnand %p2801_p2, %p2797_p13 }
 0x2ca   : > { %1793 = vst.msk [vmem:[#allocation2 + $0x1c] sm:$0xf] %vm1785_vm14, %v1704_v46 }
 0x2cb   : > { %1935 = vst.msk [vmem:[#allocation2 + $0x30] sm:$0xf] %vm1922_vm15, %v1851_v7 }
 0x2cc   : > { %1654 = vst.msk [vmem:[#allocation2 + $0x54] sm:$0xf] %vm1632_vm13, %v1579_v38 }
 0x2cf   : > { %1888 = vrot.lane.b32.xlu0 %v1825_v53, %s2881_s13  ;;  %v2149_v57 = vpop.f32.mrf.mxu0  ;;  %1886 = vrot.lane.b32.xlu2 %v1822_v30, %s2881_s13  ;;  %s2469_s13 = scalar_lea.hbm %s4670_s4, %s2928_s19  ;;  %s2441_s19 = scalar_lea.sflag [#allocation4], %s4595_s27 }
 0x2d0   : > { %v1841_v34 = vpop.permute.xlu1 %1840  ;;  %2230 = vst.msk [vmem:[%s4342_s7] sm:$0xff] %vm2229_vm1, %v2149_v57  ;;  %v2333_v42 = vmul.f32 %v2149_v57, %v2149_v57  ;;  %v2262_v48 = vsel %vm2229_vm1, %v2149_v57, 0.0  ;;  %s4613_s29 = sshll.u32 %s2469_s13, 4  ;;  %s2474_s29 = int_to_ptr.hbm [resolvable:$true] %s4613_s29 }
 0x2d1   : > { %1930 = vst.msk [vmem:[#allocation2 + $0x1c] sm:$0xf] %vm1922_vm15, %v1841_v34  ;;  %v1839_v40 = vpop.permute.xlu0 %1838  ;;  %v1730_v51 = vpop.permute.xlu2 %1729 }
 0x2d2   : > { %1929 = vst.msk [vmem:[#allocation2 + $0x18] sm:$0xf] %vm1922_vm15, %v1839_v40  ;;  %v2365_v33 = vsel %vm2229_vm1, %v2333_v42, 0.0 }
 0x2d7   : > { %v2151_v43 = vpop.f32.mrf.mxu0 }
 0x2d8   : > { %v1577_v35 = vpop.permute.xlu1 %1576  ;;  %v2263_v4 = vsel %vm2229_vm1, %v2151_v43, 0.0  ;;  %v2334_v12 = vmul.f32 %v2151_v43, %v2151_v43  ;;  %2231 = vst.msk [vmem:[%s4342_s7 + $0x8] sm:$0xff] %vm2229_vm1, %v2151_v43 }
 0x2d9   : > { %1653 = vst.msk [vmem:[#allocation2 + $0x50] sm:$0xf] %vm1632_vm13, %v1577_v35  ;;  %v1853_v31 = vpop.permute.xlu0 %1852  ;;  %v2700_v60 = vld [vmem:[#allocation2 + $0x18] sm:$0xff]  ;;  %v2264_v16 = vadd.f32 %v2263_v4, %v2262_v48  ;;  %v1744_v22 = vpop.permute.xlu2 %1743 }
 0x2da   : > { %1936 = vst.msk [vmem:[#allocation2 + $0x34] sm:$0xf] %vm1922_vm15, %v1853_v31  ;;  %v2366_v54 = vsel %vm2229_vm1, %v2334_v12, 0.0  ;;  %2681 = vmatmul.msk.bf16.gmra.mxu0 %vm2087_vm0, %v2700_v60 }
 0x2db   : > { %v2367_v44 = vadd.f32 %v2366_v54, %v2365_v33  ;;  %1806 = vst.msk [vmem:[#allocation2 + $0x50] sm:$0xf] %vm1785_vm14, %v1730_v51 }
 0x2e0   : > { %v1591_v47 = vpop.permute.xlu1 %1590 }
 0x2e1   : > { %1660 = vst.msk [vmem:[#allocation2 + $0x6c] sm:$0xf] %vm1632_vm13, %v1591_v47  ;;  %v1589_v1 = vpop.permute.xlu0 %1588  ;;  %v2703_v17 = vld [vmem:[#allocation2 + $0x30] sm:$0xff]  ;;  %v1879_v18 = vpop.permute.xlu2 %1878 }
 0x2e2   : > { %1659 = vst.msk [vmem:[#allocation2 + $0x68] sm:$0xf] %vm1632_vm13, %v1589_v1  ;;  %2684 = vmatmul.msk.bf16.gmra.mxu1 %vm2087_vm0, %v2703_v17 }
 0x2e3   : > { %1813 = vst.msk [vmem:[#allocation2 + $0x6c] sm:$0xf] %vm1785_vm14, %v1744_v22 }
 0x2e7   : > { %v2154_v32 = vpop.f32.mrf.mxu0 }
 0x2e8   : > { %v1742_v8 = vpop.permute.xlu1 %1741  ;;  %v2265_v27 = vsel %vm2229_vm1, %v2154_v32, 0.0  ;;  %v2335_v28 = vmul.f32 %v2154_v32, %v2154_v32  ;;  %2232 = vst.msk [vmem:[%s4342_s7 + $0x10] sm:$0xff] %vm2229_vm1, %v2154_v32 }
 0x2e9   : > { %1812 = vst.msk [vmem:[#allocation2 + $0x68] sm:$0xf] %vm1785_vm14, %v1742_v8  ;;  %v1732_v62 = vpop.permute.xlu0 %1731  ;;  %v2266_v21 = vadd.f32 %v2265_v27, %v2264_v16  ;;  %v1567_v25 = vpop.permute.xlu2 %1566 }
 0x2ea   : > { %1807 = vst.msk [vmem:[#allocation2 + $0x54] sm:$0xf] %vm1785_vm14, %v1732_v62  ;;  %v2368_v58 = vsel %vm2229_vm1, %v2335_v28, 0.0 }
 0x2eb   : > { %v2369_v15 = vadd.f32 %v2368_v58, %v2367_v44  ;;  %1949 = vst.msk [vmem:[#allocation2 + $0x68] sm:$0xf] %vm1922_vm15, %v1879_v18 }
 0x2ec   : > { %1648 = vst.msk [vmem:[#allocation2 + $0x3c] sm:$0xf] %vm1632_vm13, %v1567_v25 }
 0x2ef   : > { %v4371_v29 = vpop.f32.mrf.mxu1  ;;  %v2156_v19 = vpop.f32.mrf.mxu0 }
 0x2f0   : > { %v1869_v5 = vpop.permute.xlu1 %1868  ;;  %2238 = vst.msk [vmem:[%s4342_s7 + $0x40] sm:$0xff] %vm2229_vm1, %v4371_v29  ;;  %v2267_v61 = vsel %vm2229_vm1, %v2156_v19, 0.0  ;;  %v2336_v11 = vmul.f32 %v2156_v19, %v2156_v19 }
 0x2f1   : > { %1944 = vst.msk [vmem:[#allocation2 + $0x54] sm:$0xf] %vm1922_vm15, %v1869_v5  ;;  %v1867_v59 = vpop.permute.xlu0 %1866  ;;  %v2268_v41 = vadd.f32 %v2267_v61, %v2266_v21  ;;  %v1855_v26 = vpop.permute.xlu2 %1854 }
 0x2f2   : > { %1943 = vst.msk [vmem:[#allocation2 + $0x50] sm:$0xf] %vm1922_vm15, %v1867_v59  ;;  %v2370_v56 = vsel %vm2229_vm1, %v2336_v11, 0.0 }
 0x2f3   : > { %2233 = vst.msk [vmem:[%s4342_s7 + $0x18] sm:$0xff] %vm2229_vm1, %v2156_v19  ;;  %v2371_v45 = vadd.f32 %v2370_v56, %v2369_v15  ;;  %v2341_v56 = vmul.f32 %v4371_v29, %v4371_v29 }
 0x2f7   : > { %v4382_v2 = vpop.f32.mrf.mxu1 }
 0x2f8   : > { %v1565_v6 = vpop.permute.xlu1 %1564  ;;  %2239 = vst.msk [vmem:[%s4342_s7 + $0x48] sm:$0xff] %vm2229_vm1, %v4382_v2 }
 0x2f9   : > { %1647 = vst.msk [vmem:[#allocation2 + $0x38] sm:$0xf] %vm1632_vm13, %v1565_v6  ;;  %v1881_v50 = vpop.permute.xlu0 %1880  ;;  %v2707_v13 = vld [vmem:[#allocation2 + $0x50] sm:$0xff]  ;;  %v1581_v24 = vpop.permute.xlu2 %1580 }
 0x2fa   : > { %1950 = vst.msk [vmem:[#allocation2 + $0x6c] sm:$0xf] %vm1922_vm15, %v1881_v50  ;;  %2688 = vmatmul.msk.bf16.gmra.mxu2 %vm2087_vm0, %v2707_v13  ;;  %v2277_v13 = vsel %vm2229_vm1, %v4371_v29, 0.0 }
 0x2fb   : > { %1655 = vst.msk [vmem:[#allocation2 + $0x58] sm:$0xf] %vm1632_vm13, %v1581_v24  ;;  %v2342_v24 = vmul.f32 %v4382_v2, %v4382_v2 }
 0x2fd   : > { %v2382_v29 = vsel %vm2229_vm1, %v2342_v24, 0.0 }
 0x300   : > { %v1720_v55 = vpop.permute.xlu1 %1719 }
 0x301   : > { %1801 = vst.msk [vmem:[#allocation2 + $0x3c] sm:$0xf] %vm1785_vm14, %v1720_v55  ;;  %v1718_v14 = vpop.permute.xlu0 %1717  ;;  %v2710_v52 = vld [vmem:[#allocation2 + $0x68] sm:$0xff]  ;;  %v1595_v9 = vpop.permute.xlu2 %1594 }
 0x302   : > { %1800 = vst.msk [vmem:[#allocation2 + $0x38] sm:$0xf] %vm1785_vm14, %v1718_v14  ;;  %2691 = vmatmul.msk.bf16.gmra.mxu3 %vm2087_vm0, %v2710_v52 }
 0x303   : > { %1937 = vst.msk [vmem:[#allocation2 + $0x38] sm:$0xf] %vm1922_vm15, %v1855_v26 }
 0x305   : > { %v4395_v63 = vpop.f32.mrf.mxu2 }
 0x306   : > { %2246 = vst.msk [vmem:[%s4342_s7 + $0x80] sm:$0xff] %vm2229_vm1, %v4395_v63 }
 0x308   : > { %v1464_v49 = vpop.permute.xlu1 %1463 }
 0x309   : > { %1531 = vst.msk [vmem:[#allocation2 + $0x74] sm:$0xf] %vm1501_vm11, %v1464_v49  ;;  %v1857_v20 = vpop.permute.xlu0 %1856  ;;  %v1746_v36 = vpop.permute.xlu2 %1745  ;;  %v2279_v49 = vsel %vm2229_vm1, %v4382_v2, 0.0 }
 0x30a   : > { %1938 = vst.msk [vmem:[#allocation2 + $0x3c] sm:$0xf] %vm1922_vm15, %v1857_v20 }
 0x30b   : > { %1662 = vst.msk [vmem:[#allocation2 + $0x74] sm:$0xf] %vm1632_vm13, %v1595_v9  ;;  %v2380_v9 = vsel %vm2229_vm1, %v2341_v56, 0.0 }
 0x30d   : > { %v4403_v7 = vpop.f32.mrf.mxu2 }
 0x30e   : > { %2247 = vst.msk [vmem:[%s4342_s7 + $0x88] sm:$0xff] %vm2229_vm1, %v4403_v7 }
 0x310   : > { %v1593_v3 = vpop.permute.xlu1 %1592 }
 0x311   : > { %1661 = vst.msk [vmem:[#allocation2 + $0x70] sm:$0xf] %vm1632_vm13, %v1593_v3  ;;  %v1583_v10 = vpop.permute.xlu0 %1582  ;;  %v2704_v0 = vld [vmem:[#allocation2 + $0x38] sm:$0xff]  ;;  %v1873_v39 = vpop.permute.xlu2 %1872 }
 0x312   : > { %1656 = vst.msk [vmem:[#allocation2 + $0x5c] sm:$0xf] %vm1632_vm13, %v1583_v10  ;;  %2685 = vmatmul.msk.bf16.gmra.mxu1 %vm2087_vm0, %v2704_v0 }
 0x313   : > { %1814 = vst.msk [vmem:[#allocation2 + $0x70] sm:$0xf] %vm1785_vm14, %v1746_v36 }
 0x317   : > { %v2159_v46 = vpop.f32.mrf.mxu0 }
 0x318   : > { %v1736_v37 = vpop.permute.xlu1 %1735  ;;  %v2269_v38 = vsel %vm2229_vm1, %v2159_v46, 0.0  ;;  %v2337_v53 = vmul.f32 %v2159_v46, %v2159_v46  ;;  %2234 = vst.msk [vmem:[%s4342_s7 + $0x20] sm:$0xff] %vm2229_vm1, %v2159_v46 }
 0x319   : > { %1809 = vst.msk [vmem:[#allocation2 + $0x5c] sm:$0xf] %vm1785_vm14, %v1736_v37  ;;  %v1734_v23 = vpop.permute.xlu0 %1733  ;;  %v2270_v30 = vadd.f32 %v2269_v38, %v2268_v41  ;;  %v1466_v57 = vpop.permute.xlu2 %1465 }
 0x31a   : > { %1808 = vst.msk [vmem:[#allocation2 + $0x58] sm:$0xf] %vm1785_vm14, %v1734_v23  ;;  %v2372_v34 = vsel %vm2229_vm1, %v2337_v53, 0.0 }
 0x31b   : > { %v2373_v40 = vadd.f32 %v2372_v34, %v2371_v45  ;;  %1946 = vst.msk [vmem:[#allocation2 + $0x5c] sm:$0xf] %vm1922_vm15, %v1873_v39 }
 0x31c   : > { %1532 = vst.msk [vmem:[#allocation2 + $0x78] sm:$0xf] %vm1501_vm11, %v1466_v57 }
 0x31f   : > { %v4420_v42 = vpop.f32.mrf.mxu1  ;;  %v2161_v43 = vpop.f32.mrf.mxu0 }
 0x320   : > { %v1871_v51 = vpop.permute.xlu1 %1870  ;;  %2240 = vst.msk [vmem:[%s4342_s7 + $0x50] sm:$0xff] %vm2229_vm1, %v4420_v42  ;;  %v2271_v48 = vsel %vm2229_vm1, %v2161_v43, 0.0  ;;  %v2338_v31 = vmul.f32 %v2161_v43, %v2161_v43  ;;  %v2343_v20 = vmul.f32 %v4420_v42, %v4420_v42  ;;  %v2281_v10 = vsel %vm2229_vm1, %v4420_v42, 0.0 }
 0x321   : > { %1945 = vst.msk [vmem:[#allocation2 + $0x58] sm:$0xf] %vm1922_vm15, %v1871_v51  ;;  %v1748_v35 = vpop.permute.xlu0 %1747  ;;  %v2272_v4 = vadd.f32 %v2271_v48, %v2270_v30  ;;  %v1599_v44 = vpop.permute.xlu2 %1598 }
 0x322   : > { %1815 = vst.msk [vmem:[#allocation2 + $0x74] sm:$0xf] %vm1785_vm14, %v1748_v35  ;;  %v2374_v12 = vsel %vm2229_vm1, %v2338_v31, 0.0  ;;  %v2384_v23 = vsel %vm2229_vm1, %v2343_v20, 0.0 }
 0x323   : > { %2235 = vst.msk [vmem:[%s4342_s7 + $0x28] sm:$0xff] %vm2229_vm1, %v2161_v43  ;;  %v2375_v60 = vadd.f32 %v2374_v12, %v2373_v40 }
 0x327   : > { %v4431_v33 = vpop.f32.mrf.mxu1 }
 0x328   : > { %v1885_v16 = vpop.permute.xlu1 %1884  ;;  %v2708_v54 = vld [vmem:[#allocation2 + $0x58] sm:$0xff]  ;;  %2241 = vst.msk [vmem:[%s4342_s7 + $0x58] sm:$0xff] %vm2229_vm1, %v4431_v33  ;;  %v2344_v0 = vmul.f32 %v4431_v33, %v4431_v33  ;;  %v2283_v2 = vsel %vm2229_vm1, %v4431_v33, 0.0 }
 0x329   : > { %1952 = vst.msk [vmem:[#allocation2 + $0x74] sm:$0xf] %vm1922_vm15, %v1885_v16  ;;  %v1883_v22 = vpop.permute.xlu0 %1882  ;;  %2689 = vmatmul.msk.bf16.gmra.mxu2 %vm2087_vm0, %v2708_v54  ;;  %v1887_v8 = vpop.permute.xlu2 %1886 }
 0x32a   : > { %1951 = vst.msk [vmem:[#allocation2 + $0x70] sm:$0xf] %vm1922_vm15, %v1883_v22  ;;  %v2386_v34 = vsel %vm2229_vm1, %v2344_v0, 0.0 }
 0x330   : > { %v1597_v47 = vpop.permute.xlu1 %1596 }
 0x331   : > { %v1468_v1 = vpop.permute.xlu0 %1467  ;;  %1663 = vst.msk [vmem:[#allocation2 + $0x78] sm:$0xf] %vm1632_vm13, %v1597_v47  ;;  %v2711_v17 = vld [vmem:[#allocation2 + $0x70] sm:$0xff] }
 0x332   : > { %1533 = vst.msk [vmem:[#allocation2 + $0x7c] sm:$0xf] %vm1501_vm11, %v1468_v1  ;;  %2692 = vmatmul.msk.bf16.gmra.mxu3 %vm2087_vm0, %v2711_v17 }
 0x333   : > { %1664 = vst.msk [vmem:[#allocation2 + $0x7c] sm:$0xf] %vm1632_vm13, %v1599_v44 }
 0x338   : > { %v1752_v18 = vpop.permute.xlu1 %1751 }
 0x339   : > { %v1750_v32 = vpop.permute.xlu0 %1749  ;;  %1817 = vst.msk [vmem:[#allocation2 + $0x7c] sm:$0xf] %vm1785_vm14, %v1752_v18 }
 0x33a   : > { %1816 = vst.msk [vmem:[#allocation2 + $0x78] sm:$0xf] %vm1785_vm14, %v1750_v32 }
 0x33b   : > { %1953 = vst.msk [vmem:[#allocation2 + $0x78] sm:$0xf] %vm1922_vm15, %v1887_v8  ;;  %v2349_v8 = vmul.f32 %v4395_v63, %v4395_v63 }
 0x33d   : > { %v4446_v62 = vpop.f32.mrf.mxu2 }
 0x33e   : > { %2248 = vst.msk [vmem:[%s4342_s7 + $0x90] sm:$0xff] %vm2229_vm1, %v4446_v62  ;;  %v2351_v56 = vmul.f32 %v4446_v62, %v4446_v62 }
 0x341   : > { %v1889_v27 = vpop.permute.xlu0 %1888 }
 0x342   : > { %1954 = vst.msk [vmem:[#allocation2 + $0x7c] sm:$0xf] %vm1922_vm15, %v1889_v27 }
 0x345   : > { %v4452_v28 = vpop.f32.mrf.mxu2  ;;  %v4454_v21 = vpop.f32.mrf.mxu3 }
 0x346   : > { %2249 = vst.msk [vmem:[%s4342_s7 + $0x98] sm:$0xff] %vm2229_vm1, %v4452_v28 }
 0x347   : > { %2254 = vst.msk [vmem:[%s4342_s7 + $0xc0] sm:$0xff] %vm2229_vm1, %v4454_v21 }
 0x349   : > { %v2712_v58 = vld [vmem:[#allocation2 + $0x78] sm:$0xff] }
 0x34a   : > { %2693 = vmatmul.msk.bf16.gmra.mxu3 %vm2087_vm0, %v2712_v58 }
 0x34d   : > { %v4463_v25 = vpop.f32.mrf.mxu3 }
 0x34e   : > { %2255 = vst.msk [vmem:[%s4342_s7 + $0xc8] sm:$0xff] %vm2229_vm1, %v4463_v25 }
 0x357   : > { %v2164_v15 = vpop.f32.mrf.mxu0 }
 0x358   : > { %2236 = vst.msk [vmem:[%s4342_s7 + $0x30] sm:$0xff] %vm2229_vm1, %v2164_v15  ;;  %v2273_v5 = vsel %vm2229_vm1, %v2164_v15, 0.0  ;;  %v2339_v59 = vmul.f32 %v2164_v15, %v2164_v15 }
 0x359   : > { %v2274_v19 = vadd.f32 %v2273_v5, %v2272_v4  ;;  %v2293_v5 = vsel %vm2229_vm1, %v4395_v63, 0.0  ;;  %v2297_v63 = vsel %vm2229_vm1, %v4446_v62, 0.0 }
 0x35a   : > { %v2376_v61 = vsel %vm2229_vm1, %v2339_v59, 0.0  ;;  %v2350_v59 = vmul.f32 %v4403_v7, %v4403_v7 }
 0x35b   : > { %v2377_v11 = vadd.f32 %v2376_v61, %v2375_v60 }
 0x35f   : > { %v2166_v41 = vpop.f32.mrf.mxu0  ;;  %v2179_v26 = vpop.f32.mrf.mxu1 }
 0x360   : > { %2237 = vst.msk [vmem:[%s4342_s7 + $0x38] sm:$0xff] %vm2229_vm1, %v2166_v41  ;;  %v2275_v45 = vsel %vm2229_vm1, %v2166_v41, 0.0  ;;  %v2340_v6 = vmul.f32 %v2166_v41, %v2166_v41  ;;  %v2345_v38 = vmul.f32 %v2179_v26, %v2179_v26  ;;  %v2285_v57 = vsel %vm2229_vm1, %v2179_v26, 0.0 }
 0x361   : > { %v2276_v50 = vadd.f32 %v2275_v45, %v2274_v19  ;;  %2242 = vst.msk [vmem:[%s4342_s7 + $0x60] sm:$0xff] %vm2229_vm1, %v2179_v26  ;;  %v2396_v41 = vsel %vm2229_vm1, %v2349_v8, 0.0  ;;  %v2295_v26 = vsel %vm2229_vm1, %v4403_v7, 0.0  ;;  %v2299_v7 = vsel %vm2229_vm1, %v4452_v28, 0.0 }
 0x362   : > { %v2378_v55 = vsel %vm2229_vm1, %v2340_v6, 0.0  ;;  %v2388_v35 = vsel %vm2229_vm1, %v2345_v38, 0.0 }
 0x363   : > { %v2278_v14 = vadd.f32 %v2277_v13, %v2276_v50  ;;  %v2379_v52 = vadd.f32 %v2378_v55, %v2377_v11  ;;  %v2398_v50 = vsel %vm2229_vm1, %v2350_v59, 0.0  ;;  %v2352_v13 = vmul.f32 %v4452_v28, %v4452_v28 }
 0x365   : > { %v2280_v36 = vadd.f32 %v2279_v49, %v2278_v14  ;;  %v2381_v3 = vadd.f32 %v2380_v9, %v2379_v52  ;;  %v2400_v14 = vsel %vm2229_vm1, %v2351_v56, 0.0  ;;  %v2402_v20 = vsel %vm2229_vm1, %v2352_v13, 0.0 }
 0x367   : > { %v2383_v39 = vadd.f32 %v2382_v29, %v2381_v3  ;;  %v2282_v37 = vadd.f32 %v2281_v10, %v2280_v36  ;;  %v2181_v46 = vpop.f32.mrf.mxu1 }
 0x368   : > { %2243 = vst.msk [vmem:[%s4342_s7 + $0x68] sm:$0xff] %vm2229_vm1, %v2181_v46  ;;  %v2346_v40 = vmul.f32 %v2181_v46, %v2181_v46  ;;  %v2287_v43 = vsel %vm2229_vm1, %v2181_v46, 0.0 }
 0x369   : > { %v2284_v53 = vadd.f32 %v2283_v2, %v2282_v37  ;;  %v2385_v30 = vadd.f32 %v2384_v23, %v2383_v39 }
 0x36a   : > { %v2390_v4 = vsel %vm2229_vm1, %v2346_v40, 0.0 }
 0x36b   : > { %v2286_v51 = vadd.f32 %v2285_v57, %v2284_v53  ;;  %v2387_v42 = vadd.f32 %v2386_v34, %v2385_v30  ;;  %v2357_v57 = vmul.f32 %v4454_v21, %v4454_v21 }
 0x36d   : > { %v2389_v48 = vadd.f32 %v2388_v35, %v2387_v42  ;;  %v2288_v31 = vadd.f32 %v2287_v43, %v2286_v51 }
 0x36f   : > { %v2391_v12 = vadd.f32 %v2390_v4, %v2389_v48  ;;  %v2309_v48 = vsel %vm2229_vm1, %v4454_v21, 0.0 }
 0x37d   : > { %v2199_v60 = vpop.f32.mrf.mxu2 }
 0x37e   : > { %2250 = vst.msk [vmem:[%s4342_s7 + $0xa0] sm:$0xff] %vm2229_vm1, %v2199_v60  ;;  %v2353_v52 = vmul.f32 %v2199_v60, %v2199_v60  ;;  %v2301_v36 = vsel %vm2229_vm1, %v2199_v60, 0.0 }
 0x380   : > { %v2404_v29 = vsel %vm2229_vm1, %v2353_v52, 0.0 }
 0x385   : > { %v2201_v16 = vpop.f32.mrf.mxu2  ;;  %v4506_v33 = vpop.f32.mrf.mxu3 }
 0x386   : > { %2251 = vst.msk [vmem:[%s4342_s7 + $0xa8] sm:$0xff] %vm2229_vm1, %v2201_v16  ;;  %v2354_v39 = vmul.f32 %v2201_v16, %v2201_v16  ;;  %v2303_v28 = vsel %vm2229_vm1, %v2201_v16, 0.0  ;;  %v2412_v16 = vsel %vm2229_vm1, %v2357_v57, 0.0 }
 0x387   : > { %2256 = vst.msk [vmem:[%s4342_s7 + $0xd0] sm:$0xff] %vm2229_vm1, %v4506_v33 }
 0x388   : > { %v2406_v2 = vsel %vm2229_vm1, %v2354_v39, 0.0 }
 0x38d   : > { %v4513_v54 = vpop.f32.mrf.mxu3 }
 0x38e   : > { %2257 = vst.msk [vmem:[%s4342_s7 + $0xd8] sm:$0xff] %vm2229_vm1, %v4513_v54 }
 0x38f   : > { %v2184_v22 = vpop.f32.mrf.mxu1 }
 0x390   : > { %2244 = vst.msk [vmem:[%s4342_s7 + $0x70] sm:$0xff] %vm2229_vm1, %v2184_v22  ;;  %v2347_v44 = vmul.f32 %v2184_v22, %v2184_v22  ;;  %v2289_v47 = vsel %vm2229_vm1, %v2184_v22, 0.0  ;;  %v2311_v22 = vsel %vm2229_vm1, %v4463_v25, 0.0 }
 0x391   : > { %v2290_v17 = vadd.f32 %v2289_v47, %v2288_v31  ;;  %v2358_v31 = vmul.f32 %v4463_v25, %v4463_v25  ;;  %v2360_v25 = vmul.f32 %v4513_v54, %v4513_v54 }
 0x392   : > { %v2392_v1 = vsel %vm2229_vm1, %v2347_v44, 0.0  ;;  %v2359_v44 = vmul.f32 %v4506_v33, %v4506_v33 }
 0x393   : > { %v2393_v58 = vadd.f32 %v2392_v1, %v2391_v12  ;;  %v2414_v1 = vsel %vm2229_vm1, %v2358_v31, 0.0  ;;  %v2418_v59 = vsel %vm2229_vm1, %v2360_v25, 0.0 }
 0x397   : > { %v2186_v18 = vpop.f32.mrf.mxu1 }
 0x398   : > { %2245 = vst.msk [vmem:[%s4342_s7 + $0x78] sm:$0xff] %vm2229_vm1, %v2186_v18  ;;  %v2291_v32 = vsel %vm2229_vm1, %v2186_v18, 0.0  ;;  %v2348_v27 = vmul.f32 %v2186_v18, %v2186_v18 }
 0x399   : > { %v2292_v15 = vadd.f32 %v2291_v32, %v2290_v17  ;;  %v2313_v17 = vsel %vm2229_vm1, %v4506_v33, 0.0  ;;  %v2416_v32 = vsel %vm2229_vm1, %v2359_v44, 0.0 }
 0x39a   : > { %v2394_v19 = vsel %vm2229_vm1, %v2348_v27, 0.0 }
 0x39b   : > { %v2294_v61 = vadd.f32 %v2293_v5, %v2292_v15  ;;  %v2395_v11 = vadd.f32 %v2394_v19, %v2393_v58  ;;  %v2315_v15 = vsel %vm2229_vm1, %v4513_v54, 0.0 }
 0x39d   : > { %v2296_v45 = vadd.f32 %v2295_v26, %v2294_v61  ;;  %v2397_v6 = vadd.f32 %v2396_v41, %v2395_v11 }
 0x39f   : > { %v2298_v24 = vadd.f32 %v2297_v63, %v2296_v45  ;;  %v2399_v55 = vadd.f32 %v2398_v50, %v2397_v6 }
 0x3a1   : > { %v2401_v9 = vadd.f32 %v2400_v14, %v2399_v55  ;;  %v2300_v49 = vadd.f32 %v2299_v7, %v2298_v24 }
 0x3a3   : > { %v2302_v3 = vadd.f32 %v2301_v36, %v2300_v49  ;;  %v2403_v62 = vadd.f32 %v2402_v20, %v2401_v9 }
 0x3a5   : > { %v2405_v10 = vadd.f32 %v2404_v29, %v2403_v62  ;;  %v2304_v23 = vadd.f32 %v2303_v28, %v2302_v3 }
 0x3a7   : > { %v2407_v30 = vadd.f32 %v2406_v2, %v2405_v10 }
 0x3ac   : > { %v2204_v0 = vpop.f32.mrf.mxu2 }
 0x3ad   : > { %2252 = vst.msk [vmem:[%s4342_s7 + $0xb0] sm:$0xff] %vm2229_vm1, %v2204_v0  ;;  %v2355_v37 = vmul.f32 %v2204_v0, %v2204_v0  ;;  %v2305_v46 = vsel %vm2229_vm1, %v2204_v0, 0.0 }
 0x3ae   : > { %v2306_v53 = vadd.f32 %v2305_v46, %v2304_v23 }
 0x3af   : > { %v2408_v38 = vsel %vm2229_vm1, %v2355_v37, 0.0 }
 0x3b0   : > { %v2409_v42 = vadd.f32 %v2408_v38, %v2407_v30 }
 0x3b4   : > { %v2206_v34 = vpop.f32.mrf.mxu2 }
 0x3b5   : > { %2253 = vst.msk [vmem:[%s4342_s7 + $0xb8] sm:$0xff] %vm2229_vm1, %v2206_v34  ;;  %v2307_v40 = vsel %vm2229_vm1, %v2206_v34, 0.0  ;;  %v2356_v51 = vmul.f32 %v2206_v34, %v2206_v34  ;;  %v2219_v43 = vpop.f32.mrf.mxu3 }
 0x3b6   : > { %v2308_v35 = vadd.f32 %v2307_v40, %v2306_v53  ;;  %2258 = vst.msk [vmem:[%s4342_s7 + $0xe0] sm:$0xff] %vm2229_vm1, %v2219_v43  ;;  %v2361_v19 = vmul.f32 %v2219_v43, %v2219_v43  ;;  %v2317_v11 = vsel %vm2229_vm1, %v2219_v43, 0.0 }
 0x3b7   : > { %v2410_v4 = vsel %vm2229_vm1, %v2356_v51, 0.0 }
 0x3b8   : > { %v2310_v12 = vadd.f32 %v2309_v48, %v2308_v35  ;;  %v2411_v60 = vadd.f32 %v2410_v4, %v2409_v42  ;;  %v2420_v26 = vsel %vm2229_vm1, %v2361_v19, 0.0 }
 0x3ba   : > { %v2312_v47 = vadd.f32 %v2311_v22, %v2310_v12  ;;  %v2413_v21 = vadd.f32 %v2412_v16, %v2411_v60 }
 0x3bc   : > { %v2415_v18 = vadd.f32 %v2414_v1, %v2413_v21  ;;  %v2314_v8 = vadd.f32 %v2313_v17, %v2312_v47 }
 0x3bd   : > { %v2221_v58 = vpop.f32.mrf.mxu3 }
 0x3be   : > { %v2417_v27 = vadd.f32 %v2416_v32, %v2415_v18  ;;  %2259 = vst.msk [vmem:[%s4342_s7 + $0xe8] sm:$0xff] %vm2229_vm1, %v2221_v58  ;;  %v2316_v5 = vadd.f32 %v2315_v15, %v2314_v8  ;;  %v2362_v56 = vmul.f32 %v2221_v58, %v2221_v58  ;;  %v2319_v50 = vsel %vm2229_vm1, %v2221_v58, 0.0 }
 0x3c0   : > { %v2419_v61 = vadd.f32 %v2418_v59, %v2417_v27  ;;  %v2318_v41 = vadd.f32 %v2317_v11, %v2316_v5  ;;  %v2422_v13 = vsel %vm2229_vm1, %v2362_v56, 0.0 }
 0x3c2   : > { %v2421_v6 = vadd.f32 %v2420_v26, %v2419_v61  ;;  %v2320_v63 = vadd.f32 %v2319_v50, %v2318_v41 }
 0x3c4   : > { %v2423_v55 = vadd.f32 %v2422_v13, %v2421_v6 }
 0x3cd   : > { %v2224_v33 = vpop.f32.mrf.mxu3 }
 0x3ce   : > { %2260 = vst.msk [vmem:[%s4342_s7 + $0xf0] sm:$0xff] %vm2229_vm1, %v2224_v33  ;;  %v2363_v45 = vmul.f32 %v2224_v33, %v2224_v33  ;;  %v2321_v54 = vsel %vm2229_vm1, %v2224_v33, 0.0 }
 0x3cf   : > { %v2322_v14 = vadd.f32 %v2321_v54, %v2320_v63 }
 0x3d0   : > { %v2424_v24 = vsel %vm2229_vm1, %v2363_v45, 0.0 }
 0x3d1   : > { %v2425_v49 = vadd.f32 %v2424_v24, %v2423_v55 }
 0x3d5   : > { %v2226_v7 = vpop.f32.mrf.mxu3 }
 0x3d6   : > { %2261 = vst.msk [vmem:[%s4342_s7 + $0xf8] sm:$0xff] %vm2229_vm1, %v2226_v7  ;;  %v2323_v52 = vsel %vm2229_vm1, %v2226_v7, 0.0  ;;  %v2364_v9 = vmul.f32 %v2226_v7, %v2226_v7 }
 0x3d7   : > { %v2324_v20 = vadd.f32 %v2323_v52, %v2322_v14 }
 0x3d8   : > { %v2426_v36 = vsel %vm2229_vm1, %v2364_v9, 0.0 }
 0x3d9   : > { %v2325_v3 = vrot.slane %v2324_v20, 4  ;;  %v2427_v62 = vadd.f32 %v2426_v36, %v2425_v49 }
 0x3db   : > { %v2326_v29 = vadd.f32 %v2325_v3, %v2324_v20  ;;  %v2428_v10 = vrot.slane %v2427_v62, 4 }
 0x3dd   : > { %v2327_v0 = vrot.slane %v2326_v29, 2  ;;  %v2429_v39 = vadd.f32 %v2428_v10, %v2427_v62 }
 0x3df   : > { %v2328_v37 = vadd.f32 %v2327_v0, %v2326_v29  ;;  %v2430_v28 = vrot.slane %v2429_v39, 2 }
 0x3e1   : > { %v2329_v46 = vrot.slane %v2328_v37, 1  ;;  %v2431_v23 = vadd.f32 %v2430_v28, %v2429_v39 }
 0x3e3   : > { %v2330_v2 = vadd.f32 %v2329_v46, %v2328_v37  ;;  %v2432_v38 = vrot.slane %v2431_v23, 1 }
 0x3e5   : > { %2332 = vst.msk [vmem:[%s200_s14] sm:$0x1] %vm2331_vm2, %v2330_v2  ;;  %v2433_v53 = vadd.f32 %v2432_v38, %v2431_v23 }
 0x3e6   : > { %2805 = shalt.err (!%p2802_p3)
}
 0x3e7   : > { %2725 = dma.vmem_to_hbm [thread:$0]  (%p2945_p5), %s2459_s20, 16, %s2461_s22, %s2441_s19   ;;  %2434 = vst.msk [vmem:[%s206_s23] sm:$0x1] %vm2331_vm2, %v2433_v53 }
 0x3e8   : > { %s2445_s11 = scalar_lea.sflag [#allocation6], %s4595_s27  ;;  %s2820_s12 = sshra.s32 %s2474_s29, 4  ;;  %s2821_s12 = int_to_ptr.hbm [resolvable:$true] %s2820_s12 }
 0x3e9   : > { %s2822_s13 = scalar_lea.hbm %s2821_s12, 1  ;;  %s2826_s5 = scalar_lea.hbm %s4670_s4, 2 }
 0x3ea   : > { %p2823_p4 = scmp.ne.s32.totalorder %s2821_s12, %s2822_s13  ;;  %p2827_p9 = scmp.lt.s32.totalorder %s2821_s12, %s4670_s4 }
 0x3eb   : > { %p2828_p10 = scmp.lt.s32.totalorder %s2826_s5, %s2822_s13 }
 0x3ec   : > { %p2824_p7 = pnand %p2823_p4, %p2945_p5 }
 0x3ed   : > { %p2829_p11 = por %p2828_p10, %p2827_p9 }
 0x3ee   : > { %p2825_p8 = pneg %p2824_p7 }
 0x3f0   : > { %p2830_p12 = pnand %p2829_p11, %p2825_p8 }
 0x3f2   : > { %2833 = shalt.err (!%p2830_p12)
}
 0x3f3   : > { %2726 = dma.vmem_to_hbm [thread:$0]  (%p2945_p5), %s2472_s28, 16, %s2474_s29, %s2445_s11  }
 0x3f4 PF: > { %p2736_p13 = scmp.ge.s32.totalorder %s2872_s18, 2  ;;  %s2493_s27 = sand.u32 1, %s2860_s15  }
 0x3f5   : > { %s2494_s20 = scalar_lea.sflag [#allocation4], %s2493_s27 }
 0x3f6   : > { %p2730_p0 = pnand %p2736_p13, %p2949_p6 }
 0x3f8   : > { %p2731_p1 = pneg %p2730_p0 }
 0x3fa   : > { %2851 = dma.done.wait (%p2731_p1), %s2494_s20, 16  }
 0x3fb   : > { %2853 = vsyncadd (%p2731_p1), %s2494_s20, 4294967280  ;;  %s2503_s22 = scalar_lea.sflag [#allocation6], %s2493_s27 }
 0x3fc   : > { %2855 = dma.done.wait (%p2731_p1), %s2503_s22, 16  }
 0x3fd   : > { %2857 = vsyncadd (%p2731_p1), %s2503_s22, 4294967280  ;;  %p18_p5 = scmp.ge.s32.totalorder %s2932_s21, 4   ;;  %s4934_s15 = smov %s2864_s16 }
 0x3fe   : > { %s4935_s16 = smov %s2868_s17  ;;  %s4936_s17 = smov %s2943_s24 }
 0x3ff   : > { %s4937_s18 = smov %s2932_s21  ;;  %20 = sbr.rel (!%p18_p5) target bundleno = 5 (0x5), region = 92 }
 0x404   :  { %2508 = vsyncpa [#allocation4], 1 }
 0x405   :  { %2510 = vsyncpa [#allocation4 + $0x1], 1 }
 0x406   :  { %2511 = vsyncpa [#allocation6], 1 }
 0x407   :  { %2513 = vsyncpa [#allocation6 + $0x1], 1 }

</bundles_post_ra>
